<compile_context>
chip_gen: v5e
topology: v5e:2x2
jax: 0.10.0
libtpu: 0.0.40
codegen_flags: <defaults>
</compile_context>

<pallas_src>
import functools
import jax
import jax.numpy as jnp
from jax.experimental import pallas as pl
from jax.experimental.pallas import tpu as pltpu

# ----------------------------- model constants ------------------------------
H_IMG, W_IMG = 32, 32          # input image spatial size
PATCH = 4                      # backbone "conv" patch / stride
H_F, W_F = H_IMG // PATCH, W_IMG // PATCH   # 8 x 8 feature map
S = H_F * W_F                  # 64 encoder tokens
D = 32                         # d_model
NHEADS = 2
DH = D // NHEADS               # 16
NPOINTS = 4                    # deformable sampling points per head
K_ALL = NHEADS * NPOINTS       # 8
NQ = 8                         # object queries
FFN = 64
NCLASSES = 91
LANE = 128                     # lane-aligned packing stride for weight slabs
PATCH_DIM = 3 * PATCH * PATCH  # 48


# ------------------------------ fused kernel --------------------------------
def _fused_kernel(xp_ref, wpatch_ref, wd_ref, wf_ref, vec_ref, tokc_ref, qc_ref,
                  o_ref, *, wd_off, wf_off, vec_off):
    # ---- small helpers (all slices are static, lane-aligned slab reads) ----
    def wd(name):
        s, w = wd_off[name]
        return wd_ref[:, s:s + w]

    def wf(name):
        s, w = wf_off[name]
        return wf_ref[:, s:s + w]

    def vec(name):
        r, w = vec_off[name]
        return vec_ref[r:r + 1, 0:w]

    def dot(a, b):
        return jnp.dot(a, b, preferred_element_type=jnp.float32)

    def sigmoid(x):
        # TODO(synk): one-sided form (exp(-x) overflows for x << 0); fine for
        # the small activations of this synthetic model.
        return pl.reciprocal(1.0 + jnp.exp(-x), approx=True)

    def softmax_last(x):
        m = jnp.max(x, axis=-1, keepdims=True)
        e = jnp.exp(x - m)
        return e * pl.reciprocal(jnp.sum(e, axis=-1, keepdims=True), approx=True)

    def layernorm(y, gname, bname):
        mu = jnp.mean(y, axis=-1, keepdims=True)
        var = jnp.mean((y - mu) ** 2, axis=-1, keepdims=True)
        return (y - mu) * jax.lax.rsqrt(var + 1e-5) * vec(gname) + vec(bname)

    def ffn_block(x, pfx):
        h = jnp.maximum(dot(x, wd(pfx + "w1")) + vec(pfx + "b1"), 0.0)
        y = dot(h, wf(pfx + "w2")) + vec(pfx + "b2")
        return layernorm(x + y, pfx + "g", pfx + "b")

    # grid / lane-packing constants, computed ONCE and shared by both
    # deformable-attention calls (hoisted, no per-loop broadcasts).
    lane2s = jax.lax.broadcasted_iota(jnp.int32, (1, 2 * S), 1)
    head_lo = lane2s < S                 # lanes [0,S): head 0, [S,2S): head 1
    colf2 = vec("grid_col")              # [1, 2S] pixel column (both heads)
    rowf2 = vec("grid_row")              # [1, 2S] pixel row    (both heads)
    lane_k = jax.lax.broadcasted_iota(jnp.int32, (1, K_ALL), 1)

    def deform_core(oa, v, wo_name, bo_name):
        # oa: [N, 3K]; reference points + grid_sample constants are pre-folded
        # into its bias, so oa[:, :K] / oa[:, K:2K] are directly px / py.
        n = oa.shape[0]
        px = oa[:, 0:K_ALL]
        py = oa[:, K_ALL:2 * K_ALL]
        al = oa[:, 2 * K_ALL:3 * K_ALL]
        # both heads' softmax at once; 1/sum is folded into interp below
        m0 = jnp.max(al[:, 0:NPOINTS], axis=-1, keepdims=True)
        m1 = jnp.max(al[:, NPOINTS:K_ALL], axis=-1, keepdims=True)
        e = jnp.exp(al - jnp.where(lane_k < NPOINTS, m0, m1))
        s0 = jnp.sum(e[:, 0:NPOINTS], axis=-1, keepdims=True)
        s1 = jnp.sum(e[:, NPOINTS:K_ALL], axis=-1, keepdims=True)
        # lane-dense [N, 2S] interpolation matrix, head h in lanes [h*S,(h+1)*S)
        interp = jnp.zeros((n, 2 * S), jnp.float32)
        for p in range(NPOINTS):
            px2 = jnp.where(head_lo, px[:, p:p + 1], px[:, NPOINTS + p:NPOINTS + p + 1])
            py2 = jnp.where(head_lo, py[:, p:p + 1], py[:, NPOINTS + p:NPOINTS + p + 1])
            e2 = jnp.where(head_lo, e[:, p:p + 1], e[:, NPOINTS + p:NPOINTS + p + 1])
            # tent weights == bilinear interpolation with zeros padding
            wx = jnp.maximum(1.0 - jnp.abs(px2 - colf2), 0.0)
            wy = jnp.maximum(1.0 - jnp.abs(py2 - rowf2), 0.0)
            interp = interp + e2 * (wx * wy)
        inv_s = jnp.where(head_lo, pl.reciprocal(s0, approx=True),
                          pl.reciprocal(s1, approx=True))
        interp = interp * inv_s
        # block-diagonal value [2S, D]: ONE K=128 matmul produces both heads,
        # already laid out as the concatenation of head outputs.
        coln = jax.lax.broadcasted_iota(jnp.int32, (1, D), 1)
        vblk = jnp.concatenate([jnp.where(coln < DH, v, 0.0),
                                jnp.where(coln >= DH, v, 0.0)], axis=0)
        out = dot(interp, vblk)                                       # [N, D]
        return dot(out, wd(wo_name)) + vec(bo_name)

    def self_attn(tgt):
        # query_pos contribution to Q/K is pre-folded into the per-query bias
        qkv = dot(tgt, wd("sa_wqkv")) + qc_ref[:, D:D + 3 * D]        # [NQ, 3D]
        scale = 1.0 / (DH ** 0.5)
        acc = jnp.zeros((NQ, D), jnp.float32)
        for h in range(NHEADS):
            qh = qkv[:, h * DH:(h + 1) * DH]
            kh = qkv[:, D + h * DH:D + (h + 1) * DH]
            vh = qkv[:, 2 * D + h * DH:2 * D + (h + 1) * DH]
            s = jax.lax.dot_general(qh, kh, (((1,), (1,)), ((), ())),
                                    preferred_element_type=jnp.float32) * scale
            head = dot(softmax_last(s), vh)
            acc = acc + dot(head, wd("sa_wo")[h * DH:(h + 1) * DH, :])
        return acc + vec("sa_bo")

    # ---------- backbone: patch embedding (ImageNet normalization folded in)
    feat = dot(xp_ref[...], wpatch_ref[...]) + vec("b_patch")         # [S, D]

    # ---------- encoder layer (deformable self-attention + FFN)
    # TODO(synk): real Deformable DETR uses a 4-level feature pyramid; single level here.
    fused_enc = dot(feat, wd("enc_wvoa"))                             # [S, D+3K]
    v_enc = fused_enc[:, 0:D] + vec("enc_bv")
    oa_enc = fused_enc[:, D:D + 3 * K_ALL] + tokc_ref[:, 0:3 * K_ALL]
    attn = deform_core(oa_enc, v_enc, "enc_wo", "enc_bo")
    feat = layernorm(feat + attn, "enc_ln1_g", "enc_ln1_b")
    memory = ffn_block(feat, "enc_ffn_")

    # ---------- decoder layer (self-attn + deformable cross-attn + FFN)
    tgt = qc_ref[:, 0:D]                                              # query_embed
    sa = self_attn(tgt)
    tgt = layernorm(tgt + sa, "dec_ln1_g", "dec_ln1_b")
    v_ca = dot(memory, wd("ca_wv")) + vec("ca_bv")
    oa_ca = dot(tgt, wd("ca_woa")) + qc_ref[:, 4 * D:4 * D + 3 * K_ALL]
    ca = deform_core(oa_ca, v_ca, "ca_wo", "ca_bo")
    tgt = layernorm(tgt + ca, "dec_ln2_g", "dec_ln2_b")
    tgt = ffn_block(tgt, "dec_ffn_")

    # ---------- prediction heads (class head and bbox-MLP layer 1 fused)
    cls_bb = dot(tgt, wd("w_cls_bb1")) + vec("b_cls_bb1")             # [NQ, 91+32]
    logits = cls_bb[:, 0:NCLASSES]
    h1 = jnp.maximum(cls_bb[:, NCLASSES:NCLASSES + D], 0.0)
    h2 = jnp.maximum(dot(h1, wd("w_bb2")) + vec("b_bb2"), 0.0)
    delta = dot(h2, wd("w_bb3")) + vec("b_bb3")                       # [NQ, 4]
    inv_ref = qc_ref[:, 4 * D + 3 * K_ALL:4 * D + 3 * K_ALL + 2]      # exact logit
    boxes_xy = sigmoid(delta[:, 0:2] + inv_ref)                       # cx, cy
    boxes_wh = sigmoid(delta[:, 2:4])                                 # w, h

    # ---------- post_process_object_detection: top-1 box, cxcywh -> xyxy, scale
    # TODO(synk): threshold=0.5 filtering omitted; top-1 box is returned.
    prob = sigmoid(logits)
    scores = jnp.max(prob, axis=-1, keepdims=True)                    # [NQ, 1]
    best = jnp.max(scores, axis=0, keepdims=True)                     # [1, 1]
    qio = jax.lax.broadcasted_iota(jnp.int32, (NQ, 1), 0).astype(jnp.float32)
    first = jnp.min(jnp.where(scores >= best, qio, float(NQ)),
                    axis=0, keepdims=True)                            # first argmax
    sel = (qio == first).astype(jnp.float32)                          # [NQ, 1]
    box_xy = jnp.sum(boxes_xy * sel, axis=0, keepdims=True)           # [1, 2]
    box_wh = jnp.sum(boxes_wh * sel, axis=0, keepdims=True)           # [1, 2]
    scale = float(W_IMG)                                              # square image
    o_ref[...] = jnp.concatenate([box_xy - 0.5 * box_wh,
                                  box_xy + 0.5 * box_wh], axis=1) * scale


# ------------------------------ parameter init ------------------------------
def init_params(key):
    keys = iter(jax.random.split(key, 64))

    def w(shape):
        return jax.random.normal(next(keys), shape, jnp.float32) * (shape[0] ** -0.5)

    def zeros(shape):
        return jnp.zeros(shape, jnp.float32)

    def ones(shape):
        return jnp.ones(shape, jnp.float32)

    def deform_block():
        return (w((D, D)), zeros((1, D)),                       # value proj
                w((D, NHEADS * NPOINTS * 2)) * 0.5,             # sampling offsets
                jax.random.normal(next(keys), (1, NHEADS * NPOINTS * 2), jnp.float32) * 0.5,
                w((D, NHEADS * NPOINTS)), zeros((1, NHEADS * NPOINTS)),   # attn weights
                w((D, D)), zeros((1, D)))                       # output proj

    def ffn_block():
        return (w((D, FFN)), zeros((1, FFN)), w((FFN, D)), zeros((1, D)),
                ones((1, D)), zeros((1, D)))

    return {
        "img_mean": jnp.array([[0.485], [0.456], [0.406]], jnp.float32),
        "img_std": jnp.array([[0.229], [0.224], [0.225]], jnp.float32),
        "w_patch": w((PATCH_DIM, D)), "b_patch": zeros((1, D)),
        "pos_embed": jax.random.normal(next(keys), (S, D), jnp.float32) * 0.1,
        "enc_attn": deform_block(),
        "enc_ln1_g": ones((1, D)), "enc_ln1_b": zeros((1, D)),
        "enc_ffn": ffn_block(),
        "query_embed": jax.random.normal(next(keys), (NQ, D), jnp.float32) * 0.1,
        "query_pos": jax.random.normal(next(keys), (NQ, D), jnp.float32) * 0.1,
        "w_ref": w((D, 2)), "b_ref": zeros((1, 2)),
        "dec_sa": (w((D, D)), zeros((1, D)), w((D, D)), zeros((1, D)),
                   w((D, D)), zeros((1, D)), w((D, D)), zeros((1, D))),
        "dec_ln1_g": ones((1, D)), "dec_ln1_b": zeros((1, D)),
        "dec_ca": deform_block(),
        "dec_ln2_g": ones((1, D)), "dec_ln2_b": zeros((1, D)),
        "dec_ffn": ffn_block(),
        "w_cls": w((D, NCLASSES)), "b_cls": zeros((1, NCLASSES)),
        "w_bb1": w((D, D)), "b_bb1": zeros((1, D)),
        "w_bb2": w((D, D)), "b_bb2": zeros((1, D)),
        "w_bb3": w((D, 4)), "b_bb3": zeros((1, 4)),
    }


# ------------------------------ parameter packing ----------------------------
def _pack_cols(entries):
    """Concat matrices along lanes, each in its own 128-lane aligned block."""
    blocks, off, col = [], {}, 0
    for name, m in entries:
        width = m.shape[1]
        blocks.append(jnp.pad(m, ((0, 0), (0, LANE - width))))
        off[name] = (col, width)
        col += LANE
    return jnp.concatenate(blocks, axis=1).astype(jnp.float32), off


def _pack_rows(entries):
    """Stack bias/LN/constant vectors as rows of one [NV, 128] slab."""
    rows, off = [], {}
    for i, (name, v) in enumerate(entries):
        v2 = v.reshape(1, -1)
        width = v2.shape[1]
        rows.append(jnp.pad(v2, ((0, 0), (0, LANE - width))))
        off[name] = (i, width)
    return jnp.concatenate(rows, axis=0).astype(jnp.float32), off


def pack_params(p):
    enc_wv, enc_bv, enc_woff, enc_boff, enc_wat, enc_bat, enc_wo, enc_bo = p["enc_attn"]
    ca_wv, ca_bv, ca_woff, ca_boff, ca_wat, ca_bat, ca_wo, ca_bo = p["dec_ca"]
    sa_wq, sa_bq, sa_wk, sa_bk, sa_wv, sa_bv, sa_wo, sa_bo = p["dec_sa"]
    enc_w1, enc_b1, enc_w2, enc_b2, enc_g, enc_bb = p["enc_ffn"]
    dec_w1, dec_b1, dec_w2, dec_b2, dec_g, dec_bb = p["dec_ffn"]

    def reorder_off(m):
        # interleaved (x0,y0,x1,y1,...) columns -> [all x | all y]
        return jnp.concatenate([m[..., 0::2], m[..., 1::2]], axis=-1)

    enc_woa = jnp.concatenate([reorder_off(enc_woff), enc_wat], axis=1)   # [D, 3K]
    enc_boa = jnp.concatenate([reorder_off(enc_boff), enc_bat], axis=1)   # [1, 3K]
    ca_woa = jnp.concatenate([reorder_off(ca_woff), ca_wat], axis=1)
    ca_boa = jnp.concatenate([reorder_off(ca_boff), ca_bat], axis=1)

    # --- fold ImageNet normalization into the patch-embedding matmul (exact):
    # ((x - m)/s) @ W + b == x @ (W / s) + (b - (m/s) @ W)
    mean_col = jnp.repeat(p["img_mean"].reshape(3), PATCH * PATCH)        # [48]
    std_col = jnp.repeat(p["img_std"].reshape(3), PATCH * PATCH)
    w_patch = p["w_patch"] / std_col[:, None]
    b_patch = p["b_patch"] - (mean_col / std_col)[None, :] @ p["w_patch"]

    # --- fold constant pos / query-pos embeddings + reference points (exact) --
    pos = p["pos_embed"]                      # [S, D]
    qpos = p["query_pos"]                     # [NQ, D]
    tok = jnp.arange(S)
    enc_rx = ((tok % W_F).astype(jnp.float32) + 0.5) / W_F
    enc_ry = ((tok // W_F).astype(jnp.float32) + 0.5) / H_F
    enc_oa_bias = pos @ enc_woa + enc_boa                                 # [S, 3K]
    enc_oa_bias = enc_oa_bias.at[:, 0:K_ALL].add((enc_rx * W_F - 0.5)[:, None])
    enc_oa_bias = enc_oa_bias.at[:, K_ALL:2 * K_ALL].add((enc_ry * H_F - 0.5)[:, None])
    tokc = jnp.pad(enc_oa_bias, ((0, 0), (0, LANE - 3 * K_ALL))).astype(jnp.float32)

    ref_logit = qpos @ p["w_ref"] + p["b_ref"]                            # [NQ, 2]
    dec_ref = jax.nn.sigmoid(ref_logit)                                   # exact host sigmoid
    ca_oa_bias = qpos @ ca_woa + ca_boa                                   # [NQ, 3K]
    ca_oa_bias = ca_oa_bias.at[:, 0:K_ALL].add(dec_ref[:, 0:1] * W_F - 0.5)
    ca_oa_bias = ca_oa_bias.at[:, K_ALL:2 * K_ALL].add(dec_ref[:, 1:2] * H_F - 0.5)

    sa_qkv_bias = jnp.concatenate(
        [sa_bq + qpos @ sa_wq, sa_bk + qpos @ sa_wk,
         jnp.broadcast_to(sa_bv, (NQ, D))], axis=1)                       # [NQ, 3D]
    qc_blk0 = jnp.concatenate([p["query_embed"], sa_qkv_bias], axis=1)    # [NQ, 128]
    qc_blk1 = jnp.pad(jnp.concatenate([ca_oa_bias, ref_logit], axis=1),
                      ((0, 0), (0, LANE - (3 * K_ALL + 2))))
    qc = jnp.concatenate([qc_blk0, qc_blk1], axis=1).astype(jnp.float32)  # [NQ, 256]

    # --- fused same-input projections ----------------------------------------
    enc_wvoa = jnp.concatenate([enc_wv, enc_woa], axis=1)                 # [D, D+3K]
    sa_wqkv = jnp.concatenate([sa_wq, sa_wk, sa_wv], axis=1)              # [D, 3D]
    w_cls_bb1 = jnp.concatenate([p["w_cls"], p["w_bb1"]], axis=1)         # [D, 91+32]
    b_cls_bb1 = jnp.concatenate([p["b_cls"], p["b_bb1"]], axis=1)

    # TODO(synk): on v6e/v7x the wd/wf slabs could be stored in bf16 (f32
    # accumulate) to cut MXU passes; kept f32 here for exactness on all chips.
    wd, wd_off = _pack_cols([
        ("enc_wvoa", enc_wvoa), ("enc_wo", enc_wo), ("enc_ffn_w1", enc_w1),
        ("sa_wqkv", sa_wqkv), ("sa_wo", sa_wo),
        ("ca_wv", ca_wv), ("ca_woa", ca_woa), ("ca_wo", ca_wo),
        ("dec_ffn_w1", dec_w1),
        ("w_cls_bb1", w_cls_bb1), ("w_bb2", p["w_bb2"]), ("w_bb3", p["w_bb3"]),
    ])
    wf, wf_off = _pack_cols([("enc_ffn_w2", enc_w2), ("dec_ffn_w2", dec_w2)])

    grid_col = jnp.tile((tok % W_F).astype(jnp.float32), 2).reshape(1, 2 * S)
    grid_row = jnp.tile((tok // W_F).astype(jnp.float32), 2).reshape(1, 2 * S)

    vecs, vec_off = _pack_rows([
        ("b_patch", b_patch),
        ("enc_bv", enc_bv), ("enc_bo", enc_bo),
        ("enc_ln1_g", p["enc_ln1_g"]), ("enc_ln1_b", p["enc_ln1_b"]),
        ("enc_ffn_b1", enc_b1), ("enc_ffn_b2", enc_b2),
        ("enc_ffn_g", enc_g), ("enc_ffn_b", enc_bb),
        ("sa_bo", sa_bo),
        ("dec_ln1_g", p["dec_ln1_g"]), ("dec_ln1_b", p["dec_ln1_b"]),
        ("ca_bv", ca_bv), ("ca_bo", ca_bo),
        ("dec_ln2_g", p["dec_ln2_g"]), ("dec_ln2_b", p["dec_ln2_b"]),
        ("dec_ffn_b1", dec_b1), ("dec_ffn_b2", dec_b2),
        ("dec_ffn_g", dec_g), ("dec_ffn_b", dec_bb),
        ("b_cls_bb1", b_cls_bb1), ("b_bb2", p["b_bb2"]), ("b_bb3", p["b_bb3"]),
        ("grid_col", grid_col), ("grid_row", grid_row),
    ])

    packs = {"w_patch": w_patch.astype(jnp.float32), "wd": wd, "wf": wf,
             "vecs": vecs, "tokc": tokc, "qc": qc}
    offs = {"wd_off": wd_off, "wf_off": wf_off, "vec_off": vec_off}
    return packs, offs


# --------------------------------- forward ----------------------------------
def build_forward(packs, offs):
    kernel = functools.partial(_fused_kernel, wd_off=offs["wd_off"],
                               wf_off=offs["wf_off"], vec_off=offs["vec_off"])

    def forward(x_nchw):
        B = x_nchw.shape[0]
        # ---- image processor: resize/pad omitted at these synthetic shapes;
        # ImageNet normalization is folded into w_patch/b_patch.
        # im2col patchify (pure data movement done in XLA glue)
        patches = (x_nchw.reshape(B, 3, H_F, PATCH, W_F, PATCH)
                   .transpose(0, 2, 4, 1, 3, 5)
                   .reshape(B, S, PATCH_DIM))                             # [B, S, 48]

        def full(a):
            return pl.BlockSpec(a.shape, lambda b, _nd=a.ndim: (0,) * _nd)

        boxes = pl.pallas_call(
            kernel,
            out_shape=jax.ShapeDtypeStruct((B, 1, 4), jnp.float32),
            grid=(B,),
            in_specs=[
                pl.BlockSpec((None, S, PATCH_DIM), lambda b: (b, 0, 0)),  # per-image
                full(packs["w_patch"]), full(packs["wd"]), full(packs["wf"]),
                full(packs["vecs"]), full(packs["tokc"]), full(packs["qc"]),
            ],
            out_specs=pl.BlockSpec((None, 1, 4), lambda b: (b, 0, 0)),
            compiler_params=pltpu.CompilerParams(
                dimension_semantics=("parallel",)),
        )(patches, packs["w_patch"], packs["wd"], packs["wf"],
          packs["vecs"], packs["tokc"], packs["qc"])                      # [B, 1, 4]
        return boxes[:, 0, :]                                             # [B, 4]

    return jax.jit(forward)


# ----------------------------------- main ------------------------------------
if __name__ == "__main__":
    key = jax.random.PRNGKey(0)
    kx, kp = jax.random.split(key)
    B = 2
    # synthetic input images (pixel values in [0, 1]), NCHW like PyTorch
    x = jax.random.uniform(kx, (B, 3, H_IMG, W_IMG), jnp.float32)
    params = init_params(kp)
    packs, offs = pack_params(params)

    fwd = build_forward(packs, offs)
    out = jax.block_until_ready(fwd(x))                                   # [B, 4]
    # module returns a python list of 4 rounded floats (per image)
    _boxes = [[round(float(v), 2) for v in row] for row in out]
    print("KERNEL_OK")
</pallas_src>

<mosaic_0001>
module attributes {stable_mosaic.version = 11 : i64} {
  func.func @_fused_kernel(%arg0: i32, %arg1: memref<1x64x48xf32, #tpu.memory_space<vmem>>, %arg2: memref<48x32xf32, #tpu.memory_space<vmem>>, %arg3: memref<32x1536xf32, #tpu.memory_space<vmem>>, %arg4: memref<64x256xf32, #tpu.memory_space<vmem>>, %arg5: memref<25x128xf32, #tpu.memory_space<vmem>>, %arg6: memref<64x128xf32, #tpu.memory_space<vmem>>, %arg7: memref<8x256xf32, #tpu.memory_space<vmem>>, %arg8: memref<1x1x4xf32, #tpu.memory_space<vmem>>) attributes {dimension_semantics = [#tpu.dimension_semantics<parallel>], iteration_bounds = array<i64: 2>, scalar_prefetch = 0 : i64, scratch_operands = 0 : i64, tpu.core_type = #tpu.core_type<tc>, window_params = [{transform_indices = @transform_0, window_bounds = array<i64: 1, 64, 48>}, {pipeline_mode = #tpu.pipeline_mode<synchronous>, transform_indices = @transform_1, window_bounds = array<i64: 48, 32>}, {pipeline_mode = #tpu.pipeline_mode<synchronous>, transform_indices = @transform_2, window_bounds = array<i64: 32, 1536>}, {pipeline_mode = #tpu.pipeline_mode<synchronous>, transform_indices = @transform_3, window_bounds = array<i64: 64, 256>}, {pipeline_mode = #tpu.pipeline_mode<synchronous>, transform_indices = @transform_4, window_bounds = array<i64: 25, 128>}, {pipeline_mode = #tpu.pipeline_mode<synchronous>, transform_indices = @transform_5, window_bounds = array<i64: 64, 128>}, {pipeline_mode = #tpu.pipeline_mode<synchronous>, transform_indices = @transform_6, window_bounds = array<i64: 8, 256>}, {transform_indices = @transform_7, window_bounds = array<i64: 1, 1, 4>}]} {
    %0 = tpu.iota {dimensions = array<i32: 1>} : vector<1x128xi32>
    %c64_i32 = arith.constant 64 : i32
    %1 = vector.broadcast %c64_i32 : i32 to vector<1x128xi32>
    %2 = arith.cmpi slt, %0, %1 : vector<1x128xi32>
    %c23 = arith.constant 23 : index
    %c0 = arith.constant 0 : index
    %3 = vector.load %arg5[%c23, %c0] : memref<25x128xf32, #tpu.memory_space<vmem>>, vector<1x128xf32>
    %c24 = arith.constant 24 : index
    %c0_0 = arith.constant 0 : index
    %4 = vector.load %arg5[%c24, %c0_0] : memref<25x128xf32, #tpu.memory_space<vmem>>, vector<1x128xf32>
    %5 = tpu.iota {dimensions = array<i32: 1>} : vector<1x8xi32>
    %c0_1 = arith.constant 0 : index
    %c0_2 = arith.constant 0 : index
    %c0_3 = arith.constant 0 : index
    %6 = vector.load %arg1[%c0_1, %c0_2, %c0_3] : memref<1x64x48xf32, #tpu.memory_space<vmem>>, vector<1x64x48xf32>
    %7 = vector.shape_cast %6 : vector<1x64x48xf32> to vector<64x48xf32>
    %c0_4 = arith.constant 0 : index
    %c0_5 = arith.constant 0 : index
    %8 = vector.load %arg2[%c0_4, %c0_5] : memref<48x32xf32, #tpu.memory_space<vmem>>, vector<48x32xf32>
    %cst = arith.constant dense<0.000000e+00> : vector<64x32xf32>
    %9 = tpu.matmul %7, %8, %cst {dimension_numbers = #tpu.dot_dimension_numbers<[1], [0], [0], [1], [0, 0, 1, 1], [], []>} : vector<64x48xf32>, vector<48x32xf32>, vector<64x32xf32> -> vector<64x32xf32>
    %c0_6 = arith.constant 0 : index
    %c0_7 = arith.constant 0 : index
    %10 = vector.load %arg5[%c0_6, %c0_7] : memref<25x128xf32, #tpu.memory_space<vmem>>, vector<1x32xf32>
    %11 = vector.broadcast %10 : vector<1x32xf32> to vector<64x32xf32>
    %12 = arith.addf %9, %11 : vector<64x32xf32>
    %c0_8 = arith.constant 0 : index
    %c0_9 = arith.constant 0 : index
    %13 = vector.load %arg3[%c0_8, %c0_9] : memref<32x1536xf32, #tpu.memory_space<vmem>>, vector<32x56xf32>
    %cst_10 = arith.constant dense<0.000000e+00> : vector<64x56xf32>
    %14 = tpu.matmul %12, %13, %cst_10 {dimension_numbers = #tpu.dot_dimension_numbers<[1], [0], [0], [1], [0, 0, 1, 1], [], []>} : vector<64x32xf32>, vector<32x56xf32>, vector<64x56xf32> -> vector<64x56xf32>
    %15 = vector.extract_strided_slice %14 {offsets = [0, 0], sizes = [64, 32], strides = [1, 1]} : vector<64x56xf32> to vector<64x32xf32>
    %c1 = arith.constant 1 : index
    %c0_11 = arith.constant 0 : index
    %16 = vector.load %arg5[%c1, %c0_11] : memref<25x128xf32, #tpu.memory_space<vmem>>, vector<1x32xf32>
    %17 = vector.broadcast %16 : vector<1x32xf32> to vector<64x32xf32>
    %18 = arith.addf %15, %17 : vector<64x32xf32>
    %19 = vector.extract_strided_slice %14 {offsets = [0, 32], sizes = [64, 24], strides = [1, 1]} : vector<64x56xf32> to vector<64x24xf32>
    %c0_12 = arith.constant 0 : index
    %c0_13 = arith.constant 0 : index
    %20 = vector.load %arg6[%c0_12, %c0_13] : memref<64x128xf32, #tpu.memory_space<vmem>>, vector<64x24xf32>
    %21 = arith.addf %19, %20 : vector<64x24xf32>
    %22 = vector.extract_strided_slice %21 {offsets = [0, 0], sizes = [64, 8], strides = [1, 1]} : vector<64x24xf32> to vector<64x8xf32>
    %23 = vector.extract_strided_slice %21 {offsets = [0, 8], sizes = [64, 8], strides = [1, 1]} : vector<64x24xf32> to vector<64x8xf32>
    %24 = vector.extract_strided_slice %21 {offsets = [0, 16], sizes = [64, 8], strides = [1, 1]} : vector<64x24xf32> to vector<64x8xf32>
    %25 = vector.extract_strided_slice %24 {offsets = [0, 0], sizes = [64, 4], strides = [1, 1]} : vector<64x8xf32> to vector<64x4xf32>
    %cst_14 = arith.constant dense<0xFF800000> : vector<64xf32>
    %26 = vector.multi_reduction <maximumf>, %25, %cst_14 [1] : vector<64x4xf32> to vector<64xf32>
    %27 = vector.shape_cast %26 : vector<64xf32> to vector<64x1xf32>
    %28 = vector.extract_strided_slice %24 {offsets = [0, 4], sizes = [64, 4], strides = [1, 1]} : vector<64x8xf32> to vector<64x4xf32>
    %cst_15 = arith.constant dense<0xFF800000> : vector<64xf32>
    %29 = vector.multi_reduction <maximumf>, %28, %cst_15 [1] : vector<64x4xf32> to vector<64xf32>
    %30 = vector.shape_cast %29 : vector<64xf32> to vector<64x1xf32>
    %c4_i32 = arith.constant 4 : i32
    %31 = vector.broadcast %c4_i32 : i32 to vector<1x8xi32>
    %32 = arith.cmpi slt, %5, %31 : vector<1x8xi32>
    %33 = vector.shape_cast %32 : vector<1x8xi1> to vector<1x8xi1>
    %34 = vector.broadcast %33 : vector<1x8xi1> to vector<64x8xi1>
    %35 = vector.shape_cast %27 : vector<64x1xf32> to vector<64x1xf32>
    %36 = vector.broadcast %35 : vector<64x1xf32> to vector<64x8xf32>
    %37 = vector.shape_cast %30 : vector<64x1xf32> to vector<64x1xf32>
    %38 = vector.broadcast %37 : vector<64x1xf32> to vector<64x8xf32>
    %39 = arith.select %34, %36, %38 : vector<64x8xi1>, vector<64x8xf32>
    %40 = arith.subf %24, %39 : vector<64x8xf32>
    %41 = math.exp %40 : vector<64x8xf32>
    %42 = vector.extract_strided_slice %41 {offsets = [0, 0], sizes = [64, 4], strides = [1, 1]} : vector<64x8xf32> to vector<64x4xf32>
    %cst_16 = arith.constant dense<0.000000e+00> : vector<64xf32>
    %43 = vector.multi_reduction <add>, %42, %cst_16 [1] : vector<64x4xf32> to vector<64xf32>
    %44 = vector.shape_cast %43 : vector<64xf32> to vector<64x1xf32>
    %45 = vector.extract_strided_slice %41 {offsets = [0, 4], sizes = [64, 4], strides = [1, 1]} : vector<64x8xf32> to vector<64x4xf32>
    %cst_17 = arith.constant dense<0.000000e+00> : vector<64xf32>
    %46 = vector.multi_reduction <add>, %45, %cst_17 [1] : vector<64x4xf32> to vector<64xf32>
    %47 = vector.shape_cast %46 : vector<64xf32> to vector<64x1xf32>
    %cst_18 = arith.constant 0.000000e+00 : f32
    %48 = vector.broadcast %cst_18 : f32 to vector<64x128xf32>
    %49 = vector.extract_strided_slice %22 {offsets = [0, 0], sizes = [64, 1], strides = [1, 1]} : vector<64x8xf32> to vector<64x1xf32>
    %50 = vector.extract_strided_slice %22 {offsets = [0, 4], sizes = [64, 1], strides = [1, 1]} : vector<64x8xf32> to vector<64x1xf32>
    %51 = vector.shape_cast %2 : vector<1x128xi1> to vector<1x128xi1>
    %52 = vector.broadcast %51 : vector<1x128xi1> to vector<64x128xi1>
    %53 = vector.shape_cast %49 : vector<64x1xf32> to vector<64x1xf32>
    %54 = vector.broadcast %53 : vector<64x1xf32> to vector<64x128xf32>
    %55 = vector.shape_cast %50 : vector<64x1xf32> to vector<64x1xf32>
    %56 = vector.broadcast %55 : vector<64x1xf32> to vector<64x128xf32>
    %57 = arith.select %52, %54, %56 : vector<64x128xi1>, vector<64x128xf32>
    %58 = vector.extract_strided_slice %23 {offsets = [0, 0], sizes = [64, 1], strides = [1, 1]} : vector<64x8xf32> to vector<64x1xf32>
    %59 = vector.extract_strided_slice %23 {offsets = [0, 4], sizes = [64, 1], strides = [1, 1]} : vector<64x8xf32> to vector<64x1xf32>
    %60 = vector.shape_cast %2 : vector<1x128xi1> to vector<1x128xi1>
    %61 = vector.broadcast %60 : vector<1x128xi1> to vector<64x128xi1>
    %62 = vector.shape_cast %58 : vector<64x1xf32> to vector<64x1xf32>
    %63 = vector.broadcast %62 : vector<64x1xf32> to vector<64x128xf32>
    %64 = vector.shape_cast %59 : vector<64x1xf32> to vector<64x1xf32>
    %65 = vector.broadcast %64 : vector<64x1xf32> to vector<64x128xf32>
    %66 = arith.select %61, %63, %65 : vector<64x128xi1>, vector<64x128xf32>
    %67 = vector.extract_strided_slice %41 {offsets = [0, 0], sizes = [64, 1], strides = [1, 1]} : vector<64x8xf32> to vector<64x1xf32>
    %68 = vector.extract_strided_slice %41 {offsets = [0, 4], sizes = [64, 1], strides = [1, 1]} : vector<64x8xf32> to vector<64x1xf32>
    %69 = vector.shape_cast %2 : vector<1x128xi1> to vector<1x128xi1>
    %70 = vector.broadcast %69 : vector<1x128xi1> to vector<64x128xi1>
    %71 = vector.shape_cast %67 : vector<64x1xf32> to vector<64x1xf32>
    %72 = vector.broadcast %71 : vector<64x1xf32> to vector<64x128xf32>
    %73 = vector.shape_cast %68 : vector<64x1xf32> to vector<64x1xf32>
    %74 = vector.broadcast %73 : vector<64x1xf32> to vector<64x128xf32>
    %75 = arith.select %70, %72, %74 : vector<64x128xi1>, vector<64x128xf32>
    %76 = vector.broadcast %3 : vector<1x128xf32> to vector<64x128xf32>
    %77 = arith.subf %57, %76 : vector<64x128xf32>
    %78 = math.absf %77 : vector<64x128xf32>
    %cst_19 = arith.constant 1.000000e+00 : f32
    %79 = vector.broadcast %cst_19 : f32 to vector<64x128xf32>
    %80 = arith.subf %79, %78 : vector<64x128xf32>
    %cst_20 = arith.constant 0.000000e+00 : f32
    %81 = vector.broadcast %cst_20 : f32 to vector<64x128xf32>
    %82 = arith.maximumf %80, %81 : vector<64x128xf32>
    %83 = vector.broadcast %4 : vector<1x128xf32> to vector<64x128xf32>
    %84 = arith.subf %66, %83 : vector<64x128xf32>
    %85 = math.absf %84 : vector<64x128xf32>
    %cst_21 = arith.constant 1.000000e+00 : f32
    %86 = vector.broadcast %cst_21 : f32 to vector<64x128xf32>
    %87 = arith.subf %86, %85 : vector<64x128xf32>
    %cst_22 = arith.constant 0.000000e+00 : f32
    %88 = vector.broadcast %cst_22 : f32 to vector<64x128xf32>
    %89 = arith.maximumf %87, %88 : vector<64x128xf32>
    %90 = arith.mulf %82, %89 : vector<64x128xf32>
    %91 = arith.mulf %75, %90 : vector<64x128xf32>
    %92 = arith.addf %48, %91 : vector<64x128xf32>
    %93 = vector.extract_strided_slice %22 {offsets = [0, 1], sizes = [64, 1], strides = [1, 1]} : vector<64x8xf32> to vector<64x1xf32>
    %94 = vector.extract_strided_slice %22 {offsets = [0, 5], sizes = [64, 1], strides = [1, 1]} : vector<64x8xf32> to vector<64x1xf32>
    %95 = vector.shape_cast %2 : vector<1x128xi1> to vector<1x128xi1>
    %96 = vector.broadcast %95 : vector<1x128xi1> to vector<64x128xi1>
    %97 = vector.shape_cast %93 : vector<64x1xf32> to vector<64x1xf32>
    %98 = vector.broadcast %97 : vector<64x1xf32> to vector<64x128xf32>
    %99 = vector.shape_cast %94 : vector<64x1xf32> to vector<64x1xf32>
    %100 = vector.broadcast %99 : vector<64x1xf32> to vector<64x128xf32>
    %101 = arith.select %96, %98, %100 : vector<64x128xi1>, vector<64x128xf32>
    %102 = vector.extract_strided_slice %23 {offsets = [0, 1], sizes = [64, 1], strides = [1, 1]} : vector<64x8xf32> to vector<64x1xf32>
    %103 = vector.extract_strided_slice %23 {offsets = [0, 5], sizes = [64, 1], strides = [1, 1]} : vector<64x8xf32> to vector<64x1xf32>
    %104 = vector.shape_cast %2 : vector<1x128xi1> to vector<1x128xi1>
    %105 = vector.broadcast %104 : vector<1x128xi1> to vector<64x128xi1>
    %106 = vector.shape_cast %102 : vector<64x1xf32> to vector<64x1xf32>
    %107 = vector.broadcast %106 : vector<64x1xf32> to vector<64x128xf32>
    %108 = vector.shape_cast %103 : vector<64x1xf32> to vector<64x1xf32>
    %109 = vector.broadcast %108 : vector<64x1xf32> to vector<64x128xf32>
    %110 = arith.select %105, %107, %109 : vector<64x128xi1>, vector<64x128xf32>
    %111 = vector.extract_strided_slice %41 {offsets = [0, 1], sizes = [64, 1], strides = [1, 1]} : vector<64x8xf32> to vector<64x1xf32>
    %112 = vector.extract_strided_slice %41 {offsets = [0, 5], sizes = [64, 1], strides = [1, 1]} : vector<64x8xf32> to vector<64x1xf32>
    %113 = vector.shape_cast %2 : vector<1x128xi1> to vector<1x128xi1>
    %114 = vector.broadcast %113 : vector<1x128xi1> to vector<64x128xi1>
    %115 = vector.shape_cast %111 : vector<64x1xf32> to vector<64x1xf32>
    %116 = vector.broadcast %115 : vector<64x1xf32> to vector<64x128xf32>
    %117 = vector.shape_cast %112 : vector<64x1xf32> to vector<64x1xf32>
    %118 = vector.broadcast %117 : vector<64x1xf32> to vector<64x128xf32>
    %119 = arith.select %114, %116, %118 : vector<64x128xi1>, vector<64x128xf32>
    %120 = vector.broadcast %3 : vector<1x128xf32> to vector<64x128xf32>
    %121 = arith.subf %101, %120 : vector<64x128xf32>
    %122 = math.absf %121 : vector<64x128xf32>
    %cst_23 = arith.constant 1.000000e+00 : f32
    %123 = vector.broadcast %cst_23 : f32 to vector<64x128xf32>
    %124 = arith.subf %123, %122 : vector<64x128xf32>
    %cst_24 = arith.constant 0.000000e+00 : f32
    %125 = vector.broadcast %cst_24 : f32 to vector<64x128xf32>
    %126 = arith.maximumf %124, %125 : vector<64x128xf32>
    %127 = vector.broadcast %4 : vector<1x128xf32> to vector<64x128xf32>
    %128 = arith.subf %110, %127 : vector<64x128xf32>
    %129 = math.absf %128 : vector<64x128xf32>
    %cst_25 = arith.constant 1.000000e+00 : f32
    %130 = vector.broadcast %cst_25 : f32 to vector<64x128xf32>
    %131 = arith.subf %130, %129 : vector<64x128xf32>
    %cst_26 = arith.constant 0.000000e+00 : f32
    %132 = vector.broadcast %cst_26 : f32 to vector<64x128xf32>
    %133 = arith.maximumf %131, %132 : vector<64x128xf32>
    %134 = arith.mulf %126, %133 : vector<64x128xf32>
    %135 = arith.mulf %119, %134 : vector<64x128xf32>
    %136 = arith.addf %92, %135 : vector<64x128xf32>
    %137 = vector.extract_strided_slice %22 {offsets = [0, 2], sizes = [64, 1], strides = [1, 1]} : vector<64x8xf32> to vector<64x1xf32>
    %138 = vector.extract_strided_slice %22 {offsets = [0, 6], sizes = [64, 1], strides = [1, 1]} : vector<64x8xf32> to vector<64x1xf32>
    %139 = vector.shape_cast %2 : vector<1x128xi1> to vector<1x128xi1>
    %140 = vector.broadcast %139 : vector<1x128xi1> to vector<64x128xi1>
    %141 = vector.shape_cast %137 : vector<64x1xf32> to vector<64x1xf32>
    %142 = vector.broadcast %141 : vector<64x1xf32> to vector<64x128xf32>
    %143 = vector.shape_cast %138 : vector<64x1xf32> to vector<64x1xf32>
    %144 = vector.broadcast %143 : vector<64x1xf32> to vector<64x128xf32>
    %145 = arith.select %140, %142, %144 : vector<64x128xi1>, vector<64x128xf32>
    %146 = vector.extract_strided_slice %23 {offsets = [0, 2], sizes = [64, 1], strides = [1, 1]} : vector<64x8xf32> to vector<64x1xf32>
    %147 = vector.extract_strided_slice %23 {offsets = [0, 6], sizes = [64, 1], strides = [1, 1]} : vector<64x8xf32> to vector<64x1xf32>
    %148 = vector.shape_cast %2 : vector<1x128xi1> to vector<1x128xi1>
    %149 = vector.broadcast %148 : vector<1x128xi1> to vector<64x128xi1>
    %150 = vector.shape_cast %146 : vector<64x1xf32> to vector<64x1xf32>
    %151 = vector.broadcast %150 : vector<64x1xf32> to vector<64x128xf32>
    %152 = vector.shape_cast %147 : vector<64x1xf32> to vector<64x1xf32>
    %153 = vector.broadcast %152 : vector<64x1xf32> to vector<64x128xf32>
    %154 = arith.select %149, %151, %153 : vector<64x128xi1>, vector<64x128xf32>
    %155 = vector.extract_strided_slice %41 {offsets = [0, 2], sizes = [64, 1], strides = [1, 1]} : vector<64x8xf32> to vector<64x1xf32>
    %156 = vector.extract_strided_slice %41 {offsets = [0, 6], sizes = [64, 1], strides = [1, 1]} : vector<64x8xf32> to vector<64x1xf32>
    %157 = vector.shape_cast %2 : vector<1x128xi1> to vector<1x128xi1>
    %158 = vector.broadcast %157 : vector<1x128xi1> to vector<64x128xi1>
    %159 = vector.shape_cast %155 : vector<64x1xf32> to vector<64x1xf32>
    %160 = vector.broadcast %159 : vector<64x1xf32> to vector<64x128xf32>
    %161 = vector.shape_cast %156 : vector<64x1xf32> to vector<64x1xf32>
    %162 = vector.broadcast %161 : vector<64x1xf32> to vector<64x128xf32>
    %163 = arith.select %158, %160, %162 : vector<64x128xi1>, vector<64x128xf32>
    %164 = vector.broadcast %3 : vector<1x128xf32> to vector<64x128xf32>
    %165 = arith.subf %145, %164 : vector<64x128xf32>
    %166 = math.absf %165 : vector<64x128xf32>
    %cst_27 = arith.constant 1.000000e+00 : f32
    %167 = vector.broadcast %cst_27 : f32 to vector<64x128xf32>
    %168 = arith.subf %167, %166 : vector<64x128xf32>
    %cst_28 = arith.constant 0.000000e+00 : f32
    %169 = vector.broadcast %cst_28 : f32 to vector<64x128xf32>
    %170 = arith.maximumf %168, %169 : vector<64x128xf32>
    %171 = vector.broadcast %4 : vector<1x128xf32> to vector<64x128xf32>
    %172 = arith.subf %154, %171 : vector<64x128xf32>
    %173 = math.absf %172 : vector<64x128xf32>
    %cst_29 = arith.constant 1.000000e+00 : f32
    %174 = vector.broadcast %cst_29 : f32 to vector<64x128xf32>
    %175 = arith.subf %174, %173 : vector<64x128xf32>
    %cst_30 = arith.constant 0.000000e+00 : f32
    %176 = vector.broadcast %cst_30 : f32 to vector<64x128xf32>
    %177 = arith.maximumf %175, %176 : vector<64x128xf32>
    %178 = arith.mulf %170, %177 : vector<64x128xf32>
    %179 = arith.mulf %163, %178 : vector<64x128xf32>
    %180 = arith.addf %136, %179 : vector<64x128xf32>
    %181 = vector.extract_strided_slice %22 {offsets = [0, 3], sizes = [64, 1], strides = [1, 1]} : vector<64x8xf32> to vector<64x1xf32>
    %182 = vector.extract_strided_slice %22 {offsets = [0, 7], sizes = [64, 1], strides = [1, 1]} : vector<64x8xf32> to vector<64x1xf32>
    %183 = vector.shape_cast %2 : vector<1x128xi1> to vector<1x128xi1>
    %184 = vector.broadcast %183 : vector<1x128xi1> to vector<64x128xi1>
    %185 = vector.shape_cast %181 : vector<64x1xf32> to vector<64x1xf32>
    %186 = vector.broadcast %185 : vector<64x1xf32> to vector<64x128xf32>
    %187 = vector.shape_cast %182 : vector<64x1xf32> to vector<64x1xf32>
    %188 = vector.broadcast %187 : vector<64x1xf32> to vector<64x128xf32>
    %189 = arith.select %184, %186, %188 : vector<64x128xi1>, vector<64x128xf32>
    %190 = vector.extract_strided_slice %23 {offsets = [0, 3], sizes = [64, 1], strides = [1, 1]} : vector<64x8xf32> to vector<64x1xf32>
    %191 = vector.extract_strided_slice %23 {offsets = [0, 7], sizes = [64, 1], strides = [1, 1]} : vector<64x8xf32> to vector<64x1xf32>
    %192 = vector.shape_cast %2 : vector<1x128xi1> to vector<1x128xi1>
    %193 = vector.broadcast %192 : vector<1x128xi1> to vector<64x128xi1>
    %194 = vector.shape_cast %190 : vector<64x1xf32> to vector<64x1xf32>
    %195 = vector.broadcast %194 : vector<64x1xf32> to vector<64x128xf32>
    %196 = vector.shape_cast %191 : vector<64x1xf32> to vector<64x1xf32>
    %197 = vector.broadcast %196 : vector<64x1xf32> to vector<64x128xf32>
    %198 = arith.select %193, %195, %197 : vector<64x128xi1>, vector<64x128xf32>
    %199 = vector.extract_strided_slice %41 {offsets = [0, 3], sizes = [64, 1], strides = [1, 1]} : vector<64x8xf32> to vector<64x1xf32>
    %200 = vector.extract_strided_slice %41 {offsets = [0, 7], sizes = [64, 1], strides = [1, 1]} : vector<64x8xf32> to vector<64x1xf32>
    %201 = vector.shape_cast %2 : vector<1x128xi1> to vector<1x128xi1>
    %202 = vector.broadcast %201 : vector<1x128xi1> to vector<64x128xi1>
    %203 = vector.shape_cast %199 : vector<64x1xf32> to vector<64x1xf32>
    %204 = vector.broadcast %203 : vector<64x1xf32> to vector<64x128xf32>
    %205 = vector.shape_cast %200 : vector<64x1xf32> to vector<64x1xf32>
    %206 = vector.broadcast %205 : vector<64x1xf32> to vector<64x128xf32>
    %207 = arith.select %202, %204, %206 : vector<64x128xi1>, vector<64x128xf32>
    %208 = vector.broadcast %3 : vector<1x128xf32> to vector<64x128xf32>
    %209 = arith.subf %189, %208 : vector<64x128xf32>
    %210 = math.absf %209 : vector<64x128xf32>
    %cst_31 = arith.constant 1.000000e+00 : f32
    %211 = vector.broadcast %cst_31 : f32 to vector<64x128xf32>
    %212 = arith.subf %211, %210 : vector<64x128xf32>
    %cst_32 = arith.constant 0.000000e+00 : f32
    %213 = vector.broadcast %cst_32 : f32 to vector<64x128xf32>
    %214 = arith.maximumf %212, %213 : vector<64x128xf32>
    %215 = vector.broadcast %4 : vector<1x128xf32> to vector<64x128xf32>
    %216 = arith.subf %198, %215 : vector<64x128xf32>
    %217 = math.absf %216 : vector<64x128xf32>
    %cst_33 = arith.constant 1.000000e+00 : f32
    %218 = vector.broadcast %cst_33 : f32 to vector<64x128xf32>
    %219 = arith.subf %218, %217 : vector<64x128xf32>
    %cst_34 = arith.constant 0.000000e+00 : f32
    %220 = vector.broadcast %cst_34 : f32 to vector<64x128xf32>
    %221 = arith.maximumf %219, %220 : vector<64x128xf32>
    %222 = arith.mulf %214, %221 : vector<64x128xf32>
    %223 = arith.mulf %207, %222 : vector<64x128xf32>
    %224 = arith.addf %180, %223 : vector<64x128xf32>
    %225 = tpu.reciprocal %44 {approx = true} : vector<64x1xf32> -> vector<64x1xf32>
    %226 = tpu.reciprocal %47 {approx = true} : vector<64x1xf32> -> vector<64x1xf32>
    %227 = vector.shape_cast %2 : vector<1x128xi1> to vector<1x128xi1>
    %228 = vector.broadcast %227 : vector<1x128xi1> to vector<64x128xi1>
    %229 = vector.shape_cast %225 : vector<64x1xf32> to vector<64x1xf32>
    %230 = vector.broadcast %229 : vector<64x1xf32> to vector<64x128xf32>
    %231 = vector.shape_cast %226 : vector<64x1xf32> to vector<64x1xf32>
    %232 = vector.broadcast %231 : vector<64x1xf32> to vector<64x128xf32>
    %233 = arith.select %228, %230, %232 : vector<64x128xi1>, vector<64x128xf32>
    %234 = arith.mulf %224, %233 : vector<64x128xf32>
    %235 = tpu.iota {dimensions = array<i32: 1>} : vector<1x32xi32>
    %c16_i32 = arith.constant 16 : i32
    %236 = vector.broadcast %c16_i32 : i32 to vector<1x32xi32>
    %237 = arith.cmpi slt, %235, %236 : vector<1x32xi32>
    %cst_35 = arith.constant 0.000000e+00 : f32
    %238 = vector.shape_cast %237 : vector<1x32xi1> to vector<1x32xi1>
    %239 = vector.broadcast %238 : vector<1x32xi1> to vector<64x32xi1>
    %240 = vector.broadcast %cst_35 : f32 to vector<64x32xf32>
    %241 = arith.select %239, %18, %240 : vector<64x32xi1>, vector<64x32xf32>
    %c16_i32_36 = arith.constant 16 : i32
    %242 = vector.broadcast %c16_i32_36 : i32 to vector<1x32xi32>
    %243 = arith.cmpi sge, %235, %242 : vector<1x32xi32>
    %cst_37 = arith.constant 0.000000e+00 : f32
    %244 = vector.shape_cast %243 : vector<1x32xi1> to vector<1x32xi1>
    %245 = vector.broadcast %244 : vector<1x32xi1> to vector<64x32xi1>
    %246 = vector.broadcast %cst_37 : f32 to vector<64x32xf32>
    %247 = arith.select %245, %18, %246 : vector<64x32xi1>, vector<64x32xf32>
    %248 = tpu.concatenate %241, %247 in 0 : vector<64x32xf32>, vector<64x32xf32> -> vector<128x32xf32>
    %cst_38 = arith.constant dense<0.000000e+00> : vector<64x32xf32>
    %249 = tpu.matmul %234, %248, %cst_38 {dimension_numbers = #tpu.dot_dimension_numbers<[1], [0], [0], [1], [0, 0, 1, 1], [], []>} : vector<64x128xf32>, vector<128x32xf32>, vector<64x32xf32> -> vector<64x32xf32>
    %c0_39 = arith.constant 0 : index
    %c128 = arith.constant 128 : index
    %250 = vector.load %arg3[%c0_39, %c128] : memref<32x1536xf32, #tpu.memory_space<vmem>>, vector<32x32xf32>
    %cst_40 = arith.constant dense<0.000000e+00> : vector<64x32xf32>
    %251 = tpu.matmul %249, %250, %cst_40 {dimension_numbers = #tpu.dot_dimension_numbers<[1], [0], [0], [1], [0, 0, 1, 1], [], []>} : vector<64x32xf32>, vector<32x32xf32>, vector<64x32xf32> -> vector<64x32xf32>
    %c2 = arith.constant 2 : index
    %c0_41 = arith.constant 0 : index
    %252 = vector.load %arg5[%c2, %c0_41] : memref<25x128xf32, #tpu.memory_space<vmem>>, vector<1x32xf32>
    %253 = vector.broadcast %252 : vector<1x32xf32> to vector<64x32xf32>
    %254 = arith.addf %251, %253 : vector<64x32xf32>
    %255 = arith.addf %12, %254 : vector<64x32xf32>
    %cst_42 = arith.constant dense<0.000000e+00> : vector<64xf32>
    %256 = vector.multi_reduction <add>, %255, %cst_42 [1] : vector<64x32xf32> to vector<64xf32>
    %257 = vector.shape_cast %256 : vector<64xf32> to vector<64x1xf32>
    %cst_43 = arith.constant 3.200000e+01 : f32
    %258 = vector.broadcast %cst_43 : f32 to vector<64x1xf32>
    %259 = arith.divf %257, %258 : vector<64x1xf32>
    %260 = vector.broadcast %259 : vector<64x1xf32> to vector<64x32xf32>
    %261 = arith.subf %255, %260 : vector<64x32xf32>
    %262 = arith.mulf %261, %261 : vector<64x32xf32>
    %cst_44 = arith.constant dense<0.000000e+00> : vector<64xf32>
    %263 = vector.multi_reduction <add>, %262, %cst_44 [1] : vector<64x32xf32> to vector<64xf32>
    %264 = vector.shape_cast %263 : vector<64xf32> to vector<64x1xf32>
    %cst_45 = arith.constant 3.200000e+01 : f32
    %265 = vector.broadcast %cst_45 : f32 to vector<64x1xf32>
    %266 = arith.divf %264, %265 : vector<64x1xf32>
    %267 = vector.broadcast %259 : vector<64x1xf32> to vector<64x32xf32>
    %268 = arith.subf %255, %267 : vector<64x32xf32>
    %cst_46 = arith.constant 9.99999974E-6 : f32
    %269 = vector.broadcast %cst_46 : f32 to vector<64x1xf32>
    %270 = arith.addf %266, %269 : vector<64x1xf32>
    %271 = math.rsqrt %270 : vector<64x1xf32>
    %272 = vector.broadcast %271 : vector<64x1xf32> to vector<64x32xf32>
    %273 = arith.mulf %268, %272 : vector<64x32xf32>
    %c3 = arith.constant 3 : index
    %c0_47 = arith.constant 0 : index
    %274 = vector.load %arg5[%c3, %c0_47] : memref<25x128xf32, #tpu.memory_space<vmem>>, vector<1x32xf32>
    %275 = vector.broadcast %274 : vector<1x32xf32> to vector<64x32xf32>
    %276 = arith.mulf %273, %275 : vector<64x32xf32>
    %c4 = arith.constant 4 : index
    %c0_48 = arith.constant 0 : index
    %277 = vector.load %arg5[%c4, %c0_48] : memref<25x128xf32, #tpu.memory_space<vmem>>, vector<1x32xf32>
    %278 = vector.broadcast %277 : vector<1x32xf32> to vector<64x32xf32>
    %279 = arith.addf %276, %278 : vector<64x32xf32>
    %c0_49 = arith.constant 0 : index
    %c256 = arith.constant 256 : index
    %280 = vector.load %arg3[%c0_49, %c256] : memref<32x1536xf32, #tpu.memory_space<vmem>>, vector<32x64xf32>
    %cst_50 = arith.constant dense<0.000000e+00> : vector<64x64xf32>
    %281 = tpu.matmul %279, %280, %cst_50 {dimension_numbers = #tpu.dot_dimension_numbers<[1], [0], [0], [1], [0, 0, 1, 1], [], []>} : vector<64x32xf32>, vector<32x64xf32>, vector<64x64xf32> -> vector<64x64xf32>
    %c5 = arith.constant 5 : index
    %c0_51 = arith.constant 0 : index
    %282 = vector.load %arg5[%c5, %c0_51] : memref<25x128xf32, #tpu.memory_space<vmem>>, vector<1x64xf32>
    %283 = vector.broadcast %282 : vector<1x64xf32> to vector<64x64xf32>
    %284 = arith.addf %281, %283 : vector<64x64xf32>
    %cst_52 = arith.constant 0.000000e+00 : f32
    %285 = vector.broadcast %cst_52 : f32 to vector<64x64xf32>
    %286 = arith.maximumf %284, %285 : vector<64x64xf32>
    %c0_53 = arith.constant 0 : index
    %c0_54 = arith.constant 0 : index
    %287 = vector.load %arg4[%c0_53, %c0_54] : memref<64x256xf32, #tpu.memory_space<vmem>>, vector<64x32xf32>
    %cst_55 = arith.constant dense<0.000000e+00> : vector<64x32xf32>
    %288 = tpu.matmul %286, %287, %cst_55 {dimension_numbers = #tpu.dot_dimension_numbers<[1], [0], [0], [1], [0, 0, 1, 1], [], []>} : vector<64x64xf32>, vector<64x32xf32>, vector<64x32xf32> -> vector<64x32xf32>
    %c6 = arith.constant 6 : index
    %c0_56 = arith.constant 0 : index
    %289 = vector.load %arg5[%c6, %c0_56] : memref<25x128xf32, #tpu.memory_space<vmem>>, vector<1x32xf32>
    %290 = vector.broadcast %289 : vector<1x32xf32> to vector<64x32xf32>
    %291 = arith.addf %288, %290 : vector<64x32xf32>
    %292 = arith.addf %279, %291 : vector<64x32xf32>
    %cst_57 = arith.constant dense<0.000000e+00> : vector<64xf32>
    %293 = vector.multi_reduction <add>, %292, %cst_57 [1] : vector<64x32xf32> to vector<64xf32>
    %294 = vector.shape_cast %293 : vector<64xf32> to vector<64x1xf32>
    %cst_58 = arith.constant 3.200000e+01 : f32
    %295 = vector.broadcast %cst_58 : f32 to vector<64x1xf32>
    %296 = arith.divf %294, %295 : vector<64x1xf32>
    %297 = vector.broadcast %296 : vector<64x1xf32> to vector<64x32xf32>
    %298 = arith.subf %292, %297 : vector<64x32xf32>
    %299 = arith.mulf %298, %298 : vector<64x32xf32>
    %cst_59 = arith.constant dense<0.000000e+00> : vector<64xf32>
    %300 = vector.multi_reduction <add>, %299, %cst_59 [1] : vector<64x32xf32> to vector<64xf32>
    %301 = vector.shape_cast %300 : vector<64xf32> to vector<64x1xf32>
    %cst_60 = arith.constant 3.200000e+01 : f32
    %302 = vector.broadcast %cst_60 : f32 to vector<64x1xf32>
    %303 = arith.divf %301, %302 : vector<64x1xf32>
    %304 = vector.broadcast %296 : vector<64x1xf32> to vector<64x32xf32>
    %305 = arith.subf %292, %304 : vector<64x32xf32>
    %cst_61 = arith.constant 9.99999974E-6 : f32
    %306 = vector.broadcast %cst_61 : f32 to vector<64x1xf32>
    %307 = arith.addf %303, %306 : vector<64x1xf32>
    %308 = math.rsqrt %307 : vector<64x1xf32>
    %309 = vector.broadcast %308 : vector<64x1xf32> to vector<64x32xf32>
    %310 = arith.mulf %305, %309 : vector<64x32xf32>
    %c7 = arith.constant 7 : index
    %c0_62 = arith.constant 0 : index
    %311 = vector.load %arg5[%c7, %c0_62] : memref<25x128xf32, #tpu.memory_space<vmem>>, vector<1x32xf32>
    %312 = vector.broadcast %311 : vector<1x32xf32> to vector<64x32xf32>
    %313 = arith.mulf %310, %312 : vector<64x32xf32>
    %c8 = arith.constant 8 : index
    %c0_63 = arith.constant 0 : index
    %314 = vector.load %arg5[%c8, %c0_63] : memref<25x128xf32, #tpu.memory_space<vmem>>, vector<1x32xf32>
    %315 = vector.broadcast %314 : vector<1x32xf32> to vector<64x32xf32>
    %316 = arith.addf %313, %315 : vector<64x32xf32>
    %c0_64 = arith.constant 0 : index
    %c0_65 = arith.constant 0 : index
    %317 = vector.load %arg7[%c0_64, %c0_65] : memref<8x256xf32, #tpu.memory_space<vmem>>, vector<8x32xf32>
    %c0_66 = arith.constant 0 : index
    %c384 = arith.constant 384 : index
    %318 = vector.load %arg3[%c0_66, %c384] : memref<32x1536xf32, #tpu.memory_space<vmem>>, vector<32x96xf32>
    %cst_67 = arith.constant dense<0.000000e+00> : vector<8x96xf32>
    %319 = tpu.matmul %317, %318, %cst_67 {dimension_numbers = #tpu.dot_dimension_numbers<[1], [0], [0], [1], [0, 0, 1, 1], [], []>} : vector<8x32xf32>, vector<32x96xf32>, vector<8x96xf32> -> vector<8x96xf32>
    %c0_68 = arith.constant 0 : index
    %c32 = arith.constant 32 : index
    %320 = vector.load %arg7[%c0_68, %c32] : memref<8x256xf32, #tpu.memory_space<vmem>>, vector<8x96xf32>
    %321 = arith.addf %319, %320 : vector<8x96xf32>
    %cst_69 = arith.constant 0.000000e+00 : f32
    %322 = vector.broadcast %cst_69 : f32 to vector<8x32xf32>
    %323 = vector.extract_strided_slice %321 {offsets = [0, 0], sizes = [8, 16], strides = [1, 1]} : vector<8x96xf32> to vector<8x16xf32>
    %324 = vector.extract_strided_slice %321 {offsets = [0, 32], sizes = [8, 16], strides = [1, 1]} : vector<8x96xf32> to vector<8x16xf32>
    %325 = vector.extract_strided_slice %321 {offsets = [0, 64], sizes = [8, 16], strides = [1, 1]} : vector<8x96xf32> to vector<8x16xf32>
    %cst_70 = arith.constant dense<0.000000e+00> : vector<8x8xf32>
    %326 = tpu.matmul %323, %324, %cst_70 {dimension_numbers = #tpu.dot_dimension_numbers<[1], [1], [0], [0], [0, 0, 1, 0], [], []>} : vector<8x16xf32>, vector<8x16xf32>, vector<8x8xf32> -> vector<8x8xf32>
    %cst_71 = arith.constant 2.500000e-01 : f32
    %327 = vector.broadcast %cst_71 : f32 to vector<8x8xf32>
    %328 = arith.mulf %326, %327 : vector<8x8xf32>
    %cst_72 = arith.constant dense<0xFF800000> : vector<8xf32>
    %329 = vector.multi_reduction <maximumf>, %328, %cst_72 [1] : vector<8x8xf32> to vector<8xf32>
    %330 = vector.shape_cast %329 : vector<8xf32> to vector<8x1xf32>
    %331 = vector.broadcast %330 : vector<8x1xf32> to vector<8x8xf32>
    %332 = arith.subf %328, %331 : vector<8x8xf32>
    %333 = math.exp %332 : vector<8x8xf32>
    %cst_73 = arith.constant dense<0.000000e+00> : vector<8xf32>
    %334 = vector.multi_reduction <add>, %333, %cst_73 [1] : vector<8x8xf32> to vector<8xf32>
    %335 = vector.shape_cast %334 : vector<8xf32> to vector<8x1xf32>
    %336 = tpu.reciprocal %335 {approx = true} : vector<8x1xf32> -> vector<8x1xf32>
    %337 = vector.broadcast %336 : vector<8x1xf32> to vector<8x8xf32>
    %338 = arith.mulf %333, %337 : vector<8x8xf32>
    %cst_74 = arith.constant dense<0.000000e+00> : vector<8x16xf32>
    %339 = tpu.matmul %338, %325, %cst_74 {dimension_numbers = #tpu.dot_dimension_numbers<[1], [0], [0], [1], [0, 0, 1, 1], [], []>} : vector<8x8xf32>, vector<8x16xf32>, vector<8x16xf32> -> vector<8x16xf32>
    %c0_75 = arith.constant 0 : index
    %c512 = arith.constant 512 : index
    %340 = vector.load %arg3[%c0_75, %c512] : memref<32x1536xf32, #tpu.memory_space<vmem>>, vector<32x32xf32>
    %341 = vector.extract_strided_slice %340 {offsets = [0, 0], sizes = [16, 32], strides = [1, 1]} : vector<32x32xf32> to vector<16x32xf32>
    %cst_76 = arith.constant dense<0.000000e+00> : vector<8x32xf32>
    %342 = tpu.matmul %339, %341, %cst_76 {dimension_numbers = #tpu.dot_dimension_numbers<[1], [0], [0], [1], [0, 0, 1, 1], [], []>} : vector<8x16xf32>, vector<16x32xf32>, vector<8x32xf32> -> vector<8x32xf32>
    %343 = arith.addf %322, %342 : vector<8x32xf32>
    %344 = vector.extract_strided_slice %321 {offsets = [0, 16], sizes = [8, 16], strides = [1, 1]} : vector<8x96xf32> to vector<8x16xf32>
    %345 = vector.extract_strided_slice %321 {offsets = [0, 48], sizes = [8, 16], strides = [1, 1]} : vector<8x96xf32> to vector<8x16xf32>
    %346 = vector.extract_strided_slice %321 {offsets = [0, 80], sizes = [8, 16], strides = [1, 1]} : vector<8x96xf32> to vector<8x16xf32>
    %cst_77 = arith.constant dense<0.000000e+00> : vector<8x8xf32>
    %347 = tpu.matmul %344, %345, %cst_77 {dimension_numbers = #tpu.dot_dimension_numbers<[1], [1], [0], [0], [0, 0, 1, 0], [], []>} : vector<8x16xf32>, vector<8x16xf32>, vector<8x8xf32> -> vector<8x8xf32>
    %cst_78 = arith.constant 2.500000e-01 : f32
    %348 = vector.broadcast %cst_78 : f32 to vector<8x8xf32>
    %349 = arith.mulf %347, %348 : vector<8x8xf32>
    %cst_79 = arith.constant dense<0xFF800000> : vector<8xf32>
    %350 = vector.multi_reduction <maximumf>, %349, %cst_79 [1] : vector<8x8xf32> to vector<8xf32>
    %351 = vector.shape_cast %350 : vector<8xf32> to vector<8x1xf32>
    %352 = vector.broadcast %351 : vector<8x1xf32> to vector<8x8xf32>
    %353 = arith.subf %349, %352 : vector<8x8xf32>
    %354 = math.exp %353 : vector<8x8xf32>
    %cst_80 = arith.constant dense<0.000000e+00> : vector<8xf32>
    %355 = vector.multi_reduction <add>, %354, %cst_80 [1] : vector<8x8xf32> to vector<8xf32>
    %356 = vector.shape_cast %355 : vector<8xf32> to vector<8x1xf32>
    %357 = tpu.reciprocal %356 {approx = true} : vector<8x1xf32> -> vector<8x1xf32>
    %358 = vector.broadcast %357 : vector<8x1xf32> to vector<8x8xf32>
    %359 = arith.mulf %354, %358 : vector<8x8xf32>
    %cst_81 = arith.constant dense<0.000000e+00> : vector<8x16xf32>
    %360 = tpu.matmul %359, %346, %cst_81 {dimension_numbers = #tpu.dot_dimension_numbers<[1], [0], [0], [1], [0, 0, 1, 1], [], []>} : vector<8x8xf32>, vector<8x16xf32>, vector<8x16xf32> -> vector<8x16xf32>
    %c0_82 = arith.constant 0 : index
    %c512_83 = arith.constant 512 : index
    %361 = vector.load %arg3[%c0_82, %c512_83] : memref<32x1536xf32, #tpu.memory_space<vmem>>, vector<32x32xf32>
    %362 = vector.extract_strided_slice %361 {offsets = [16, 0], sizes = [16, 32], strides = [1, 1]} : vector<32x32xf32> to vector<16x32xf32>
    %cst_84 = arith.constant dense<0.000000e+00> : vector<8x32xf32>
    %363 = tpu.matmul %360, %362, %cst_84 {dimension_numbers = #tpu.dot_dimension_numbers<[1], [0], [0], [1], [0, 0, 1, 1], [], []>} : vector<8x16xf32>, vector<16x32xf32>, vector<8x32xf32> -> vector<8x32xf32>
    %364 = arith.addf %343, %363 : vector<8x32xf32>
    %c9 = arith.constant 9 : index
    %c0_85 = arith.constant 0 : index
    %365 = vector.load %arg5[%c9, %c0_85] : memref<25x128xf32, #tpu.memory_space<vmem>>, vector<1x32xf32>
    %366 = vector.broadcast %365 : vector<1x32xf32> to vector<8x32xf32>
    %367 = arith.addf %364, %366 : vector<8x32xf32>
    %368 = arith.addf %317, %367 : vector<8x32xf32>
    %cst_86 = arith.constant dense<0.000000e+00> : vector<8xf32>
    %369 = vector.multi_reduction <add>, %368, %cst_86 [1] : vector<8x32xf32> to vector<8xf32>
    %370 = vector.shape_cast %369 : vector<8xf32> to vector<8x1xf32>
    %cst_87 = arith.constant 3.200000e+01 : f32
    %371 = vector.broadcast %cst_87 : f32 to vector<8x1xf32>
    %372 = arith.divf %370, %371 : vector<8x1xf32>
    %373 = vector.broadcast %372 : vector<8x1xf32> to vector<8x32xf32>
    %374 = arith.subf %368, %373 : vector<8x32xf32>
    %375 = arith.mulf %374, %374 : vector<8x32xf32>
    %cst_88 = arith.constant dense<0.000000e+00> : vector<8xf32>
    %376 = vector.multi_reduction <add>, %375, %cst_88 [1] : vector<8x32xf32> to vector<8xf32>
    %377 = vector.shape_cast %376 : vector<8xf32> to vector<8x1xf32>
    %cst_89 = arith.constant 3.200000e+01 : f32
    %378 = vector.broadcast %cst_89 : f32 to vector<8x1xf32>
    %379 = arith.divf %377, %378 : vector<8x1xf32>
    %380 = vector.broadcast %372 : vector<8x1xf32> to vector<8x32xf32>
    %381 = arith.subf %368, %380 : vector<8x32xf32>
    %cst_90 = arith.constant 9.99999974E-6 : f32
    %382 = vector.broadcast %cst_90 : f32 to vector<8x1xf32>
    %383 = arith.addf %379, %382 : vector<8x1xf32>
    %384 = math.rsqrt %383 : vector<8x1xf32>
    %385 = vector.broadcast %384 : vector<8x1xf32> to vector<8x32xf32>
    %386 = arith.mulf %381, %385 : vector<8x32xf32>
    %c10 = arith.constant 10 : index
    %c0_91 = arith.constant 0 : index
    %387 = vector.load %arg5[%c10, %c0_91] : memref<25x128xf32, #tpu.memory_space<vmem>>, vector<1x32xf32>
    %388 = vector.broadcast %387 : vector<1x32xf32> to vector<8x32xf32>
    %389 = arith.mulf %386, %388 : vector<8x32xf32>
    %c11 = arith.constant 11 : index
    %c0_92 = arith.constant 0 : index
    %390 = vector.load %arg5[%c11, %c0_92] : memref<25x128xf32, #tpu.memory_space<vmem>>, vector<1x32xf32>
    %391 = vector.broadcast %390 : vector<1x32xf32> to vector<8x32xf32>
    %392 = arith.addf %389, %391 : vector<8x32xf32>
    %c0_93 = arith.constant 0 : index
    %c640 = arith.constant 640 : index
    %393 = vector.load %arg3[%c0_93, %c640] : memref<32x1536xf32, #tpu.memory_space<vmem>>, vector<32x32xf32>
    %cst_94 = arith.constant dense<0.000000e+00> : vector<64x32xf32>
    %394 = tpu.matmul %316, %393, %cst_94 {dimension_numbers = #tpu.dot_dimension_numbers<[1], [0], [0], [1], [0, 0, 1, 1], [], []>} : vector<64x32xf32>, vector<32x32xf32>, vector<64x32xf32> -> vector<64x32xf32>
    %c12 = arith.constant 12 : index
    %c0_95 = arith.constant 0 : index
    %395 = vector.load %arg5[%c12, %c0_95] : memref<25x128xf32, #tpu.memory_space<vmem>>, vector<1x32xf32>
    %396 = vector.broadcast %395 : vector<1x32xf32> to vector<64x32xf32>
    %397 = arith.addf %394, %396 : vector<64x32xf32>
    %c0_96 = arith.constant 0 : index
    %c768 = arith.constant 768 : index
    %398 = vector.load %arg3[%c0_96, %c768] : memref<32x1536xf32, #tpu.memory_space<vmem>>, vector<32x24xf32>
    %cst_97 = arith.constant dense<0.000000e+00> : vector<8x24xf32>
    %399 = tpu.matmul %392, %398, %cst_97 {dimension_numbers = #tpu.dot_dimension_numbers<[1], [0], [0], [1], [0, 0, 1, 1], [], []>} : vector<8x32xf32>, vector<32x24xf32>, vector<8x24xf32> -> vector<8x24xf32>
    %c0_98 = arith.constant 0 : index
    %c128_99 = arith.constant 128 : index
    %400 = vector.load %arg7[%c0_98, %c128_99] : memref<8x256xf32, #tpu.memory_space<vmem>>, vector<8x24xf32>
    %401 = arith.addf %399, %400 : vector<8x24xf32>
    %402 = vector.extract_strided_slice %401 {offsets = [0, 0], sizes = [8, 8], strides = [1, 1]} : vector<8x24xf32> to vector<8x8xf32>
    %403 = vector.extract_strided_slice %401 {offsets = [0, 8], sizes = [8, 8], strides = [1, 1]} : vector<8x24xf32> to vector<8x8xf32>
    %404 = vector.extract_strided_slice %401 {offsets = [0, 16], sizes = [8, 8], strides = [1, 1]} : vector<8x24xf32> to vector<8x8xf32>
    %405 = vector.extract_strided_slice %404 {offsets = [0, 0], sizes = [8, 4], strides = [1, 1]} : vector<8x8xf32> to vector<8x4xf32>
    %cst_100 = arith.constant dense<0xFF800000> : vector<8xf32>
    %406 = vector.multi_reduction <maximumf>, %405, %cst_100 [1] : vector<8x4xf32> to vector<8xf32>
    %407 = vector.shape_cast %406 : vector<8xf32> to vector<8x1xf32>
    %408 = vector.extract_strided_slice %404 {offsets = [0, 4], sizes = [8, 4], strides = [1, 1]} : vector<8x8xf32> to vector<8x4xf32>
    %cst_101 = arith.constant dense<0xFF800000> : vector<8xf32>
    %409 = vector.multi_reduction <maximumf>, %408, %cst_101 [1] : vector<8x4xf32> to vector<8xf32>
    %410 = vector.shape_cast %409 : vector<8xf32> to vector<8x1xf32>
    %c4_i32_102 = arith.constant 4 : i32
    %411 = vector.broadcast %c4_i32_102 : i32 to vector<1x8xi32>
    %412 = arith.cmpi slt, %5, %411 : vector<1x8xi32>
    %413 = vector.shape_cast %412 : vector<1x8xi1> to vector<1x8xi1>
    %414 = vector.broadcast %413 : vector<1x8xi1> to vector<8x8xi1>
    %415 = vector.shape_cast %407 : vector<8x1xf32> to vector<8x1xf32>
    %416 = vector.broadcast %415 : vector<8x1xf32> to vector<8x8xf32>
    %417 = vector.shape_cast %410 : vector<8x1xf32> to vector<8x1xf32>
    %418 = vector.broadcast %417 : vector<8x1xf32> to vector<8x8xf32>
    %419 = arith.select %414, %416, %418 : vector<8x8xi1>, vector<8x8xf32>
    %420 = arith.subf %404, %419 : vector<8x8xf32>
    %421 = math.exp %420 : vector<8x8xf32>
    %422 = vector.extract_strided_slice %421 {offsets = [0, 0], sizes = [8, 4], strides = [1, 1]} : vector<8x8xf32> to vector<8x4xf32>
    %cst_103 = arith.constant dense<0.000000e+00> : vector<8xf32>
    %423 = vector.multi_reduction <add>, %422, %cst_103 [1] : vector<8x4xf32> to vector<8xf32>
    %424 = vector.shape_cast %423 : vector<8xf32> to vector<8x1xf32>
    %425 = vector.extract_strided_slice %421 {offsets = [0, 4], sizes = [8, 4], strides = [1, 1]} : vector<8x8xf32> to vector<8x4xf32>
    %cst_104 = arith.constant dense<0.000000e+00> : vector<8xf32>
    %426 = vector.multi_reduction <add>, %425, %cst_104 [1] : vector<8x4xf32> to vector<8xf32>
    %427 = vector.shape_cast %426 : vector<8xf32> to vector<8x1xf32>
    %cst_105 = arith.constant 0.000000e+00 : f32
    %428 = vector.broadcast %cst_105 : f32 to vector<8x128xf32>
    %429 = vector.extract_strided_slice %402 {offsets = [0, 0], sizes = [8, 1], strides = [1, 1]} : vector<8x8xf32> to vector<8x1xf32>
    %430 = vector.extract_strided_slice %402 {offsets = [0, 4], sizes = [8, 1], strides = [1, 1]} : vector<8x8xf32> to vector<8x1xf32>
    %431 = vector.shape_cast %2 : vector<1x128xi1> to vector<1x128xi1>
    %432 = vector.broadcast %431 : vector<1x128xi1> to vector<8x128xi1>
    %433 = vector.shape_cast %429 : vector<8x1xf32> to vector<8x1xf32>
    %434 = vector.broadcast %433 : vector<8x1xf32> to vector<8x128xf32>
    %435 = vector.shape_cast %430 : vector<8x1xf32> to vector<8x1xf32>
    %436 = vector.broadcast %435 : vector<8x1xf32> to vector<8x128xf32>
    %437 = arith.select %432, %434, %436 : vector<8x128xi1>, vector<8x128xf32>
    %438 = vector.extract_strided_slice %403 {offsets = [0, 0], sizes = [8, 1], strides = [1, 1]} : vector<8x8xf32> to vector<8x1xf32>
    %439 = vector.extract_strided_slice %403 {offsets = [0, 4], sizes = [8, 1], strides = [1, 1]} : vector<8x8xf32> to vector<8x1xf32>
    %440 = vector.shape_cast %2 : vector<1x128xi1> to vector<1x128xi1>
    %441 = vector.broadcast %440 : vector<1x128xi1> to vector<8x128xi1>
    %442 = vector.shape_cast %438 : vector<8x1xf32> to vector<8x1xf32>
    %443 = vector.broadcast %442 : vector<8x1xf32> to vector<8x128xf32>
    %444 = vector.shape_cast %439 : vector<8x1xf32> to vector<8x1xf32>
    %445 = vector.broadcast %444 : vector<8x1xf32> to vector<8x128xf32>
    %446 = arith.select %441, %443, %445 : vector<8x128xi1>, vector<8x128xf32>
    %447 = vector.extract_strided_slice %421 {offsets = [0, 0], sizes = [8, 1], strides = [1, 1]} : vector<8x8xf32> to vector<8x1xf32>
    %448 = vector.extract_strided_slice %421 {offsets = [0, 4], sizes = [8, 1], strides = [1, 1]} : vector<8x8xf32> to vector<8x1xf32>
    %449 = vector.shape_cast %2 : vector<1x128xi1> to vector<1x128xi1>
    %450 = vector.broadcast %449 : vector<1x128xi1> to vector<8x128xi1>
    %451 = vector.shape_cast %447 : vector<8x1xf32> to vector<8x1xf32>
    %452 = vector.broadcast %451 : vector<8x1xf32> to vector<8x128xf32>
    %453 = vector.shape_cast %448 : vector<8x1xf32> to vector<8x1xf32>
    %454 = vector.broadcast %453 : vector<8x1xf32> to vector<8x128xf32>
    %455 = arith.select %450, %452, %454 : vector<8x128xi1>, vector<8x128xf32>
    %456 = vector.broadcast %3 : vector<1x128xf32> to vector<8x128xf32>
    %457 = arith.subf %437, %456 : vector<8x128xf32>
    %458 = math.absf %457 : vector<8x128xf32>
    %cst_106 = arith.constant 1.000000e+00 : f32
    %459 = vector.broadcast %cst_106 : f32 to vector<8x128xf32>
    %460 = arith.subf %459, %458 : vector<8x128xf32>
    %cst_107 = arith.constant 0.000000e+00 : f32
    %461 = vector.broadcast %cst_107 : f32 to vector<8x128xf32>
    %462 = arith.maximumf %460, %461 : vector<8x128xf32>
    %463 = vector.broadcast %4 : vector<1x128xf32> to vector<8x128xf32>
    %464 = arith.subf %446, %463 : vector<8x128xf32>
    %465 = math.absf %464 : vector<8x128xf32>
    %cst_108 = arith.constant 1.000000e+00 : f32
    %466 = vector.broadcast %cst_108 : f32 to vector<8x128xf32>
    %467 = arith.subf %466, %465 : vector<8x128xf32>
    %cst_109 = arith.constant 0.000000e+00 : f32
    %468 = vector.broadcast %cst_109 : f32 to vector<8x128xf32>
    %469 = arith.maximumf %467, %468 : vector<8x128xf32>
    %470 = arith.mulf %462, %469 : vector<8x128xf32>
    %471 = arith.mulf %455, %470 : vector<8x128xf32>
    %472 = arith.addf %428, %471 : vector<8x128xf32>
    %473 = vector.extract_strided_slice %402 {offsets = [0, 1], sizes = [8, 1], strides = [1, 1]} : vector<8x8xf32> to vector<8x1xf32>
    %474 = vector.extract_strided_slice %402 {offsets = [0, 5], sizes = [8, 1], strides = [1, 1]} : vector<8x8xf32> to vector<8x1xf32>
    %475 = vector.shape_cast %2 : vector<1x128xi1> to vector<1x128xi1>
    %476 = vector.broadcast %475 : vector<1x128xi1> to vector<8x128xi1>
    %477 = vector.shape_cast %473 : vector<8x1xf32> to vector<8x1xf32>
    %478 = vector.broadcast %477 : vector<8x1xf32> to vector<8x128xf32>
    %479 = vector.shape_cast %474 : vector<8x1xf32> to vector<8x1xf32>
    %480 = vector.broadcast %479 : vector<8x1xf32> to vector<8x128xf32>
    %481 = arith.select %476, %478, %480 : vector<8x128xi1>, vector<8x128xf32>
    %482 = vector.extract_strided_slice %403 {offsets = [0, 1], sizes = [8, 1], strides = [1, 1]} : vector<8x8xf32> to vector<8x1xf32>
    %483 = vector.extract_strided_slice %403 {offsets = [0, 5], sizes = [8, 1], strides = [1, 1]} : vector<8x8xf32> to vector<8x1xf32>
    %484 = vector.shape_cast %2 : vector<1x128xi1> to vector<1x128xi1>
    %485 = vector.broadcast %484 : vector<1x128xi1> to vector<8x128xi1>
    %486 = vector.shape_cast %482 : vector<8x1xf32> to vector<8x1xf32>
    %487 = vector.broadcast %486 : vector<8x1xf32> to vector<8x128xf32>
    %488 = vector.shape_cast %483 : vector<8x1xf32> to vector<8x1xf32>
    %489 = vector.broadcast %488 : vector<8x1xf32> to vector<8x128xf32>
    %490 = arith.select %485, %487, %489 : vector<8x128xi1>, vector<8x128xf32>
    %491 = vector.extract_strided_slice %421 {offsets = [0, 1], sizes = [8, 1], strides = [1, 1]} : vector<8x8xf32> to vector<8x1xf32>
    %492 = vector.extract_strided_slice %421 {offsets = [0, 5], sizes = [8, 1], strides = [1, 1]} : vector<8x8xf32> to vector<8x1xf32>
    %493 = vector.shape_cast %2 : vector<1x128xi1> to vector<1x128xi1>
    %494 = vector.broadcast %493 : vector<1x128xi1> to vector<8x128xi1>
    %495 = vector.shape_cast %491 : vector<8x1xf32> to vector<8x1xf32>
    %496 = vector.broadcast %495 : vector<8x1xf32> to vector<8x128xf32>
    %497 = vector.shape_cast %492 : vector<8x1xf32> to vector<8x1xf32>
    %498 = vector.broadcast %497 : vector<8x1xf32> to vector<8x128xf32>
    %499 = arith.select %494, %496, %498 : vector<8x128xi1>, vector<8x128xf32>
    %500 = vector.broadcast %3 : vector<1x128xf32> to vector<8x128xf32>
    %501 = arith.subf %481, %500 : vector<8x128xf32>
    %502 = math.absf %501 : vector<8x128xf32>
    %cst_110 = arith.constant 1.000000e+00 : f32
    %503 = vector.broadcast %cst_110 : f32 to vector<8x128xf32>
    %504 = arith.subf %503, %502 : vector<8x128xf32>
    %cst_111 = arith.constant 0.000000e+00 : f32
    %505 = vector.broadcast %cst_111 : f32 to vector<8x128xf32>
    %506 = arith.maximumf %504, %505 : vector<8x128xf32>
    %507 = vector.broadcast %4 : vector<1x128xf32> to vector<8x128xf32>
    %508 = arith.subf %490, %507 : vector<8x128xf32>
    %509 = math.absf %508 : vector<8x128xf32>
    %cst_112 = arith.constant 1.000000e+00 : f32
    %510 = vector.broadcast %cst_112 : f32 to vector<8x128xf32>
    %511 = arith.subf %510, %509 : vector<8x128xf32>
    %cst_113 = arith.constant 0.000000e+00 : f32
    %512 = vector.broadcast %cst_113 : f32 to vector<8x128xf32>
    %513 = arith.maximumf %511, %512 : vector<8x128xf32>
    %514 = arith.mulf %506, %513 : vector<8x128xf32>
    %515 = arith.mulf %499, %514 : vector<8x128xf32>
    %516 = arith.addf %472, %515 : vector<8x128xf32>
    %517 = vector.extract_strided_slice %402 {offsets = [0, 2], sizes = [8, 1], strides = [1, 1]} : vector<8x8xf32> to vector<8x1xf32>
    %518 = vector.extract_strided_slice %402 {offsets = [0, 6], sizes = [8, 1], strides = [1, 1]} : vector<8x8xf32> to vector<8x1xf32>
    %519 = vector.shape_cast %2 : vector<1x128xi1> to vector<1x128xi1>
    %520 = vector.broadcast %519 : vector<1x128xi1> to vector<8x128xi1>
    %521 = vector.shape_cast %517 : vector<8x1xf32> to vector<8x1xf32>
    %522 = vector.broadcast %521 : vector<8x1xf32> to vector<8x128xf32>
    %523 = vector.shape_cast %518 : vector<8x1xf32> to vector<8x1xf32>
    %524 = vector.broadcast %523 : vector<8x1xf32> to vector<8x128xf32>
    %525 = arith.select %520, %522, %524 : vector<8x128xi1>, vector<8x128xf32>
    %526 = vector.extract_strided_slice %403 {offsets = [0, 2], sizes = [8, 1], strides = [1, 1]} : vector<8x8xf32> to vector<8x1xf32>
    %527 = vector.extract_strided_slice %403 {offsets = [0, 6], sizes = [8, 1], strides = [1, 1]} : vector<8x8xf32> to vector<8x1xf32>
    %528 = vector.shape_cast %2 : vector<1x128xi1> to vector<1x128xi1>
    %529 = vector.broadcast %528 : vector<1x128xi1> to vector<8x128xi1>
    %530 = vector.shape_cast %526 : vector<8x1xf32> to vector<8x1xf32>
    %531 = vector.broadcast %530 : vector<8x1xf32> to vector<8x128xf32>
    %532 = vector.shape_cast %527 : vector<8x1xf32> to vector<8x1xf32>
    %533 = vector.broadcast %532 : vector<8x1xf32> to vector<8x128xf32>
    %534 = arith.select %529, %531, %533 : vector<8x128xi1>, vector<8x128xf32>
    %535 = vector.extract_strided_slice %421 {offsets = [0, 2], sizes = [8, 1], strides = [1, 1]} : vector<8x8xf32> to vector<8x1xf32>
    %536 = vector.extract_strided_slice %421 {offsets = [0, 6], sizes = [8, 1], strides = [1, 1]} : vector<8x8xf32> to vector<8x1xf32>
    %537 = vector.shape_cast %2 : vector<1x128xi1> to vector<1x128xi1>
    %538 = vector.broadcast %537 : vector<1x128xi1> to vector<8x128xi1>
    %539 = vector.shape_cast %535 : vector<8x1xf32> to vector<8x1xf32>
    %540 = vector.broadcast %539 : vector<8x1xf32> to vector<8x128xf32>
    %541 = vector.shape_cast %536 : vector<8x1xf32> to vector<8x1xf32>
    %542 = vector.broadcast %541 : vector<8x1xf32> to vector<8x128xf32>
    %543 = arith.select %538, %540, %542 : vector<8x128xi1>, vector<8x128xf32>
    %544 = vector.broadcast %3 : vector<1x128xf32> to vector<8x128xf32>
    %545 = arith.subf %525, %544 : vector<8x128xf32>
    %546 = math.absf %545 : vector<8x128xf32>
    %cst_114 = arith.constant 1.000000e+00 : f32
    %547 = vector.broadcast %cst_114 : f32 to vector<8x128xf32>
    %548 = arith.subf %547, %546 : vector<8x128xf32>
    %cst_115 = arith.constant 0.000000e+00 : f32
    %549 = vector.broadcast %cst_115 : f32 to vector<8x128xf32>
    %550 = arith.maximumf %548, %549 : vector<8x128xf32>
    %551 = vector.broadcast %4 : vector<1x128xf32> to vector<8x128xf32>
    %552 = arith.subf %534, %551 : vector<8x128xf32>
    %553 = math.absf %552 : vector<8x128xf32>
    %cst_116 = arith.constant 1.000000e+00 : f32
    %554 = vector.broadcast %cst_116 : f32 to vector<8x128xf32>
    %555 = arith.subf %554, %553 : vector<8x128xf32>
    %cst_117 = arith.constant 0.000000e+00 : f32
    %556 = vector.broadcast %cst_117 : f32 to vector<8x128xf32>
    %557 = arith.maximumf %555, %556 : vector<8x128xf32>
    %558 = arith.mulf %550, %557 : vector<8x128xf32>
    %559 = arith.mulf %543, %558 : vector<8x128xf32>
    %560 = arith.addf %516, %559 : vector<8x128xf32>
    %561 = vector.extract_strided_slice %402 {offsets = [0, 3], sizes = [8, 1], strides = [1, 1]} : vector<8x8xf32> to vector<8x1xf32>
    %562 = vector.extract_strided_slice %402 {offsets = [0, 7], sizes = [8, 1], strides = [1, 1]} : vector<8x8xf32> to vector<8x1xf32>
    %563 = vector.shape_cast %2 : vector<1x128xi1> to vector<1x128xi1>
    %564 = vector.broadcast %563 : vector<1x128xi1> to vector<8x128xi1>
    %565 = vector.shape_cast %561 : vector<8x1xf32> to vector<8x1xf32>
    %566 = vector.broadcast %565 : vector<8x1xf32> to vector<8x128xf32>
    %567 = vector.shape_cast %562 : vector<8x1xf32> to vector<8x1xf32>
    %568 = vector.broadcast %567 : vector<8x1xf32> to vector<8x128xf32>
    %569 = arith.select %564, %566, %568 : vector<8x128xi1>, vector<8x128xf32>
    %570 = vector.extract_strided_slice %403 {offsets = [0, 3], sizes = [8, 1], strides = [1, 1]} : vector<8x8xf32> to vector<8x1xf32>
    %571 = vector.extract_strided_slice %403 {offsets = [0, 7], sizes = [8, 1], strides = [1, 1]} : vector<8x8xf32> to vector<8x1xf32>
    %572 = vector.shape_cast %2 : vector<1x128xi1> to vector<1x128xi1>
    %573 = vector.broadcast %572 : vector<1x128xi1> to vector<8x128xi1>
    %574 = vector.shape_cast %570 : vector<8x1xf32> to vector<8x1xf32>
    %575 = vector.broadcast %574 : vector<8x1xf32> to vector<8x128xf32>
    %576 = vector.shape_cast %571 : vector<8x1xf32> to vector<8x1xf32>
    %577 = vector.broadcast %576 : vector<8x1xf32> to vector<8x128xf32>
    %578 = arith.select %573, %575, %577 : vector<8x128xi1>, vector<8x128xf32>
    %579 = vector.extract_strided_slice %421 {offsets = [0, 3], sizes = [8, 1], strides = [1, 1]} : vector<8x8xf32> to vector<8x1xf32>
    %580 = vector.extract_strided_slice %421 {offsets = [0, 7], sizes = [8, 1], strides = [1, 1]} : vector<8x8xf32> to vector<8x1xf32>
    %581 = vector.shape_cast %2 : vector<1x128xi1> to vector<1x128xi1>
    %582 = vector.broadcast %581 : vector<1x128xi1> to vector<8x128xi1>
    %583 = vector.shape_cast %579 : vector<8x1xf32> to vector<8x1xf32>
    %584 = vector.broadcast %583 : vector<8x1xf32> to vector<8x128xf32>
    %585 = vector.shape_cast %580 : vector<8x1xf32> to vector<8x1xf32>
    %586 = vector.broadcast %585 : vector<8x1xf32> to vector<8x128xf32>
    %587 = arith.select %582, %584, %586 : vector<8x128xi1>, vector<8x128xf32>
    %588 = vector.broadcast %3 : vector<1x128xf32> to vector<8x128xf32>
    %589 = arith.subf %569, %588 : vector<8x128xf32>
    %590 = math.absf %589 : vector<8x128xf32>
    %cst_118 = arith.constant 1.000000e+00 : f32
    %591 = vector.broadcast %cst_118 : f32 to vector<8x128xf32>
    %592 = arith.subf %591, %590 : vector<8x128xf32>
    %cst_119 = arith.constant 0.000000e+00 : f32
    %593 = vector.broadcast %cst_119 : f32 to vector<8x128xf32>
    %594 = arith.maximumf %592, %593 : vector<8x128xf32>
    %595 = vector.broadcast %4 : vector<1x128xf32> to vector<8x128xf32>
    %596 = arith.subf %578, %595 : vector<8x128xf32>
    %597 = math.absf %596 : vector<8x128xf32>
    %cst_120 = arith.constant 1.000000e+00 : f32
    %598 = vector.broadcast %cst_120 : f32 to vector<8x128xf32>
    %599 = arith.subf %598, %597 : vector<8x128xf32>
    %cst_121 = arith.constant 0.000000e+00 : f32
    %600 = vector.broadcast %cst_121 : f32 to vector<8x128xf32>
    %601 = arith.maximumf %599, %600 : vector<8x128xf32>
    %602 = arith.mulf %594, %601 : vector<8x128xf32>
    %603 = arith.mulf %587, %602 : vector<8x128xf32>
    %604 = arith.addf %560, %603 : vector<8x128xf32>
    %605 = tpu.reciprocal %424 {approx = true} : vector<8x1xf32> -> vector<8x1xf32>
    %606 = tpu.reciprocal %427 {approx = true} : vector<8x1xf32> -> vector<8x1xf32>
    %607 = vector.shape_cast %2 : vector<1x128xi1> to vector<1x128xi1>
    %608 = vector.broadcast %607 : vector<1x128xi1> to vector<8x128xi1>
    %609 = vector.shape_cast %605 : vector<8x1xf32> to vector<8x1xf32>
    %610 = vector.broadcast %609 : vector<8x1xf32> to vector<8x128xf32>
    %611 = vector.shape_cast %606 : vector<8x1xf32> to vector<8x1xf32>
    %612 = vector.broadcast %611 : vector<8x1xf32> to vector<8x128xf32>
    %613 = arith.select %608, %610, %612 : vector<8x128xi1>, vector<8x128xf32>
    %614 = arith.mulf %604, %613 : vector<8x128xf32>
    %615 = tpu.iota {dimensions = array<i32: 1>} : vector<1x32xi32>
    %c16_i32_122 = arith.constant 16 : i32
    %616 = vector.broadcast %c16_i32_122 : i32 to vector<1x32xi32>
    %617 = arith.cmpi slt, %615, %616 : vector<1x32xi32>
    %cst_123 = arith.constant 0.000000e+00 : f32
    %618 = vector.shape_cast %617 : vector<1x32xi1> to vector<1x32xi1>
    %619 = vector.broadcast %618 : vector<1x32xi1> to vector<64x32xi1>
    %620 = vector.broadcast %cst_123 : f32 to vector<64x32xf32>
    %621 = arith.select %619, %397, %620 : vector<64x32xi1>, vector<64x32xf32>
    %c16_i32_124 = arith.constant 16 : i32
    %622 = vector.broadcast %c16_i32_124 : i32 to vector<1x32xi32>
    %623 = arith.cmpi sge, %615, %622 : vector<1x32xi32>
    %cst_125 = arith.constant 0.000000e+00 : f32
    %624 = vector.shape_cast %623 : vector<1x32xi1> to vector<1x32xi1>
    %625 = vector.broadcast %624 : vector<1x32xi1> to vector<64x32xi1>
    %626 = vector.broadcast %cst_125 : f32 to vector<64x32xf32>
    %627 = arith.select %625, %397, %626 : vector<64x32xi1>, vector<64x32xf32>
    %628 = tpu.concatenate %621, %627 in 0 : vector<64x32xf32>, vector<64x32xf32> -> vector<128x32xf32>
    %cst_126 = arith.constant dense<0.000000e+00> : vector<8x32xf32>
    %629 = tpu.matmul %614, %628, %cst_126 {dimension_numbers = #tpu.dot_dimension_numbers<[1], [0], [0], [1], [0, 0, 1, 1], [], []>} : vector<8x128xf32>, vector<128x32xf32>, vector<8x32xf32> -> vector<8x32xf32>
    %c0_127 = arith.constant 0 : index
    %c896 = arith.constant 896 : index
    %630 = vector.load %arg3[%c0_127, %c896] : memref<32x1536xf32, #tpu.memory_space<vmem>>, vector<32x32xf32>
    %cst_128 = arith.constant dense<0.000000e+00> : vector<8x32xf32>
    %631 = tpu.matmul %629, %630, %cst_128 {dimension_numbers = #tpu.dot_dimension_numbers<[1], [0], [0], [1], [0, 0, 1, 1], [], []>} : vector<8x32xf32>, vector<32x32xf32>, vector<8x32xf32> -> vector<8x32xf32>
    %c13 = arith.constant 13 : index
    %c0_129 = arith.constant 0 : index
    %632 = vector.load %arg5[%c13, %c0_129] : memref<25x128xf32, #tpu.memory_space<vmem>>, vector<1x32xf32>
    %633 = vector.broadcast %632 : vector<1x32xf32> to vector<8x32xf32>
    %634 = arith.addf %631, %633 : vector<8x32xf32>
    %635 = arith.addf %392, %634 : vector<8x32xf32>
    %cst_130 = arith.constant dense<0.000000e+00> : vector<8xf32>
    %636 = vector.multi_reduction <add>, %635, %cst_130 [1] : vector<8x32xf32> to vector<8xf32>
    %637 = vector.shape_cast %636 : vector<8xf32> to vector<8x1xf32>
    %cst_131 = arith.constant 3.200000e+01 : f32
    %638 = vector.broadcast %cst_131 : f32 to vector<8x1xf32>
    %639 = arith.divf %637, %638 : vector<8x1xf32>
    %640 = vector.broadcast %639 : vector<8x1xf32> to vector<8x32xf32>
    %641 = arith.subf %635, %640 : vector<8x32xf32>
    %642 = arith.mulf %641, %641 : vector<8x32xf32>
    %cst_132 = arith.constant dense<0.000000e+00> : vector<8xf32>
    %643 = vector.multi_reduction <add>, %642, %cst_132 [1] : vector<8x32xf32> to vector<8xf32>
    %644 = vector.shape_cast %643 : vector<8xf32> to vector<8x1xf32>
    %cst_133 = arith.constant 3.200000e+01 : f32
    %645 = vector.broadcast %cst_133 : f32 to vector<8x1xf32>
    %646 = arith.divf %644, %645 : vector<8x1xf32>
    %647 = vector.broadcast %639 : vector<8x1xf32> to vector<8x32xf32>
    %648 = arith.subf %635, %647 : vector<8x32xf32>
    %cst_134 = arith.constant 9.99999974E-6 : f32
    %649 = vector.broadcast %cst_134 : f32 to vector<8x1xf32>
    %650 = arith.addf %646, %649 : vector<8x1xf32>
    %651 = math.rsqrt %650 : vector<8x1xf32>
    %652 = vector.broadcast %651 : vector<8x1xf32> to vector<8x32xf32>
    %653 = arith.mulf %648, %652 : vector<8x32xf32>
    %c14 = arith.constant 14 : index
    %c0_135 = arith.constant 0 : index
    %654 = vector.load %arg5[%c14, %c0_135] : memref<25x128xf32, #tpu.memory_space<vmem>>, vector<1x32xf32>
    %655 = vector.broadcast %654 : vector<1x32xf32> to vector<8x32xf32>
    %656 = arith.mulf %653, %655 : vector<8x32xf32>
    %c15 = arith.constant 15 : index
    %c0_136 = arith.constant 0 : index
    %657 = vector.load %arg5[%c15, %c0_136] : memref<25x128xf32, #tpu.memory_space<vmem>>, vector<1x32xf32>
    %658 = vector.broadcast %657 : vector<1x32xf32> to vector<8x32xf32>
    %659 = arith.addf %656, %658 : vector<8x32xf32>
    %c0_137 = arith.constant 0 : index
    %c1024 = arith.constant 1024 : index
    %660 = vector.load %arg3[%c0_137, %c1024] : memref<32x1536xf32, #tpu.memory_space<vmem>>, vector<32x64xf32>
    %cst_138 = arith.constant dense<0.000000e+00> : vector<8x64xf32>
    %661 = tpu.matmul %659, %660, %cst_138 {dimension_numbers = #tpu.dot_dimension_numbers<[1], [0], [0], [1], [0, 0, 1, 1], [], []>} : vector<8x32xf32>, vector<32x64xf32>, vector<8x64xf32> -> vector<8x64xf32>
    %c16 = arith.constant 16 : index
    %c0_139 = arith.constant 0 : index
    %662 = vector.load %arg5[%c16, %c0_139] : memref<25x128xf32, #tpu.memory_space<vmem>>, vector<1x64xf32>
    %663 = vector.broadcast %662 : vector<1x64xf32> to vector<8x64xf32>
    %664 = arith.addf %661, %663 : vector<8x64xf32>
    %cst_140 = arith.constant 0.000000e+00 : f32
    %665 = vector.broadcast %cst_140 : f32 to vector<8x64xf32>
    %666 = arith.maximumf %664, %665 : vector<8x64xf32>
    %c0_141 = arith.constant 0 : index
    %c128_142 = arith.constant 128 : index
    %667 = vector.load %arg4[%c0_141, %c128_142] : memref<64x256xf32, #tpu.memory_space<vmem>>, vector<64x32xf32>
    %cst_143 = arith.constant dense<0.000000e+00> : vector<8x32xf32>
    %668 = tpu.matmul %666, %667, %cst_143 {dimension_numbers = #tpu.dot_dimension_numbers<[1], [0], [0], [1], [0, 0, 1, 1], [], []>} : vector<8x64xf32>, vector<64x32xf32>, vector<8x32xf32> -> vector<8x32xf32>
    %c17 = arith.constant 17 : index
    %c0_144 = arith.constant 0 : index
    %669 = vector.load %arg5[%c17, %c0_144] : memref<25x128xf32, #tpu.memory_space<vmem>>, vector<1x32xf32>
    %670 = vector.broadcast %669 : vector<1x32xf32> to vector<8x32xf32>
    %671 = arith.addf %668, %670 : vector<8x32xf32>
    %672 = arith.addf %659, %671 : vector<8x32xf32>
    %cst_145 = arith.constant dense<0.000000e+00> : vector<8xf32>
    %673 = vector.multi_reduction <add>, %672, %cst_145 [1] : vector<8x32xf32> to vector<8xf32>
    %674 = vector.shape_cast %673 : vector<8xf32> to vector<8x1xf32>
    %cst_146 = arith.constant 3.200000e+01 : f32
    %675 = vector.broadcast %cst_146 : f32 to vector<8x1xf32>
    %676 = arith.divf %674, %675 : vector<8x1xf32>
    %677 = vector.broadcast %676 : vector<8x1xf32> to vector<8x32xf32>
    %678 = arith.subf %672, %677 : vector<8x32xf32>
    %679 = arith.mulf %678, %678 : vector<8x32xf32>
    %cst_147 = arith.constant dense<0.000000e+00> : vector<8xf32>
    %680 = vector.multi_reduction <add>, %679, %cst_147 [1] : vector<8x32xf32> to vector<8xf32>
    %681 = vector.shape_cast %680 : vector<8xf32> to vector<8x1xf32>
    %cst_148 = arith.constant 3.200000e+01 : f32
    %682 = vector.broadcast %cst_148 : f32 to vector<8x1xf32>
    %683 = arith.divf %681, %682 : vector<8x1xf32>
    %684 = vector.broadcast %676 : vector<8x1xf32> to vector<8x32xf32>
    %685 = arith.subf %672, %684 : vector<8x32xf32>
    %cst_149 = arith.constant 9.99999974E-6 : f32
    %686 = vector.broadcast %cst_149 : f32 to vector<8x1xf32>
    %687 = arith.addf %683, %686 : vector<8x1xf32>
    %688 = math.rsqrt %687 : vector<8x1xf32>
    %689 = vector.broadcast %688 : vector<8x1xf32> to vector<8x32xf32>
    %690 = arith.mulf %685, %689 : vector<8x32xf32>
    %c18 = arith.constant 18 : index
    %c0_150 = arith.constant 0 : index
    %691 = vector.load %arg5[%c18, %c0_150] : memref<25x128xf32, #tpu.memory_space<vmem>>, vector<1x32xf32>
    %692 = vector.broadcast %691 : vector<1x32xf32> to vector<8x32xf32>
    %693 = arith.mulf %690, %692 : vector<8x32xf32>
    %c19 = arith.constant 19 : index
    %c0_151 = arith.constant 0 : index
    %694 = vector.load %arg5[%c19, %c0_151] : memref<25x128xf32, #tpu.memory_space<vmem>>, vector<1x32xf32>
    %695 = vector.broadcast %694 : vector<1x32xf32> to vector<8x32xf32>
    %696 = arith.addf %693, %695 : vector<8x32xf32>
    %c0_152 = arith.constant 0 : index
    %c1152 = arith.constant 1152 : index
    %697 = vector.load %arg3[%c0_152, %c1152] : memref<32x1536xf32, #tpu.memory_space<vmem>>, vector<32x123xf32>
    %cst_153 = arith.constant dense<0.000000e+00> : vector<8x123xf32>
    %698 = tpu.matmul %696, %697, %cst_153 {dimension_numbers = #tpu.dot_dimension_numbers<[1], [0], [0], [1], [0, 0, 1, 1], [], []>} : vector<8x32xf32>, vector<32x123xf32>, vector<8x123xf32> -> vector<8x123xf32>
    %c20 = arith.constant 20 : index
    %c0_154 = arith.constant 0 : index
    %699 = vector.load %arg5[%c20, %c0_154] : memref<25x128xf32, #tpu.memory_space<vmem>>, vector<1x123xf32>
    %700 = vector.broadcast %699 : vector<1x123xf32> to vector<8x123xf32>
    %701 = arith.addf %698, %700 : vector<8x123xf32>
    %702 = vector.extract_strided_slice %701 {offsets = [0, 0], sizes = [8, 91], strides = [1, 1]} : vector<8x123xf32> to vector<8x91xf32>
    %703 = vector.extract_strided_slice %701 {offsets = [0, 91], sizes = [8, 32], strides = [1, 1]} : vector<8x123xf32> to vector<8x32xf32>
    %cst_155 = arith.constant 0.000000e+00 : f32
    %704 = vector.broadcast %cst_155 : f32 to vector<8x32xf32>
    %705 = arith.maximumf %703, %704 : vector<8x32xf32>
    %c0_156 = arith.constant 0 : index
    %c1280 = arith.constant 1280 : index
    %706 = vector.load %arg3[%c0_156, %c1280] : memref<32x1536xf32, #tpu.memory_space<vmem>>, vector<32x32xf32>
    %cst_157 = arith.constant dense<0.000000e+00> : vector<8x32xf32>
    %707 = tpu.matmul %705, %706, %cst_157 {dimension_numbers = #tpu.dot_dimension_numbers<[1], [0], [0], [1], [0, 0, 1, 1], [], []>} : vector<8x32xf32>, vector<32x32xf32>, vector<8x32xf32> -> vector<8x32xf32>
    %c21 = arith.constant 21 : index
    %c0_158 = arith.constant 0 : index
    %708 = vector.load %arg5[%c21, %c0_158] : memref<25x128xf32, #tpu.memory_space<vmem>>, vector<1x32xf32>
    %709 = vector.broadcast %708 : vector<1x32xf32> to vector<8x32xf32>
    %710 = arith.addf %707, %709 : vector<8x32xf32>
    %cst_159 = arith.constant 0.000000e+00 : f32
    %711 = vector.broadcast %cst_159 : f32 to vector<8x32xf32>
    %712 = arith.maximumf %710, %711 : vector<8x32xf32>
    %c0_160 = arith.constant 0 : index
    %c1408 = arith.constant 1408 : index
    %713 = vector.load %arg3[%c0_160, %c1408] : memref<32x1536xf32, #tpu.memory_space<vmem>>, vector<32x4xf32>
    %cst_161 = arith.constant dense<0.000000e+00> : vector<8x4xf32>
    %714 = tpu.matmul %712, %713, %cst_161 {dimension_numbers = #tpu.dot_dimension_numbers<[1], [0], [0], [1], [0, 0, 1, 1], [], []>} : vector<8x32xf32>, vector<32x4xf32>, vector<8x4xf32> -> vector<8x4xf32>
    %c22 = arith.constant 22 : index
    %c0_162 = arith.constant 0 : index
    %715 = vector.load %arg5[%c22, %c0_162] : memref<25x128xf32, #tpu.memory_space<vmem>>, vector<1x4xf32>
    %716 = vector.broadcast %715 : vector<1x4xf32> to vector<8x4xf32>
    %717 = arith.addf %714, %716 : vector<8x4xf32>
    %c0_163 = arith.constant 0 : index
    %c152 = arith.constant 152 : index
    %718 = vector.load %arg7[%c0_163, %c152] : memref<8x256xf32, #tpu.memory_space<vmem>>, vector<8x2xf32>
    %719 = vector.extract_strided_slice %717 {offsets = [0, 0], sizes = [8, 2], strides = [1, 1]} : vector<8x4xf32> to vector<8x2xf32>
    %720 = arith.addf %719, %718 : vector<8x2xf32>
    %cst_164 = arith.constant 0.000000e+00 : f32
    %721 = vector.broadcast %cst_164 : f32 to vector<8x2xf32>
    %722 = arith.subf %721, %720 : vector<8x2xf32>
    %723 = math.exp %722 : vector<8x2xf32>
    %cst_165 = arith.constant 1.000000e+00 : f32
    %724 = vector.broadcast %cst_165 : f32 to vector<8x2xf32>
    %725 = arith.addf %724, %723 : vector<8x2xf32>
    %726 = tpu.reciprocal %725 {approx = true} : vector<8x2xf32> -> vector<8x2xf32>
    %727 = vector.extract_strided_slice %717 {offsets = [0, 2], sizes = [8, 2], strides = [1, 1]} : vector<8x4xf32> to vector<8x2xf32>
    %cst_166 = arith.constant 0.000000e+00 : f32
    %728 = vector.broadcast %cst_166 : f32 to vector<8x2xf32>
    %729 = arith.subf %728, %727 : vector<8x2xf32>
    %730 = math.exp %729 : vector<8x2xf32>
    %cst_167 = arith.constant 1.000000e+00 : f32
    %731 = vector.broadcast %cst_167 : f32 to vector<8x2xf32>
    %732 = arith.addf %731, %730 : vector<8x2xf32>
    %733 = tpu.reciprocal %732 {approx = true} : vector<8x2xf32> -> vector<8x2xf32>
    %cst_168 = arith.constant 0.000000e+00 : f32
    %734 = vector.broadcast %cst_168 : f32 to vector<8x91xf32>
    %735 = arith.subf %734, %702 : vector<8x91xf32>
    %736 = math.exp %735 : vector<8x91xf32>
    %cst_169 = arith.constant 1.000000e+00 : f32
    %737 = vector.broadcast %cst_169 : f32 to vector<8x91xf32>
    %738 = arith.addf %737, %736 : vector<8x91xf32>
    %739 = tpu.reciprocal %738 {approx = true} : vector<8x91xf32> -> vector<8x91xf32>
    %cst_170 = arith.constant dense<0xFF800000> : vector<8xf32>
    %740 = vector.multi_reduction <maximumf>, %739, %cst_170 [1] : vector<8x91xf32> to vector<8xf32>
    %741 = vector.shape_cast %740 : vector<8xf32> to vector<8x1xf32>
    %cst_171 = arith.constant dense<0xFF800000> : vector<1xf32>
    %742 = vector.multi_reduction <maximumf>, %741, %cst_171 [0] : vector<8x1xf32> to vector<1xf32>
    %743 = vector.shape_cast %742 : vector<1xf32> to vector<1x1xf32>
    %744 = tpu.iota {dimensions = array<i32: 0>} : vector<8x1xi32>
    %745 = arith.sitofp %744 : vector<8x1xi32> to vector<8x1xf32>
    %746 = vector.broadcast %743 : vector<1x1xf32> to vector<8x1xf32>
    %747 = arith.cmpf oge, %741, %746 : vector<8x1xf32>
    %cst_172 = arith.constant 8.000000e+00 : f32
    %748 = vector.broadcast %cst_172 : f32 to vector<8x1xf32>
    %749 = arith.select %747, %745, %748 : vector<8x1xi1>, vector<8x1xf32>
    %cst_173 = arith.constant dense<0x7F800000> : vector<1xf32>
    %750 = vector.multi_reduction <minimumf>, %749, %cst_173 [0] : vector<8x1xf32> to vector<1xf32>
    %751 = vector.shape_cast %750 : vector<1xf32> to vector<1x1xf32>
    %752 = vector.broadcast %751 : vector<1x1xf32> to vector<8x1xf32>
    %753 = arith.cmpf oeq, %745, %752 : vector<8x1xf32>
    %754 = arith.extui %753 : vector<8x1xi1> to vector<8x1xi32>
    %755 = arith.sitofp %754 : vector<8x1xi32> to vector<8x1xf32>
    %756 = vector.broadcast %755 : vector<8x1xf32> to vector<8x2xf32>
    %757 = arith.mulf %726, %756 : vector<8x2xf32>
    %cst_174 = arith.constant dense<0.000000e+00> : vector<2xf32>
    %758 = vector.multi_reduction <add>, %757, %cst_174 [0] : vector<8x2xf32> to vector<2xf32>
    %759 = vector.shape_cast %758 : vector<2xf32> to vector<1x2xf32>
    %760 = vector.broadcast %755 : vector<8x1xf32> to vector<8x2xf32>
    %761 = arith.mulf %733, %760 : vector<8x2xf32>
    %cst_175 = arith.constant dense<0.000000e+00> : vector<2xf32>
    %762 = vector.multi_reduction <add>, %761, %cst_175 [0] : vector<8x2xf32> to vector<2xf32>
    %763 = vector.shape_cast %762 : vector<2xf32> to vector<1x2xf32>
    %cst_176 = arith.constant 5.000000e-01 : f32
    %764 = vector.broadcast %cst_176 : f32 to vector<1x2xf32>
    %765 = arith.mulf %764, %763 : vector<1x2xf32>
    %766 = arith.subf %759, %765 : vector<1x2xf32>
    %cst_177 = arith.constant 5.000000e-01 : f32
    %767 = vector.broadcast %cst_177 : f32 to vector<1x2xf32>
    %768 = arith.mulf %767, %763 : vector<1x2xf32>
    %769 = arith.addf %759, %768 : vector<1x2xf32>
    %770 = tpu.concatenate %766, %769 in 1 : vector<1x2xf32>, vector<1x2xf32> -> vector<1x4xf32>
    %cst_178 = arith.constant 3.200000e+01 : f32
    %771 = vector.broadcast %cst_178 : f32 to vector<1x4xf32>
    %772 = arith.mulf %770, %771 : vector<1x4xf32>
    %c0_179 = arith.constant 0 : index
    %c0_180 = arith.constant 0 : index
    %c0_181 = arith.constant 0 : index
    %773 = vector.load %arg8[%c0_179, %c0_180, %c0_181] : memref<1x1x4xf32, #tpu.memory_space<vmem>>, vector<1x1x4xf32>
    %774 = vector.shape_cast %773 : vector<1x1x4xf32> to vector<1x4xf32>
    %775 = vector.shape_cast %772 : vector<1x4xf32> to vector<1x1x4xf32>
    tpu.vector_store %arg8[%c0_179, %c0_180, %c0_181], %775 {strides = array<i32>} : memref<1x1x4xf32, #tpu.memory_space<vmem>>, vector<1x1x4xf32>,
    return
  }
  func.func @transform_0(%arg0: i32) -> (i32, i32, i32) {
    %c0_i32 = arith.constant 0 : i32
    %c0_i32_0 = arith.constant 0 : i32
    %c0_i32_1 = arith.constant 0 : i32
    return %arg0, %c0_i32, %c0_i32_0 : i32, i32, i32
  }
  func.func @transform_1(%arg0: i32) -> (i32, i32) {
    %c0_i32 = arith.constant 0 : i32
    %c0_i32_0 = arith.constant 0 : i32
    %c0_i32_1 = arith.constant 0 : i32
    return %c0_i32, %c0_i32_0 : i32, i32
  }
  func.func @transform_2(%arg0: i32) -> (i32, i32) {
    %c0_i32 = arith.constant 0 : i32
    %c0_i32_0 = arith.constant 0 : i32
    %c0_i32_1 = arith.constant 0 : i32
    return %c0_i32, %c0_i32_0 : i32, i32
  }
  func.func @transform_3(%arg0: i32) -> (i32, i32) {
    %c0_i32 = arith.constant 0 : i32
    %c0_i32_0 = arith.constant 0 : i32
    %c0_i32_1 = arith.constant 0 : i32
    return %c0_i32, %c0_i32_0 : i32, i32
  }
  func.func @transform_4(%arg0: i32) -> (i32, i32) {
    %c0_i32 = arith.constant 0 : i32
    %c0_i32_0 = arith.constant 0 : i32
    %c0_i32_1 = arith.constant 0 : i32
    return %c0_i32, %c0_i32_0 : i32, i32
  }
  func.func @transform_5(%arg0: i32) -> (i32, i32) {
    %c0_i32 = arith.constant 0 : i32
    %c0_i32_0 = arith.constant 0 : i32
    %c0_i32_1 = arith.constant 0 : i32
    return %c0_i32, %c0_i32_0 : i32, i32
  }
  func.func @transform_6(%arg0: i32) -> (i32, i32) {
    %c0_i32 = arith.constant 0 : i32
    %c0_i32_0 = arith.constant 0 : i32
    %c0_i32_1 = arith.constant 0 : i32
    return %c0_i32, %c0_i32_0 : i32, i32
  }
  func.func @transform_7(%arg0: i32) -> (i32, i32, i32) {
    %c0_i32 = arith.constant 0 : i32
    %c0_i32_0 = arith.constant 0 : i32
    %c0_i32_1 = arith.constant 0 : i32
    return %arg0, %c0_i32, %c0_i32_0 : i32, i32, i32
  }
}

</mosaic_0001>

<bundles_post_ra>
// kernel: forward.1
= control target key start
LH: loop header
LB: loop body
LE: loop exit
PB: predicated region body
PF: predicated region fallthrough
CT: control target
= control target key end

     0   :  { %12 = vsyncpa [#allocation3], 0  ;;  %s6822_s0 = inlined_call_operand.vmem [shape: f32[2,64,48], index: 0, kind: input, shape index: {}]   ;;  %s6823_s1 = inlined_call_operand.vmem [shape: f32[48,32], index: 1, kind: input, shape index: {}]   ;;  %s6824_s2 = inlined_call_operand.vmem [shape: f32[32,1536], index: 2, kind: input, shape index: {}]   ;;  %s6825_s3 = inlined_call_operand.vmem [shape: f32[64,256], index: 3, kind: input, shape index: {}]   ;;  %s6826_s4 = inlined_call_operand.vmem [shape: f32[25,128], index: 4, kind: input, shape index: {}]   ;;  %s6827_s5 = inlined_call_operand.vmem [shape: f32[64,128], index: 5, kind: input, shape index: {}]   ;;  %s6828_s6 = inlined_call_operand.vmem [shape: f32[8,256], index: 6, kind: input, shape index: {}]   ;;  %s6829_s7 = inlined_call_operand.hbm [shape: f32[2,1,4], index: 7, kind: output, shape index: {}]  }
   0x1   :  { %14 = vsyncpa [#allocation3 + $0x1], 0  ;;  %s4371_s24 = smov 0   ;;  %s4373_s25 = smov 0  }
   0x2   :  { %s4375_s26 = smov 0   ;;  %s4377_s27 = smov 0  }
   0x3 LB: > { %s4392_s28 = sadd.s32 4294967295, %s4266_s27   ;;  %s3630_s29 = sadd.s32 4294967294, %s4266_s27   ;;  %s4266_s27 = sphi %s4377_s27, %s7202_s27   ;;  %s4262_s26 = sphi %s4375_s26, %s7201_s26   ;;  %s4258_s25 = sphi %s4373_s25, %s7200_s25   ;;  %s4254_s24 = sphi %s4371_s24, %s7199_s24  }
   0x4   : > { %s4396_s30 = sadd.s32 1, %s4266_s27   ;;  %s179_s8 = sadd.s32 1, %s4262_s26 }
   0x5   : > { %s176_s9 = ssub.s32 %s4266_s27, %s4396_s30  ;;  %p189_p0 = scmp.ne.s32.totalorder %s4262_s26, %s4258_s25 }
   0x6   : > { %p177_p1 = scmp.eq.s32.totalorder %s176_s9, 0  ;;  %p190_p2 = scmp.eq.s32.totalorder %s4392_s28, 1 }
   0x7   : > { %p195_p3 = scmp.ne.s32.totalorder %s4258_s25, %s4254_s24  ;;  %p196_p4 = scmp.eq.s32.totalorder %s3630_s29, 1 }
   0x8   : > { %s4407_s10 = scalar_select %p177_p1, %s4262_s26, %s179_s8  }
   0x9   : > { %p4409_p5 = por %p190_p2, %p189_p0  ;;  %p4413_p6 = por %p196_p4, %p195_p3 }
   0xa   : > { %p3633_p7 = scmp.ge.s32.totalorder %s4266_s27, 1  ;;  %p240_p8 = scmp.lt.s32.totalorder %s4266_s27, 3 }
   0xc   : > { %p241_p9 = pnand %p3633_p7, %p240_p8 }
   0xe   : > { %244 = sbr.rel (%p241_p9) target bundleno = 5304 (0x14b8), region = 48 }
  0x13   : > { %v294_v0 = vld [vmem:[%s6823_s1 + $0x28] sm:$0xff]  ;;  %v293_v1 = vld [vmem:[%s6823_s1 + $0x20] sm:$0xff]  ;;  %p271_p10 = scmp.lt.s32.totalorder %s4392_s28, 1  ;;  %v292_v2 = vld [vmem:[%s6823_s1 + $0x18] sm:$0xff]  ;;  %vm297_vm0 = vcmask 392192   ;;  %s4268_s13 = smov 32  }
  0x14   : > { %332 = vmatpush.msra.mxu0 %v294_v0  ;;  %v291_v3 = vld [vmem:[%s6823_s1 + $0x10] sm:$0xff]  ;;  %v290_v4 = vld [vmem:[%s6823_s1 + $0x8] sm:$0xff]  ;;  %v289_v5 = vld [vmem:[%s6823_s1] sm:$0xff]  ;;  %vm367_vm1 = vcmask 261120   ;;  %v6862_v43 = vmov 39   ;;  %v6851_v44 = vmov 36  }
  0x15   : > { %s272_s19 = scalar_select %p271_p10, %s4392_s28, 1  ;;  %v366_v10 = vld [vmem:[%s6824_s2 + $0x120] sm:$0xff]  ;;  %v445_v28 = vld [vmem:[%s6827_s5 + $0x10] sm:$0xff]  ;;  %v444_v32 = vld [vmem:[%s6827_s5 + $0x8] sm:$0xff]  ;;  %3879 = vset.pattern.permute.xlu0 %v6862_v43  ;;  %3871 = vset.pattern.permute.xlu2 %v6851_v44  ;;  %v6849_v45 = vmov 32   ;;  %v6853_v50 = vmov 33  }
  0x16   : > { %333 = vmatpush.msra.mxu0 %v293_v1  ;;  %v365_v11 = vld [vmem:[%s6824_s2 + $0xc0] sm:$0xff]  ;;  %404 = vmatpush.msra.mxu1 %v366_v10  ;;  %v446_v35 = vld [vmem:[%s6827_s5 + $0x18] sm:$0xff]  ;;  %v448_v38 = vld [vmem:[%s6827_s5 + $0x28] sm:$0xff]  ;;  %v6831_v51 = vmov 42   ;;  %v6847_v52 = vmov 40   ;;  %v6839_v54 = vmov 41  }
  0x17   : > { %s3735_s22 = sshll.u32 %s272_s19, 6  ;;  %v364_v16 = vld [vmem:[%s6824_s2 + $0x60] sm:$0xff]  ;;  %463 = vrot.lane.b32.xlu2 %v445_v28, %s4268_s13  ;;  %v449_v41 = vld [vmem:[%s6827_s5 + $0x30] sm:$0xff]  ;;  %v450_v42 = vld [vmem:[%s6827_s5 + $0x38] sm:$0xff]  ;;  %3870 = vset.pattern.permute.xlu1 %v6849_v45  ;;  %v6845_v55 = vmov 37   ;;  %v6843_v57 = vmov 46  }
  0x18   : > { %334 = vmatpush.msra.mxu0 %v292_v2  ;;  %s275_s8 = scalar_lea.vmem %s6822_s0, %s3735_s22  ;;  %405 = vmatpush.msra.mxu1 %v365_v11  ;;  %v363_v17 = vld [vmem:[%s6824_s2] sm:$0xff]  ;;  %v6857_v58 = vmov 45   ;;  %v6864_v61 = vmov 43   ;;  %vm491_vm2 = vcmask 425344   ;;  %v6855_v2 = vmov 47   ;;  %s4285_s17 = smov 48  }
  0x19   : > { %v281_v6 = vld [vmem:[%s275_s8] sm:$0xff]  ;;  %v282_v7 = vld [vmem:[%s275_s8 + $0x8] sm:$0xff]  ;;  %v283_v8 = vld [vmem:[%s275_s8 + $0x10] sm:$0xff]  ;;  %vm516_vm5 = vcmask 458144   ;;  %s4289_s18 = smov 80   ;;  %s4291_s19 = smov 76  }
  0x1a   : > { %335 = vmatpush.msra.mxu0 %v291_v3  ;;  %v284_v9 = vld [vmem:[%s275_s8 + $0x18] sm:$0xff]  ;;  %v285_v12 = vld [vmem:[%s275_s8 + $0x20] sm:$0xff]  ;;  %v286_v13 = vld [vmem:[%s275_s8 + $0x28] sm:$0xff]  ;;  %406 = vmatpush.msra.mxu1 %v364_v16  ;;  %v6833_v16 = vmov 34   ;;  %vm640_vm7 = vcmask 31744   ;;  %s4296_s22 = smov 96  }
  0x1b   : > { %v287_v14 = vld [vmem:[%s275_s8 + $0x30] sm:$0xff]  ;;  %v288_v15 = vld [vmem:[%s275_s8 + $0x38] sm:$0xff]  ;;  %v443_v18 = vld [vmem:[%s6827_s5] sm:$0xff]  ;;  %s4297_s23 = smov 112   ;;  %vm2711_vm9 = vcmask 130048   ;;  %vm2737_vm10 = vcmask 64512  }
  0x1c   : > { %336 = vmatpush.msra.mxu0 %v290_v4  ;;  %407 = vmatpush.msra.mxu1 %v363_v17  ;;  %v4058_v19 = vld [vmem:[%s6826_s4] ss:$0 sm:$0xff]  ;;  %v6830_v4 = vlaneseq  ;;  %s4298_s8 = smov 64   ;;  %s4314_s9 = smov 16  }
  0x1d   : > { %459 = vrot.lane.b32.xlu0 %v443_v18, %s4268_s13  ;;  %v447_v29 = vld [vmem:[%s6827_s5 + $0x20] sm:$0xff]  ;;  %v6835_v18 = vmov 35   ;;  %s4320_s15 = smov 108   ;;  %s269_s14 = sand.u32 1, %s4258_s25  }
  0x1e   : > { %337 = vmatpush.msra.mxu0 %v289_v5  ;;  %467 = vrot.lane.b32.xlu1 %v447_v29, %s4268_s13  ;;  %v4581_v5 = vand.u32 127, %v6830_v4  ;;  %s3563_s20 = scalar_lea.sflag [#allocation3], %s269_s14  ;;  %s4224_s29 = scalar_lea.hbm %s6829_s7, 2 }
  0x1f   : > { %3636 = vmatmul.msk.f32.vlgmr.msra.gmra.mxu0 %vm297_vm0, %v281_v6  ;;  %461 = vrot.lane.b32.xlu2 %v444_v32, %s4268_s13  ;;  %v4059_v6 = vld [vmem:[%s6826_s4 + $0x1] ss:$0 sm:$0xff] }
  0x20   : > { %vm1984_vm3 = vcmp.ge.s32.totalorder %v4581_v5, 16  ;;  %vm1973_vm4 = vcmp.lt.s32.totalorder %v4581_v5, 16  ;;  %vm541_vm6 = vcmp.lt.s32.totalorder %v4581_v5, 4  ;;  %vm278_vm8 = vcmp.lt.s32.totalorder %v4581_v5, 64 }
  0x27   : > { %3637 = vmatmul.msk.f32.gmra.mxu0 %vm297_vm0, %v282_v7  ;;  %465 = vrot.lane.b32.xlu2 %v446_v35, %s4268_s13 }
  0x2f   : > { %3638 = vmatmul.msk.f32.gmra.mxu0 %vm297_vm0, %v283_v8  ;;  %469 = vrot.lane.b32.xlu2 %v448_v38, %s4268_s13 }
  0x37   : > { %3639 = vmatmul.msk.f32.gmra.mxu0 %vm297_vm0, %v284_v9  ;;  %471 = vrot.lane.b32.xlu2 %v449_v41, %s4268_s13 }
  0x3f   : > { %3640 = vmatmul.msk.f32.gmra.mxu0 %vm297_vm0, %v285_v12  ;;  %473 = vrot.lane.b32.xlu2 %v450_v42, %s4268_s13  ;;  %s270_s13 = scalar_lea.vmem [#allocation2], %s269_s14 }
  0x40   : > { %s3573_s16 = sshll.u32 %s270_s13, 4  ;;  %s3574_s16 = int_to_ptr.vmem [resolvable:$true] %s3573_s16 }
  0x47   : > { %3641 = vmatmul.msk.f32.gmra.mxu0 %vm297_vm0, %v286_v13 }
  0x4f   : > { %3642 = vmatmul.msk.f32.gmra.mxu0 %vm297_vm0, %v287_v14 }
  0x57   : > { %3643 = vmatmul.msk.f32.gmra.mxu0 %vm297_vm0, %v288_v15 }
  0x71   : > { %v4559_v59 = vpop.permute.xlu2 %463 }
  0x79   : > { %v462_v63 = vpop.permute.xlu2 %461 }
  0x8f   : > { %v460_v46 = vpop.permute.xlu0 %459 }
  0x9c   : > { %v339_v20 = vpop.f32.mrf.mxu0 }
  0x9d   : > { %v4469_v21 = vadd.f32 %v4058_v19, %v339_v20 }
  0x9f   : > { %6899 = vst [vmem:[#allocation5_spill] sm:$0xff] %v4469_v21  ;;  %3644 = vmatmul.msk.f32.vlgmr.msra.gmra.mxu1 %vm367_vm1, %v4469_v21 }
  0xa4   : > { %v342_v22 = vpop.f32.mrf.mxu0 }
  0xa5   : > { %v4473_v23 = vadd.f32 %v4058_v19, %v342_v22  ;;  %v466_v22 = vpop.permute.xlu2 %465 }
  0xa7   : > { %6900 = vst [vmem:[#allocation6_spill] sm:$0xff] %v4473_v23  ;;  %3645 = vmatmul.msk.f32.gmra.mxu1 %vm367_vm1, %v4473_v23 }
  0xac   : > { %v345_v24 = vpop.f32.mrf.mxu0 }
  0xad   : > { %v4477_v25 = vadd.f32 %v4058_v19, %v345_v24  ;;  %v470_v28 = vpop.permute.xlu2 %469 }
  0xaf   : > { %6901 = vst [vmem:[#allocation7_spill] sm:$0xff] %v4477_v25  ;;  %3646 = vmatmul.msk.f32.gmra.mxu1 %vm367_vm1, %v4477_v25 }
  0xb4   : > { %v348_v26 = vpop.f32.mrf.mxu0 }
  0xb5   : > { %v4481_v27 = vadd.f32 %v4058_v19, %v348_v26  ;;  %v6837_v26 = vmov 38   ;;  %v4751_v29 = vpop.permute.xlu2 %471 }
  0xb7   : > { %6902 = vst [vmem:[#allocation8_spill] sm:$0xff] %v4481_v27  ;;  %3647 = vmatmul.msk.f32.gmra.mxu1 %vm367_vm1, %v4481_v27 }
  0xbc   : > { %v351_v30 = vpop.f32.mrf.mxu0 }
  0xbd   : > { %v4493_v31 = vadd.f32 %v4058_v19, %v351_v30  ;;  %v474_v30 = vpop.permute.xlu2 %473 }
  0xbf   : > { %6903 = vst [vmem:[#allocation9_spill] sm:$0xff] %v4493_v31  ;;  %3648 = vmatmul.msk.f32.gmra.mxu1 %vm367_vm1, %v4493_v31 }
  0xc4   : > { %v354_v33 = vpop.f32.mrf.mxu0 }
  0xc5   : > { %v4501_v34 = vadd.f32 %v4058_v19, %v354_v33  ;;  %v468_v33 = vpop.permute.xlu1 %467 }
  0xc7   : > { %6904 = vst [vmem:[#allocation10_spill] sm:$0xff] %v4501_v34  ;;  %3649 = vmatmul.msk.f32.gmra.mxu1 %vm367_vm1, %v4501_v34 }
  0xcc   : > { %v357_v36 = vpop.f32.mrf.mxu0 }
  0xcd   : > { %v4509_v37 = vadd.f32 %v4058_v19, %v357_v36 }
  0xcf   : > { %6905 = vst [vmem:[#allocation11_spill] sm:$0xff] %v4509_v37  ;;  %3650 = vmatmul.msk.f32.gmra.mxu1 %vm367_vm1, %v4509_v37 }
  0xd4   : > { %v360_v39 = vpop.f32.mrf.mxu0 }
  0xd5   : > { %v4517_v40 = vadd.f32 %v4058_v19, %v360_v39 }
  0xd7   : > { %6906 = vst [vmem:[#allocation12_spill] sm:$0xff] %v4517_v40  ;;  %3651 = vmatmul.msk.f32.gmra.mxu1 %vm367_vm1, %v4517_v40 }
 0x11c   : > { %v4532_v47 = vpop.f32.mrf.mxu1 }
 0x11d   : > { %v4535_v48 = vadd.f32 %v460_v46, %v4532_v47  ;;  %v435_v15 = vadd.f32 %v4059_v6, %v4532_v47 }
 0x11f   : > { %1670 = vperm.xlu0 %3879, %v4535_v48   ;;  %756 = vperm.xlu2 %3871, %v4535_v48   ;;  %v492_v1 = vsel %vm491_vm2, %v4535_v48, -inf  ;;  %v517_v17 = vsel %vm516_vm5, %v4535_v48, -inf }
 0x120   : > { %717 = vperm.xlu1 %3870, %v4535_v48  }
 0x124   : > { %v4540_v49 = vpop.f32.mrf.mxu1 }
 0x125   : > { %v4570_v0 = vadd.f32 %v462_v63, %v4540_v49  ;;  %v436_v14 = vadd.f32 %v4059_v6, %v4540_v49  ;;  %v6841_v63 = vmov 44  }
 0x127   : > { %3873 = vset.pattern.permute.xlu2 %v6853_v50  ;;  %3891 = vset.pattern.permute.xlu0 %v6831_v51  ;;  %v495_v19 = vsel %vm491_vm2, %v4570_v0, -inf  ;;  %v520_v47 = vsel %vm516_vm5, %v4570_v0, -inf }
 0x128   : > { %3872 = vset.pattern.permute.xlu1 %v6847_v52  ;;  %1030 = vperm.xlu2 %3873, %v4535_v48  }
 0x129   : > { %796 = vperm.xlu1 %3872, %v4535_v48  }
 0x12c   : > { %v4547_v53 = vpop.f32.mrf.mxu1 }
 0x12d   : > { %v437_v13 = vadd.f32 %v4059_v6, %v4547_v53  ;;  %v4715_v20 = vadd.f32 %v4559_v59, %v4547_v53 }
 0x12f   : > { %v498_v35 = vsel %vm491_vm2, %v4715_v20, -inf }
 0x130   : > { %3875 = vset.pattern.permute.xlu2 %v6839_v54 }
 0x131   : > { %3874 = vset.pattern.permute.xlu1 %v6845_v55  ;;  %1102 = vperm.xlu2 %3875, %v4535_v48  }
 0x132   : > { %1062 = vperm.xlu1 %3874, %v4535_v48  }
 0x134   : > { %v4553_v56 = vpop.f32.mrf.mxu1 }
 0x135   : > { %v438_v12 = vadd.f32 %v4059_v6, %v4553_v56  ;;  %v4740_v24 = vadd.f32 %v466_v22, %v4553_v56 }
 0x137   : > { %6907 = vst [vmem:[#allocation13_spill] sm:$0xff] %v4740_v24  ;;  %v501_v39 = vsel %vm491_vm2, %v4740_v24, -inf  ;;  %v526_v23 = vsel %vm516_vm5, %v4740_v24, -inf }
 0x139   : > { %3878 = vset.pattern.permute.xlu2 %v6843_v57 }
 0x13a   : > { %3876 = vset.pattern.permute.xlu1 %v6857_v58  ;;  %1438 = vperm.xlu2 %3878, %v4535_v48  }
 0x13b   : > { %1134 = vperm.xlu1 %3876, %v4535_v48  }
 0x13c   : > { %v4561_v60 = vpop.f32.mrf.mxu1 }
 0x13d   : > { %v439_v11 = vadd.f32 %v4059_v6, %v4561_v60  ;;  %v4772_v46 = vadd.f32 %v468_v33, %v4561_v60 }
 0x13f   : > { %6913 = vst [vmem:[#allocation19_spill] sm:$0xff] %v4772_v46  ;;  %v529_v49 = vsel %vm516_vm5, %v4772_v46, -inf }
 0x142   : > { %3880 = vset.pattern.permute.xlu2 %v6864_v61 }
 0x143   : > { %3877 = vset.pattern.permute.xlu1 %v6831_v51  ;;  %1710 = vperm.xlu2 %3880, %v4535_v48  }
 0x144   : > { %1406 = vperm.xlu1 %3877, %v4535_v48   ;;  %v4567_v62 = vpop.f32.mrf.mxu1 }
 0x145   : > { %v440_v10 = vadd.f32 %v4059_v6, %v4567_v62  ;;  %v4779_v53 = vadd.f32 %v470_v28, %v4567_v62 }
 0x147   : > { %v532_v60 = vsel %vm516_vm5, %v4779_v53, -inf  ;;  %v507_v40 = vsel %vm491_vm2, %v4779_v53, -inf }
 0x149   : > { %493 = vmax.xlane.f32.xlu0 %v492_v1 }
 0x14b   : > { %3883 = vset.pattern.permute.xlu2 %v6851_v44 }
 0x14c   : > { %3881 = vset.pattern.permute.xlu1 %v6855_v2  ;;  %760 = vperm.xlu2 %3883, %v4570_v0   ;;  %v4577_v3 = vpop.f32.mrf.mxu1 }
 0x14d   : > { %1742 = vperm.xlu1 %3881, %v4535_v48   ;;  %v441_v8 = vadd.f32 %v4059_v6, %v4577_v3 }
 0x154   : > { %3885 = vset.pattern.permute.xlu2 %v6853_v50  ;;  %v4587_v7 = vpop.f32.mrf.mxu1 }
 0x155   : > { %v442_v9 = vadd.f32 %v4059_v6, %v4587_v7  ;;  %1034 = vperm.xlu2 %3885, %v4570_v0   ;;  %3882 = vset.pattern.permute.xlu1 %v6849_v45  ;;  %v4830_v22 = vadd.f32 %v474_v30, %v4587_v7 }
 0x157   : > { %3652 = vmatpush.msk.msrb.mxu0 %vm1984_vm3, %v442_v9  ;;  %3736 = vmatpush.msk.msrb.mxu1 %vm1984_vm3, %v442_v9  ;;  %v513_v33 = vsel %vm491_vm2, %v4830_v22, -inf }
 0x158   : > { %3737 = vmatpush.msk.msra.mxu2 %vm1984_vm3, %v442_v9 }
 0x159   : > { %3653 = vmatpush.msk.msrb.mxu0 %vm1984_vm3, %v441_v8  ;;  %3738 = vmatpush.msk.msrb.mxu1 %vm1984_vm3, %v441_v8 }
 0x15a   : > { %3739 = vmatpush.msk.msra.mxu2 %vm1984_vm3, %v441_v8 }
 0x15b   : > { %3654 = vmatpush.msk.msrb.mxu0 %vm1984_vm3, %v440_v10  ;;  %3740 = vmatpush.msk.msrb.mxu1 %vm1984_vm3, %v440_v10 }
 0x15c   : > { %3741 = vmatpush.msk.msra.mxu2 %vm1984_vm3, %v440_v10 }
 0x15d   : > { %1410 = vperm.xlu0 %3891, %v4570_v0   ;;  %3887 = vset.pattern.permute.xlu2 %v6839_v54 }
 0x15e   : > { %3655 = vmatpush.msk.msrb.mxu0 %vm1984_vm3, %v439_v11  ;;  %3742 = vmatpush.msk.msrb.mxu1 %vm1984_vm3, %v439_v11 }
 0x15f   : > { %3743 = vmatpush.msk.msra.mxu2 %vm1984_vm3, %v439_v11  ;;  %1106 = vperm.xlu2 %3887, %v4570_v0  }
 0x160   : > { %3656 = vmatpush.msk.msrb.mxu0 %vm1984_vm3, %v438_v12  ;;  %3744 = vmatpush.msk.msrb.mxu1 %vm1984_vm3, %v438_v12 }
 0x161   : > { %3745 = vmatpush.msk.msra.mxu2 %vm1984_vm3, %v438_v12 }
 0x162   : > { %3657 = vmatpush.msk.msrb.mxu0 %vm1984_vm3, %v437_v13  ;;  %3746 = vmatpush.msk.msrb.mxu1 %vm1984_vm3, %v437_v13 }
 0x163   : > { %3747 = vmatpush.msk.msra.mxu2 %vm1984_vm3, %v437_v13 }
 0x164   : > { %3658 = vmatpush.msk.msrb.mxu0 %vm1984_vm3, %v436_v14  ;;  %3748 = vmatpush.msk.msrb.mxu1 %vm1984_vm3, %v436_v14 }
 0x165   : > { %3749 = vmatpush.msk.msra.mxu2 %vm1984_vm3, %v436_v14  ;;  %3898 = vset.pattern.permute.xlu0 %v6851_v44 }
 0x166   : > { %3659 = vmatpush.msk.msrb.mxu0 %vm1984_vm3, %v435_v15  ;;  %3750 = vmatpush.msk.msrb.mxu1 %vm1984_vm3, %v435_v15 }
 0x167   : > { %3751 = vmatpush.msk.msra.mxu2 %vm1984_vm3, %v435_v15  ;;  %3889 = vset.pattern.permute.xlu2 %v6833_v16 }
 0x168   : > { %1338 = vperm.xlu2 %3889, %v4570_v0   ;;  %3660 = vmatpush.msk.msrb.mxu0 %vm1973_vm4, %v442_v9 }
 0x169   : > { %3752 = vmatpush.msk.msrb.mxu1 %vm1973_vm4, %v442_v9  ;;  %3753 = vmatpush.msk.msra.mxu2 %vm1973_vm4, %v442_v9 }
 0x16a   : > { %3661 = vmatpush.msk.msrb.mxu0 %vm1973_vm4, %v441_v8 }
 0x16b   : > { %3754 = vmatpush.msk.msrb.mxu1 %vm1973_vm4, %v441_v8  ;;  %3755 = vmatpush.msk.msra.mxu2 %vm1973_vm4, %v441_v8 }
 0x16c   : > { %3662 = vmatpush.msk.msrb.mxu0 %vm1973_vm4, %v440_v10 }
 0x16d   : > { %3756 = vmatpush.msk.msrb.mxu1 %vm1973_vm4, %v440_v10  ;;  %3757 = vmatpush.msk.msra.mxu2 %vm1973_vm4, %v440_v10 }
 0x16e   : > { %3663 = vmatpush.msk.msrb.mxu0 %vm1973_vm4, %v439_v11 }
 0x16f   : > { %3758 = vmatpush.msk.msrb.mxu1 %vm1973_vm4, %v439_v11  ;;  %3759 = vmatpush.msk.msra.mxu2 %vm1973_vm4, %v439_v11 }
 0x170   : > { %3892 = vset.pattern.permute.xlu2 %v6843_v57  ;;  %3664 = vmatpush.msk.msrb.mxu0 %vm1973_vm4, %v438_v12 }
 0x171   : > { %3760 = vmatpush.msk.msrb.mxu1 %vm1973_vm4, %v438_v12  ;;  %3761 = vmatpush.msk.msra.mxu2 %vm1973_vm4, %v438_v12 }
 0x172   : > { %1442 = vperm.xlu2 %3892, %v4570_v0   ;;  %3665 = vmatpush.msk.msrb.mxu0 %vm1973_vm4, %v437_v13 }
 0x173   : > { %3762 = vmatpush.msk.msrb.mxu1 %vm1973_vm4, %v437_v13  ;;  %3763 = vmatpush.msk.msra.mxu2 %vm1973_vm4, %v437_v13 }
 0x174   : > { %3666 = vmatpush.msk.msrb.mxu0 %vm1973_vm4, %v436_v14 }
 0x175   : > { %3764 = vmatpush.msk.msrb.mxu1 %vm1973_vm4, %v436_v14  ;;  %3765 = vmatpush.msk.msra.mxu2 %vm1973_vm4, %v436_v14 }
 0x176   : > { %3667 = vmatpush.msk.msrb.mxu0 %vm1973_vm4, %v435_v15 }
 0x177   : > { %3766 = vmatpush.msk.msrb.mxu1 %vm1973_vm4, %v435_v15  ;;  %3767 = vmatpush.msk.msra.mxu2 %vm1973_vm4, %v435_v15 }
 0x178   : > { %518 = vmax.xlane.f32.xlu1 %v517_v17 }
 0x179   : > { %v4757_v32 = vpop.permute.xlu2 %756 }
 0x17a   : > { %3893 = vset.pattern.permute.xlu2 %v6835_v18  ;;  %6908 = vst [vmem:[#allocation14_spill] sm:$0xff] %v4757_v32 }
 0x17b   : > { %1642 = vperm.xlu2 %3893, %v4570_v0  }
 0x182   : > { %v4761_v36 = vpop.permute.xlu2 %1030 }
 0x183   : > { %3895 = vset.pattern.permute.xlu2 %v6864_v61  ;;  %6909 = vst [vmem:[#allocation15_spill] sm:$0xff] %v4761_v36 }
 0x184   : > { %1714 = vperm.xlu2 %3895, %v4570_v0  }
 0x187   : > { %496 = vmax.xlane.f32.xlu0 %v495_v19  ;;  %v504_v19 = vsel %vm491_vm2, %v4772_v46, -inf }
 0x18b   : > { %v4767_v41 = vpop.permute.xlu2 %1102 }
 0x18c   : > { %3899 = vset.pattern.permute.xlu2 %v6847_v52  ;;  %6911 = vst [vmem:[#allocation17_spill] sm:$0xff] %v4767_v41 }
 0x18d   : > { %804 = vperm.xlu2 %3899, %v4715_v20  }
 0x191   : > { %722 = vperm.xlu1 %3882, %v4570_v0  }
 0x192   : > { %v4763_v38 = vpop.permute.xlu1 %717 }
 0x193   : > { %6910 = vst [vmem:[#allocation16_spill] sm:$0xff] %v4763_v38 }
 0x194   : > { %v4781_v56 = vpop.permute.xlu2 %1438 }
 0x195   : > { %3901 = vset.pattern.permute.xlu2 %v6853_v50  ;;  %6914 = vst [vmem:[#allocation20_spill] sm:$0xff] %v4781_v56 }
 0x196   : > { %1038 = vperm.xlu2 %3901, %v4715_v20  }
 0x199   : > { %3884 = vset.pattern.permute.xlu1 %v6847_v52 }
 0x19a   : > { %800 = vperm.xlu1 %3884, %v4570_v0  }
 0x19b   : > { %764 = vperm.xlu0 %3898, %v4715_v20   ;;  %v4769_v42 = vpop.permute.xlu1 %796 }
 0x19c   : > { %6912 = vst [vmem:[#allocation18_spill] sm:$0xff] %v4769_v42 }
 0x19d   : > { %v4790_v1 = vpop.permute.xlu2 %1710 }
 0x19e   : > { %3904 = vset.pattern.permute.xlu2 %v6857_v58  ;;  %6916 = vst [vmem:[#allocation22_spill] sm:$0xff] %v4790_v1 }
 0x19f   : > { %1142 = vperm.xlu2 %3904, %v4715_v20  }
 0x1a2   : > { %3886 = vset.pattern.permute.xlu1 %v6845_v55 }
 0x1a3   : > { %1066 = vperm.xlu1 %3886, %v4570_v0   ;;  %3903 = vset.pattern.permute.xlu0 %v6839_v54 }
 0x1a4   : > { %1110 = vperm.xlu0 %3903, %v4715_v20   ;;  %v4783_v59 = vpop.permute.xlu1 %1062 }
 0x1a5   : > { %6915 = vst [vmem:[#allocation21_spill] sm:$0xff] %v4783_v59 }
 0x1a6   : > { %v4795_v62 = vpop.permute.xlu2 %760 }
 0x1a7   : > { %3905 = vset.pattern.permute.xlu2 %v6831_v51  ;;  %v523_v51 = vsel %vm516_vm5, %v4715_v20, -inf }
 0x1a8   : > { %1414 = vperm.xlu2 %3905, %v4715_v20  }
 0x1ab   : > { %3888 = vset.pattern.permute.xlu1 %v6857_v58 }
 0x1ac   : > { %1138 = vperm.xlu1 %3888, %v4570_v0   ;;  %3909 = vset.pattern.permute.xlu0 %v6855_v2 }
 0x1ad   : > { %1750 = vperm.xlu0 %3909, %v4715_v20   ;;  %v4792_v6 = vpop.permute.xlu1 %1134 }
 0x1ae   : > { %6917 = vst [vmem:[#allocation23_spill] sm:$0xff] %v4792_v6 }
 0x1af   : > { %v4803_v9 = vpop.permute.xlu2 %1034 }
 0x1b0   : > { %3907 = vset.pattern.permute.xlu2 %v6862_v43 }
 0x1b1   : > { %1678 = vperm.xlu2 %3907, %v4715_v20  }
 0x1b4   : > { %3890 = vset.pattern.permute.xlu1 %v6837_v26 }
 0x1b5   : > { %1370 = vperm.xlu1 %3890, %v4570_v0   ;;  %3910 = vset.pattern.permute.xlu0 %v6849_v45 }
 0x1b6   : > { %732 = vperm.xlu0 %3910, %v4740_v24   ;;  %v4798_v8 = vpop.permute.xlu1 %1406 }
 0x1b7   : > { %6918 = vst [vmem:[#allocation24_spill] sm:$0xff] %v4798_v8 }
 0x1b9   : > { %3911 = vset.pattern.permute.xlu2 %v6851_v44  ;;  %v4809_v11 = vpop.permute.xlu2 %1106 }
 0x1bd   : > { %3894 = vset.pattern.permute.xlu1 %v6862_v43 }
 0x1be   : > { %1674 = vperm.xlu1 %3894, %v4570_v0   ;;  %3915 = vset.pattern.permute.xlu0 %v6845_v55 }
 0x1bf   : > { %1074 = vperm.xlu0 %3915, %v4740_v24   ;;  %v4805_v10 = vpop.permute.xlu1 %1742 }
 0x1c0   : > { %6919 = vst [vmem:[#allocation25_spill] sm:$0xff] %v4805_v10 }
 0x1c2   : > { %v4817_v14 = vpop.permute.xlu2 %1338 }
 0x1c6   : > { %3896 = vset.pattern.permute.xlu1 %v6855_v2 }
 0x1c7   : > { %1746 = vperm.xlu1 %3896, %v4570_v0   ;;  %3920 = vset.pattern.permute.xlu0 %v6835_v18 }
 0x1cc   : > { %v4823_v17 = vpop.permute.xlu2 %1442 }
 0x1cf   : > { %3897 = vset.pattern.permute.xlu1 %v6849_v45 }
 0x1da   : > { %499 = vmax.xlane.f32.xlu2 %v498_v35  ;;  %v4836_v35 = vpop.permute.xlu2 %1642 }
 0x1e9   : > { %502 = vmax.xlane.f32.xlu0 %v501_v39 }
 0x1eb   : > { %v4811_v12 = vpop.xlane.xlu1 %518 }
 0x1f1   : > { %521 = vmax.xlane.f32.xlu1 %v520_v47  ;;  %530 = vmax.xlane.f32.xlu0 %v529_v49  ;;  %v4841_v47 = vpop.permute.xlu2 %1714  ;;  %v4844_v49 = vpop.permute.xlu0 %1670 }
 0x1f2   : > { %768 = vperm.xlu2 %3911, %v4740_v24   ;;  %6920 = vst [vmem:[#allocation26_spill] sm:$0xff] %v4844_v49 }
 0x1f9   : > { %533 = vmax.xlane.f32.xlu0 %v532_v60  ;;  %v4848_v30 = vpop.permute.xlu2 %804  ;;  %v4851_v60 = vpop.xlane.xlu0 %493 }
 0x1fa   : > { %3913 = vset.pattern.permute.xlu2 %v6841_v63  ;;  %6921 = vst [vmem:[#allocation27_spill] sm:$0xff] %v4848_v30  ;;  %v6966_v30 = vmov 50  }
 0x1fb   : > { %840 = vperm.xlu2 %3913, %v4740_v24  }
 0x201   : > { %v4855_v4 = vpop.permute.xlu2 %1038 }
 0x202   : > { %6922 = vst [vmem:[#allocation28_spill] sm:$0xff] %v4855_v4  ;;  %v6964_v4 = vmov 52  }
 0x203   : > { %3916 = vset.pattern.permute.xlu2 %v6839_v54  ;;  %v4815_v13 = vpop.permute.xlu1 %722 }
 0x204   : > { %1114 = vperm.xlu2 %3916, %v4740_v24  }
 0x209   : > { %v4863_v18 = vpop.permute.xlu2 %1142 }
 0x20a   : > { %727 = vperm.xlu1 %3897, %v4715_v20   ;;  %6923 = vst [vmem:[#allocation29_spill] sm:$0xff] %v4863_v18 }
 0x20c   : > { %3918 = vset.pattern.permute.xlu2 %v6833_v16  ;;  %v4821_v15 = vpop.permute.xlu1 %800 }
 0x20d   : > { %1650 = vperm.xlu0 %3920, %v4740_v24  }
 0x212   : > { %3900 = vset.pattern.permute.xlu1 %v6841_v63 }
 0x213   : > { %836 = vperm.xlu1 %3900, %v4715_v20  }
 0x215   : > { %v4832_v28 = vpop.permute.xlu1 %1066 }
 0x21b   : > { %3902 = vset.pattern.permute.xlu1 %v6845_v55  ;;  %v4871_v55 = vpop.permute.xlu2 %1414 }
 0x21c   : > { %1070 = vperm.xlu1 %3902, %v4715_v20   ;;  %6925 = vst [vmem:[#allocation31_spill] sm:$0xff] %v4871_v55 }
 0x21e   : > { %v4839_v39 = vpop.permute.xlu1 %1138 }
 0x224   : > { %3906 = vset.pattern.permute.xlu1 %v6843_v57 }
 0x225   : > { %1446 = vperm.xlu1 %3906, %v4715_v20  }
 0x227   : > { %v4846_v7 = vpop.permute.xlu1 %1370 }
 0x22d   : > { %3908 = vset.pattern.permute.xlu1 %v6864_v61  ;;  %505 = vmax.xlane.f32.xlu2 %v504_v19 }
 0x22e   : > { %1718 = vperm.xlu1 %3908, %v4715_v20  }
 0x230   : > { %v4853_v19 = vpop.permute.xlu1 %1674 }
 0x236   : > { %3912 = vset.pattern.permute.xlu1 %v6847_v52 }
 0x237   : > { %514 = vmax.xlane.f32.xlu0 %v513_v33  ;;  %v4857_v33 = vpop.permute.xlu0 %1410 }
 0x239   : > { %v4861_v16 = vpop.permute.xlu1 %1746 }
 0x23f   : > { %v497_v26 = vpop.xlane.xlu0 %496 }
 0x245   : > { %1346 = vperm.xlu2 %3918, %v4740_v24  }
 0x24d   : > { %3919 = vset.pattern.permute.xlu2 %v6843_v57  ;;  %v4868_v57 = vpop.permute.xlu0 %764 }
 0x24e   : > { %6924 = vst [vmem:[#allocation30_spill] sm:$0xff] %v4868_v57  ;;  %v6968_v57 = vmov 51  }
 0x255   : > { %v4879_v45 = vpop.permute.xlu0 %1110 }
 0x256   : > { %6926 = vst [vmem:[#allocation32_spill] sm:$0xff] %v4879_v45 }
 0x258   : > { %524 = vmax.xlane.f32.xlu1 %v523_v51  ;;  %v4875_v51 = vadd.f32 %v4751_v29, %v4577_v3 }
 0x25a   : > { %v535_v52 = vsel %vm516_vm5, %v4875_v51, -inf }
 0x264   : > { %v522_v54 = vpop.xlane.xlu1 %521 }
 0x265   : > { %v545_v63 = vsel %vm541_vm6, %v497_v26, %v522_v54  ;;  %v4882_v54 = vpop.permute.xlu2 %1678  ;;  %v4885_v26 = vpop.permute.xlu0 %1750 }
 0x266   : > { %562 = vrot.lane.b32.xlu0 %v545_v63, %s4285_s17  ;;  %6927 = vst [vmem:[#allocation33_spill] sm:$0xff] %v4882_v54 }
 0x267   : > { %6928 = vst [vmem:[#allocation34_spill] sm:$0xff] %v4885_v26 }
 0x26d   : > { %v500_v63 = vpop.xlane.xlu2 %499  ;;  %v4888_v44 = vpop.permute.xlu0 %732 }
 0x26e   : > { %536 = vmax.xlane.f32.xlu2 %v535_v52  ;;  %6929 = vst [vmem:[#allocation35_spill] sm:$0xff] %v4888_v44  ;;  %v510_v44 = vsel %vm491_vm2, %v4875_v51, -inf }
 0x271   : > { %808 = vperm.xlu1 %3912, %v4740_v24  }
 0x275   : > { %v4891_v3 = vpop.permute.xlu2 %768  ;;  %v4896_v52 = vpop.permute.xlu0 %1074 }
 0x276   : > { %6930 = vst [vmem:[#allocation36_spill] sm:$0xff] %v4891_v3 }
 0x277   : > { %6931 = vst [vmem:[#allocation37_spill] sm:$0xff] %v4896_v52  ;;  %v538_v52 = vsel %vm516_vm5, %v4830_v22, -inf }
 0x279   : > { %3914 = vset.pattern.permute.xlu1 %v6853_v50 }
 0x27a   : > { %1042 = vperm.xlu1 %3914, %v4740_v24  }
 0x27c   : > { %v4906_v37 = vpop.permute.xlu1 %727 }
 0x27d   : > { %v4898_v29 = vpop.permute.xlu2 %840  ;;  %v503_v50 = vpop.xlane.xlu0 %502  ;;  %6935 = vst [vmem:[#allocation40_spill] sm:$0xff] %v4906_v37 }
 0x27e   : > { %6932 = vst [vmem:[#allocation38_spill] sm:$0xff] %v4898_v29 }
 0x282   : > { %3917 = vset.pattern.permute.xlu1 %v6857_v58  ;;  %v6934_v58 = vmov 47  }
 0x283   : > { %1146 = vperm.xlu1 %3917, %v4740_v24  }
 0x285   : > { %v4902_v2 = vpop.permute.xlu2 %1114  ;;  %v531_v31 = vpop.xlane.xlu0 %530 }
 0x286   : > { %1450 = vperm.xlu2 %3919, %v4740_v24   ;;  %6933 = vst [vmem:[#allocation39_spill] sm:$0xff] %v4902_v2  ;;  %v4913_v27 = vpop.permute.xlu1 %836 }
 0x287   : > { %6937 = vst [vmem:[#allocation41_spill] sm:$0xff] %v4913_v27 }
 0x28b   : > { %3921 = vset.pattern.permute.xlu1 %v6862_v43  ;;  %v6936_v43 = vmov 36  }
 0x28e   : > { %3922 = vset.pattern.permute.xlu2 %v6864_v61  ;;  %v4917_v21 = vpop.permute.xlu1 %1070 }
 0x28f   : > { %1722 = vperm.xlu2 %3922, %v4740_v24   ;;  %6938 = vst [vmem:[#allocation42_spill] sm:$0xff] %v4917_v21 }
 0x297   : > { %3923 = vset.pattern.permute.xlu2 %v6934_v58  ;;  %v4921_v25 = vpop.permute.xlu1 %1446 }
 0x298   : > { %1754 = vperm.xlu2 %3923, %v4740_v24   ;;  %6939 = vst [vmem:[#allocation43_spill] sm:$0xff] %v4921_v25 }
 0x2a0   : > { %v506_v34 = vpop.xlane.xlu2 %505  ;;  %3925 = vset.pattern.permute.xlu2 %v6936_v43 }
 0x2a1   : > { %772 = vperm.xlu2 %3925, %v4772_v46   ;;  %v548_v61 = vsel %vm541_vm6, %v506_v34, %v531_v31  ;;  %v4925_v31 = vpop.permute.xlu1 %1718 }
 0x2a2   : > { %568 = vrot.lane.b32.xlu0 %v548_v61, %s4285_s17  ;;  %6940 = vst [vmem:[#allocation44_spill] sm:$0xff] %v4925_v31 }
 0x2ad   : > { %527 = vmax.xlane.f32.xlu1 %v526_v23  ;;  %v6941_v23 = vmov 32  }
 0x2b5   : > { %508 = vmax.xlane.f32.xlu1 %v507_v40  ;;  %v6942_v40 = vmov 40  }
 0x2bd   : > { %511 = vmax.xlane.f32.xlu1 %v510_v44 }
 0x2cb   : > { %v525_v34 = vpop.xlane.xlu1 %524 }
 0x2cc   : > { %v546_v61 = vsel %vm541_vm6, %v500_v63, %v525_v34 }
 0x2cd   : > { %564 = vrot.lane.b32.xlu2 %v546_v61, %s4285_s17  ;;  %v534_v61 = vpop.xlane.xlu0 %533 }
 0x2d6   : > { %1682 = vperm.xlu1 %3921, %v4740_v24  }
 0x2de   : > { %3924 = vset.pattern.permute.xlu1 %v6941_v23 }
 0x2df   : > { %737 = vperm.xlu1 %3924, %v4772_v46  }
 0x2e3   : > { %v4935_v3 = vpop.permute.xlu1 %808 }
 0x2e4   : > { %6943 = vst [vmem:[#allocation45_spill] sm:$0xff] %v4935_v3  ;;  %v544_v3 = vsel %vm541_vm6, %v4851_v60, %v4811_v12  ;;  %v4963_v12 = vpop.permute.xlu0 %1650 }
 0x2e5   : > { %6949 = vst [vmem:[#allocation51_spill] sm:$0xff] %v4963_v12 }
 0x2e7   : > { %3926 = vset.pattern.permute.xlu1 %v6942_v40 }
 0x2e8   : > { %812 = vperm.xlu1 %3926, %v4772_v46  }
 0x2ec   : > { %v4937_v44 = vpop.permute.xlu1 %1042 }
 0x2ed   : > { %6944 = vst [vmem:[#allocation46_spill] sm:$0xff] %v4937_v44  ;;  %v4951_v44 = vpop.permute.xlu2 %1346 }
 0x2ee   : > { %6946 = vst [vmem:[#allocation48_spill] sm:$0xff] %v4951_v44 }
 0x2f5   : > { %v4941_v63 = vpop.permute.xlu1 %1146  ;;  %v537_v54 = vpop.xlane.xlu2 %536 }
 0x2f6   : > { %6945 = vst [vmem:[#allocation47_spill] sm:$0xff] %v4941_v63 }
 0x312   : > { %539 = vmax.xlane.f32.xlu1 %v538_v52 }
 0x320   : > { %v528_v34 = vpop.xlane.xlu1 %527 }
 0x321   : > { %v547_v52 = vsel %vm541_vm6, %v503_v50, %v528_v34  ;;  %v6871_v34 = vmov 50  }
 0x322   : > { %3930 = vset.pattern.permute.xlu0 %v6871_v34 }
 0x328   : > { %v509_v29 = vpop.xlane.xlu1 %508 }
 0x329   : > { %v549_v2 = vsel %vm541_vm6, %v509_v29, %v534_v61 }
 0x32a   : > { %570 = vrot.lane.b32.xlu2 %v549_v2, %s4285_s17 }
 0x32b   : > { %560 = vrot.lane.b32.xlu1 %v544_v3, %s4285_s17  ;;  %v515_v3 = vpop.xlane.xlu0 %514 }
 0x330   : > { %v512_v63 = vpop.xlane.xlu1 %511 }
 0x331   : > { %v550_v29 = vsel %vm541_vm6, %v512_v63, %v537_v54  ;;  %v6873_v54 = vmov 54   ;;  %v4972_v63 = vpop.permute.xlu2 %1450 }
 0x332   : > { %3931 = vset.pattern.permute.xlu1 %v6873_v54  ;;  %6951 = vst [vmem:[#allocation53_spill] sm:$0xff] %v4972_v63 }
 0x333   : > { %566 = vrot.lane.b32.xlu1 %v547_v52, %s4285_s17  ;;  %v6875_v52 = vmov 48  }
 0x334   : > { %3927 = vset.pattern.permute.xlu2 %v6875_v52  ;;  %v6877_v52 = vmov 52  }
 0x33b   : > { %572 = vrot.lane.b32.xlu1 %v550_v29, %s4285_s17  ;;  %v4975_v29 = vpop.permute.xlu2 %1722 }
 0x33c   : > { %6952 = vst [vmem:[#allocation54_spill] sm:$0xff] %v4975_v29  ;;  %v6883_v29 = vmov 53  }
 0x343   : > { %v4978_v12 = vpop.permute.xlu2 %1754 }
 0x344   : > { %6953 = vst [vmem:[#allocation55_spill] sm:$0xff] %v4978_v12 }
 0x348   : > { %v4959_v2 = vpop.permute.xlu1 %1682 }
 0x349   : > { %6947 = vst [vmem:[#allocation49_spill] sm:$0xff] %v4959_v2 }
 0x34b   : > { %v4983_v54 = vpop.permute.xlu2 %772 }
 0x34c   : > { %6954 = vst [vmem:[#allocation56_spill] sm:$0xff] %v4983_v54 }
 0x351   : > { %v4961_v61 = vpop.permute.xlu1 %737 }
 0x352   : > { %6948 = vst [vmem:[#allocation50_spill] sm:$0xff] %v4961_v61 }
 0x35a   : > { %v4965_v60 = vpop.permute.xlu1 %812 }
 0x35b   : > { %6950 = vst [vmem:[#allocation52_spill] sm:$0xff] %v4965_v60 }
 0x385   : > { %v540_v44 = vpop.xlane.xlu1 %539 }
 0x386   : > { %v551_v50 = vsel %vm541_vm6, %v515_v3, %v540_v44  ;;  %v563_v44 = vpop.permute.xlu0 %562 }
 0x387   : > { %574 = vrot.lane.b32.xlu0 %v551_v50, %s4285_s17  ;;  %v585_v50 = vsub.f32 %v4570_v0, %v563_v44 }
 0x389   : > { %v594_v34 = vmul.f32 1.442695, %v585_v50  ;;  %v6955_v50 = vmov 54  }
 0x38e   : > { %v569_v26 = vpop.permute.xlu0 %568 }
 0x39d   : > { %v561_v61 = vpop.permute.xlu1 %560 }
 0x39e   : > { %v584_v60 = vsub.f32 %v4535_v48, %v561_v61 }
 0x3a0   : > { %v592_v3 = vmul.f32 1.442695, %v584_v60  ;;  %v565_v60 = vpop.permute.xlu2 %564 }
 0x3a1   : > { %v586_v44 = vsub.f32 %v4715_v20, %v565_v60  ;;  %v6881_v60 = vmov 49  }
 0x3a2   : > { %4083 = vpow2.f32 %v592_v3  ;;  %v6879_v3 = vmov 55  }
 0x3a3   : > { %4085 = vpow2.f32 %v594_v34  ;;  %v596_v34 = vmul.f32 1.442695, %v586_v44 }
 0x3a5   : > { %4087 = vpow2.f32 %v596_v34  ;;  %v567_v63 = vpop.permute.xlu1 %566 }
 0x3a6   : > { %v587_v44 = vsub.f32 %v4740_v24, %v567_v63  ;;  %v6885_v63 = vmov 51  }
 0x3a8   : > { %v4981_v2 = vpop.eup %4083  ;;  %v598_v34 = vmul.f32 1.442695, %v587_v44  ;;  %v6957_v44 = vmov 37  }
 0x3a9   : > { %1510 = vperm.xlu1 %3931, %v4981_v2   ;;  %616 = vrot.lane.b32.xlu2 %v4981_v2, %s4289_s18  ;;  %v4989_v61 = vpop.eup %4085 }
 0x3aa   : > { %1478 = vperm.xlu0 %3930, %v4981_v2   ;;  %4089 = vpow2.f32 %v598_v34 }
 0x3ab   : > { %v5004_v54 = vpop.eup %4087 }
 0x3ad   : > { %v573_v31 = vpop.permute.xlu1 %572 }
 0x3b1   : > { %3933 = vset.pattern.permute.xlu1 %v6879_v3  ;;  %665 = vrot.lane.b32.xlu2 %v4981_v2, %s4291_s19 }
 0x3b2   : > { %618 = vrot.lane.b32.xlu0 %v4989_v61, %s4289_s18  ;;  %1814 = vperm.xlu1 %3933, %v4981_v2  }
 0x3b3   : > { %3940 = vset.pattern.permute.xlu0 %v6879_v3  ;;  %v6956_v3 = vmov 33  }
 0x3b9   : > { %868 = vperm.xlu2 %3927, %v4981_v2  }
 0x3ba   : > { %1818 = vperm.xlu0 %3940, %v4989_v61   ;;  %3938 = vset.pattern.permute.xlu1 %v6955_v50 }
 0x3bb   : > { %1514 = vperm.xlu1 %3938, %v4989_v61  }
 0x3c1   : > { %3928 = vset.pattern.permute.xlu2 %v6877_v52  ;;  %v571_v52 = vpop.permute.xlu2 %570 }
 0x3c2   : > { %3942 = vset.pattern.permute.xlu0 %v6883_v29  ;;  %900 = vperm.xlu2 %3928, %v4981_v2   ;;  %v589_v12 = vsub.f32 %v4779_v53, %v571_v52  ;;  %v6958_v52 = vmov 46  }
 0x3c3   : > { %1214 = vperm.xlu0 %3942, %v5004_v54   ;;  %669 = vrot.lane.b32.xlu1 %v5004_v54, %s4291_s19 }
 0x3c4   : > { %3941 = vset.pattern.permute.xlu1 %v6881_v60  ;;  %v602_v49 = vmul.f32 1.442695, %v589_v12  ;;  %v5019_v60 = vpop.eup %4089 }
 0x3c6   : > { %4091 = vpow2.f32 %v602_v49  ;;  %v6961_v49 = vmov 48  }
 0x3ca   : > { %3929 = vset.pattern.permute.xlu2 %v6883_v29  ;;  %v590_v29 = vsub.f32 %v4875_v51, %v573_v31  ;;  %v588_v31 = vsub.f32 %v4772_v46, %v569_v26  ;;  %v6965_v26 = vmov 53  }
 0x3cb   : > { %3947 = vset.pattern.permute.xlu0 %v6956_v3  ;;  %1206 = vperm.xlu2 %3929, %v4981_v2  }
 0x3cc   : > { %1182 = vperm.xlu1 %3941, %v5004_v54   ;;  %1046 = vperm.xlu0 %3947, %v4772_v46   ;;  %v604_v12 = vmul.f32 1.442695, %v590_v29  ;;  %v5029_v34 = vpop.eup %4091  ;;  %v600_v29 = vmul.f32 1.442695, %v588_v31 }
 0x3cd   : > { %6959 = vst [vmem:[#allocation57_spill] sm:$0xff] %v5029_v34 }
 0x3ce   : > { %4093 = vpow2.f32 %v604_v12  ;;  %v6962_v12 = vmov 45  }
 0x3cf   : > { %4095 = vpow2.f32 %v600_v29 }
 0x3d3   : > { %3932 = vset.pattern.permute.xlu2 %v6885_v63  ;;  %v6960_v63 = vmov 55  }
 0x3d4   : > { %3948 = vset.pattern.permute.xlu1 %v6957_v44  ;;  %671 = vrot.lane.b32.xlu0 %v5019_v60, %s4291_s19  ;;  %v5039_v55 = vpop.eup %4093 }
 0x3d5   : > { %1782 = vperm.xlu2 %3932, %v4981_v2   ;;  %1078 = vperm.xlu1 %3948, %v4772_v46   ;;  %v5047_v25 = vpop.eup %4095 }
 0x3d6   : > { %3957 = vset.pattern.permute.xlu0 %v6958_v52  ;;  %6963 = vst [vmem:[#allocation58_spill] sm:$0xff] %v5047_v25 }
 0x3dc   : > { %626 = vrot.lane.b32.xlu0 %v5029_v34, %s4289_s18 }
 0x3dd   : > { %3949 = vset.pattern.permute.xlu1 %v6960_v63  ;;  %667 = vrot.lane.b32.xlu2 %v4989_v61, %s4291_s19 }
 0x3de   : > { %1822 = vperm.xlu1 %3949, %v5004_v54   ;;  %3934 = vset.pattern.permute.xlu2 %v6961_v49 }
 0x3e4   : > { %628 = vrot.lane.b32.xlu0 %v5039_v55, %s4289_s18 }
 0x3e5   : > { %872 = vperm.xlu2 %3934, %v4989_v61  }
 0x3e6   : > { %622 = vrot.lane.b32.xlu1 %v5019_v60, %s4289_s18 }
 0x3e7   : > { %3951 = vset.pattern.permute.xlu1 %v6962_v12 }
 0x3ed   : > { %3935 = vset.pattern.permute.xlu2 %v6964_v4 }
 0x3ee   : > { %904 = vperm.xlu2 %3935, %v4989_v61   ;;  %673 = vrot.lane.b32.xlu1 %v5047_v25, %s4291_s19 }
 0x3f6   : > { %3936 = vset.pattern.permute.xlu2 %v6965_v26  ;;  %1150 = vperm.xlu1 %3951, %v4772_v46  }
 0x3f7   : > { %1210 = vperm.xlu2 %3936, %v4989_v61  }
 0x3f9   : > { %v575_v31 = vpop.permute.xlu0 %574 }
 0x3fa   : > { %v591_v29 = vsub.f32 %v4830_v22, %v575_v31 }
 0x3fc   : > { %v606_v21 = vmul.f32 1.442695, %v591_v29 }
 0x3fe   : > { %4097 = vpow2.f32 %v606_v21  ;;  %3953 = vset.pattern.permute.xlu1 %v6961_v49 }
 0x3ff   : > { %3937 = vset.pattern.permute.xlu2 %v6966_v30 }
 0x400   : > { %1482 = vperm.xlu2 %3937, %v4989_v61  }
 0x403   : > { %v617_v27 = vpop.permute.xlu2 %616 }
 0x404   : > { %v5060_v37 = vpop.eup %4097  ;;  %v641_v29 = vsel %vm640_vm7, %v617_v27, 0.0  ;;  %v6974_v27 = vmov 44  }
 0x405   : > { %6967 = vst [vmem:[#allocation59_spill] sm:$0xff] %v5060_v37  ;;  %679 = vrot.lane.b32.xlu0 %v5060_v37, %s4291_s19 }
 0x408   : > { %3939 = vset.pattern.permute.xlu2 %v6968_v57 }
 0x409   : > { %1786 = vperm.xlu2 %3939, %v4989_v61  }
 0x40b   : > { %v666_v45 = vpop.permute.xlu2 %665 }
 0x411   : > { %620 = vrot.lane.b32.xlu2 %v5004_v54, %s4289_s18 }
 0x412   : > { %3943 = vset.pattern.permute.xlu2 %v6966_v30 }
 0x413   : > { %v5069_v21 = vpop.permute.xlu2 %868 }
 0x414   : > { %6969 = vst [vmem:[#allocation60_spill] sm:$0xff] %v5069_v21  ;;  %v689_v21 = vsel %vm640_vm7, %v666_v45, 0.0 }
 0x419   : > { %1486 = vperm.xlu2 %3943, %v5004_v54  }
 0x41c   : > { %v5072_v31 = vpop.permute.xlu2 %900  ;;  %v5079_v1 = vpop.permute.xlu0 %1478 }
 0x41d   : > { %6970 = vst [vmem:[#allocation61_spill] sm:$0xff] %v5072_v31 }
 0x41e   : > { %6972 = vst [vmem:[#allocation63_spill] sm:$0xff] %v5079_v1 }
 0x420   : > { %642 = vadd.xlane.f32.xlu1 %v641_v29 }
 0x421   : > { %3944 = vset.pattern.permute.xlu2 %v6955_v50 }
 0x422   : > { %1518 = vperm.xlu2 %3944, %v5004_v54  }
 0x424   : > { %v619_v31 = vpop.permute.xlu0 %618 }
 0x425   : > { %v5077_v18 = vpop.permute.xlu2 %1206  ;;  %v644_v29 = vsel %vm640_vm7, %v619_v31, 0.0 }
 0x426   : > { %6971 = vst [vmem:[#allocation62_spill] sm:$0xff] %v5077_v18  ;;  %v6975_v18 = vmov 41  }
 0x42a   : > { %3945 = vset.pattern.permute.xlu2 %v6968_v57 }
 0x42b   : > { %1790 = vperm.xlu2 %3945, %v5004_v54  }
 0x42c   : > { %v5128_v42 = vpop.permute.xlu0 %1818 }
 0x42d   : > { %6982 = vst [vmem:[#allocation70_spill] sm:$0xff] %v5128_v42 }
 0x42f   : > { %v5084_v10 = vpop.permute.xlu2 %1782  ;;  %690 = vadd.xlane.f32.xlu0 %v689_v21  ;;  %v5095_v21 = vpop.permute.xlu1 %1510 }
 0x430   : > { %6973 = vst [vmem:[#allocation64_spill] sm:$0xff] %v5084_v10 }
 0x431   : > { %6976 = vst [vmem:[#allocation65_spill] sm:$0xff] %v5095_v21 }
 0x433   : > { %3946 = vset.pattern.permute.xlu2 %v6974_v27 }
 0x434   : > { %844 = vperm.xlu2 %3946, %v4772_v46  }
 0x435   : > { %v5134_v36 = vpop.permute.xlu0 %1214 }
 0x436   : > { %6984 = vst [vmem:[#allocation72_spill] sm:$0xff] %v5134_v36 }
 0x437   : > { %v668_v8 = vpop.permute.xlu2 %667  ;;  %645 = vadd.xlane.f32.xlu0 %v644_v29 }
 0x438   : > { %v692_v1 = vsel %vm640_vm7, %v668_v8, 0.0  ;;  %v2677_v8 = vld [vmem:[%s6828_s6] sm:$0xff] }
 0x439   : > { %693 = vadd.xlane.f32.xlu1 %v692_v1  ;;  %v5104_v1 = vpop.permute.xlu1 %1814 }
 0x43a   : > { %6977 = vst [vmem:[#allocation66_spill] sm:$0xff] %v5104_v1 }
 0x43c   : > { %624 = vrot.lane.b32.xlu2 %v5047_v25, %s4289_s18 }
 0x43d   : > { %3950 = vset.pattern.permute.xlu2 %v6975_v18 }
 0x43f   : > { %v5093_v45 = vpop.permute.xlu2 %872 }
 0x441   : > { %v5115_v29 = vpop.permute.xlu1 %1514 }
 0x444   : > { %675 = vrot.lane.b32.xlu2 %v5029_v34, %s4291_s19 }
 0x448   : > { %v5099_v10 = vpop.permute.xlu2 %904 }
 0x449   : > { %v670_v1 = vpop.permute.xlu1 %669 }
 0x44b   : > { %1454 = vperm.xlu0 %3957, %v4772_v46  }
 0x44c   : > { %677 = vrot.lane.b32.xlu2 %v5039_v55, %s4291_s19 }
 0x451   : > { %v5109_v31 = vpop.permute.xlu2 %1210  ;;  %v5126_v38 = vpop.permute.xlu1 %1182 }
 0x452   : > { %6978 = vst [vmem:[#allocation67_spill] sm:$0xff] %v5109_v31  ;;  %v695_v31 = vsel %vm640_vm7, %v670_v1, 0.0  ;;  %v6990_v1 = vmov 43  }
 0x453   : > { %2683 = vrot.lane.b32.xlu0 %v2677_v8, %s4296_s22  ;;  %v6980_v8 = vmov 38   ;;  %6981 = vst [vmem:[#allocation69_spill] sm:$0xff] %v5126_v38 }
 0x454   : > { %630 = vrot.lane.b32.xlu2 %v5060_v37, %s4289_s18  ;;  %3968 = vset.pattern.permute.xlu0 %v6942_v40 }
 0x459   : > { %v5132_v6 = vpop.permute.xlu1 %1078 }
 0x45a   : > { %v5117_v21 = vpop.permute.xlu2 %1482  ;;  %6983 = vst [vmem:[#allocation71_spill] sm:$0xff] %v5132_v6  ;;  %v6987_v6 = vmov 49  }
 0x45b   : > { %816 = vperm.xlu0 %3968, %v4779_v53  }
 0x45c   : > { %1118 = vperm.xlu2 %3950, %v4772_v46  }
 0x461   : > { %v5136_v59 = vpop.permute.xlu1 %1822 }
 0x462   : > { %6985 = vst [vmem:[#allocation73_spill] sm:$0xff] %v5136_v59 }
 0x463   : > { %v5121_v56 = vpop.permute.xlu2 %1786  ;;  %3973 = vset.pattern.permute.xlu0 %v6962_v12 }
 0x464   : > { %6979 = vst [vmem:[#allocation68_spill] sm:$0xff] %v5121_v56  ;;  %1154 = vperm.xlu0 %3973, %v4779_v53   ;;  %3952 = vset.pattern.permute.xlu2 %v6980_v8  ;;  %v5138_v56 = vpop.permute.xlu0 %1046 }
 0x465   : > { %6986 = vst [vmem:[#allocation74_spill] sm:$0xff] %v5138_v56 }
 0x469   : > { %v623_v38 = vpop.permute.xlu1 %622 }
 0x46b   : > { %v621_v32 = vpop.permute.xlu2 %620 }
 0x46c   : > { %v647_v41 = vsel %vm640_vm7, %v621_v32, 0.0  ;;  %3978 = vset.pattern.permute.xlu0 %v6955_v50  ;;  %v672_v42 = vpop.permute.xlu0 %671  ;;  %v650_v32 = vsel %vm640_vm7, %v623_v38, 0.0  ;;  %v6988_v38 = vmov 35  }
 0x46d   : > { %648 = vadd.xlane.f32.xlu1 %v647_v41  ;;  %v698_v41 = vsel %vm640_vm7, %v672_v42, 0.0  ;;  %v6989_v42 = vmov 39  }
 0x485   : > { %696 = vadd.xlane.f32.xlu2 %v695_v31  ;;  %v5165_v31 = vpop.permute.xlu2 %1486 }
 0x486   : > { %880 = vperm.xlu1 %3953, %v5019_v60   ;;  %6991 = vst [vmem:[#allocation75_spill] sm:$0xff] %v5165_v31  ;;  %v674_v31 = vpop.permute.xlu1 %673 }
 0x48d   : > { %651 = vadd.xlane.f32.xlu2 %v650_v32  ;;  %v627_v32 = vpop.permute.xlu0 %626  ;;  %v5173_v56 = vpop.permute.xlu2 %1518 }
 0x48e   : > { %3954 = vset.pattern.permute.xlu1 %v6964_v4  ;;  %699 = vadd.xlane.f32.xlu0 %v698_v41  ;;  %v656_v41 = vsel %vm640_vm7, %v627_v32, 0.0  ;;  %6992 = vst [vmem:[#allocation76_spill] sm:$0xff] %v5173_v56  ;;  %v6995_v32 = vmov 34   ;;  %v701_v56 = vsel %vm640_vm7, %v674_v31, 0.0 }
 0x48f   : > { %912 = vperm.xlu1 %3954, %v5019_v60  }
 0x495   : > { %v629_v59 = vpop.permute.xlu0 %628 }
 0x497   : > { %3955 = vset.pattern.permute.xlu1 %v6987_v6 }
 0x498   : > { %1186 = vperm.xlu1 %3955, %v5019_v60  }
 0x49d   : > { %v5206_v36 = vpop.permute.xlu0 %679 }
 0x49e   : > { %6998 = vst [vmem:[#allocation81_spill] sm:$0xff] %v5206_v36 }
 0x4a0   : > { %3956 = vset.pattern.permute.xlu1 %v6965_v26 }
 0x4a1   : > { %1218 = vperm.xlu1 %3956, %v5019_v60  }
 0x4a2   : > { %1526 = vperm.xlu0 %3978, %v5047_v25  }
 0x4a5   : > { %1366 = vperm.xlu2 %3952, %v4535_v48  }
 0x4a9   : > { %3958 = vset.pattern.permute.xlu1 %v6966_v30  ;;  %v5179_v30 = vpop.permute.xlu2 %1790 }
 0x4aa   : > { %1490 = vperm.xlu1 %3958, %v5019_v60   ;;  %3990 = vset.pattern.permute.xlu0 %v6974_v27  ;;  %6993 = vst [vmem:[#allocation77_spill] sm:$0xff] %v5179_v30 }
 0x4ad   : > { %1382 = vperm.xlu2 %3952, %v4772_v46  }
 0x4b2   : > { %3959 = vset.pattern.permute.xlu1 %v6955_v50 }
 0x4b3   : > { %1522 = vperm.xlu1 %3959, %v5019_v60  }
 0x4b5   : > { %3960 = vset.pattern.permute.xlu2 %v6988_v38 }
 0x4b6   : > { %1654 = vperm.xlu2 %3960, %v4772_v46  }
 0x4bb   : > { %3961 = vset.pattern.permute.xlu1 %v6989_v42 }
 0x4bc   : > { %1686 = vperm.xlu1 %3961, %v4772_v46  }
 0x4be   : > { %3962 = vset.pattern.permute.xlu2 %v6990_v1 }
 0x4bf   : > { %1726 = vperm.xlu2 %3962, %v4772_v46  }
 0x4c4   : > { %3963 = vset.pattern.permute.xlu1 %v6934_v58 }
 0x4c5   : > { %1758 = vperm.xlu1 %3963, %v4772_v46  }
 0x4c7   : > { %3964 = vset.pattern.permute.xlu2 %v6968_v57 }
 0x4c8   : > { %1794 = vperm.xlu2 %3964, %v5019_v60  }
 0x4cc   : > { %657 = vadd.xlane.f32.xlu0 %v656_v41 }
 0x4cd   : > { %3965 = vset.pattern.permute.xlu1 %v6960_v63 }
 0x4ce   : > { %1826 = vperm.xlu1 %3965, %v5019_v60   ;;  %v5187_v60 = vpop.permute.xlu2 %844 }
 0x4cf   : > { %6994 = vst [vmem:[#allocation78_spill] sm:$0xff] %v5187_v60 }
 0x4d0   : > { %3966 = vset.pattern.permute.xlu2 %v6941_v23 }
 0x4d1   : > { %742 = vperm.xlu2 %3966, %v4779_v53  }
 0x4d6   : > { %3967 = vset.pattern.permute.xlu1 %v6936_v43 }
 0x4d7   : > { %776 = vperm.xlu1 %3967, %v4779_v53  }
 0x4d9   : > { %3969 = vset.pattern.permute.xlu2 %v6974_v27  ;;  %v625_v27 = vpop.permute.xlu2 %624 }
 0x4da   : > { %848 = vperm.xlu2 %3969, %v4779_v53  }
 0x4df   : > { %3970 = vset.pattern.permute.xlu1 %v6956_v3 }
 0x4e0   : > { %1050 = vperm.xlu1 %3970, %v4779_v53   ;;  %828 = vperm.xlu0 %3990, %v4535_v48  }
 0x4e1   : > { %v5196_v41 = vpop.permute.xlu2 %675 }
 0x4e2   : > { %3971 = vset.pattern.permute.xlu2 %v6957_v44  ;;  %6996 = vst [vmem:[#allocation79_spill] sm:$0xff] %v5196_v41  ;;  %v5210_v41 = vpop.xlane.xlu0 %690 }
 0x4e3   : > { %1082 = vperm.xlu2 %3971, %v4779_v53   ;;  %7000 = vst [vmem:[#allocation83_spill] sm:$0xff] %v5210_v41 }
 0x4e8   : > { %3972 = vset.pattern.permute.xlu1 %v6975_v18  ;;  %832 = vperm.xlu0 %3990, %v4570_v0   ;;  %v653_v0 = vsel %vm640_vm7, %v625_v27, 0.0  ;;  %v5216_v27 = vpop.permute.xlu1 %1150 }
 0x4e9   : > { %1122 = vperm.xlu1 %3972, %v4779_v53   ;;  %v5200_v60 = vpop.permute.xlu2 %677  ;;  %7002 = vst [vmem:[#allocation85_spill] sm:$0xff] %v5216_v27 }
 0x4eb   : > { %3974 = vset.pattern.permute.xlu2 %v6987_v6 }
 0x4f0   : > { %852 = vperm.xlu0 %3990, %v4875_v51  }
 0x4f1   : > { %3975 = vset.pattern.permute.xlu1 %v6995_v32  ;;  %v5202_v30 = vpop.permute.xlu2 %630 }
 0x4f2   : > { %6997 = vst [vmem:[#allocation80_spill] sm:$0xff] %v5202_v30 }
 0x4f8   : > { %856 = vperm.xlu0 %3990, %v4830_v22  }
 0x4f9   : > { %v5208_v50 = vpop.permute.xlu2 %1118 }
 0x4fa   : > { %6999 = vst [vmem:[#allocation82_spill] sm:$0xff] %v5208_v50 }
 0x500   : > { %4010 = vset.pattern.permute.xlu0 %v6980_v8  ;;  %v659_v8 = vsel %vm640_vm7, %v629_v59, 0.0 }
 0x501   : > { %v5212_v32 = vpop.xlane.xlu2 %696 }
 0x502   : > { %7001 = vst [vmem:[#allocation84_spill] sm:$0xff] %v5212_v32 }
 0x509   : > { %v5220_v30 = vpop.xlane.xlu2 %651 }
 0x50a   : > { %7003 = vst [vmem:[#allocation86_spill] sm:$0xff] %v5220_v30 }
 0x50c   : > { %654 = vadd.xlane.f32.xlu2 %v653_v0  ;;  %v5218_v0 = vpop.xlane.xlu0 %645 }
 0x50d   : > { %4099 = vrcp.f32 %v5218_v0  ;;  %v1542_v0 = vsel %vm278_vm8, %v5117_v21, %v5115_v29 }
 0x511   : > { %v5228_v50 = vpop.permute.xlu2 %1366 }
 0x513   : > { %702 = vadd.xlane.f32.xlu1 %v701_v56  ;;  %v5224_v56 = vpop.xlane.xlu1 %642  ;;  %v4100_v29 = vpop.eup %4099 }
 0x514   : > { %7004 = vst [vmem:[#allocation87_spill] sm:$0xff] %v5224_v56  ;;  %v5226_v31 = vpop.permute.xlu0 %1454 }
 0x515   : > { %7005 = vst [vmem:[#allocation88_spill] sm:$0xff] %v5226_v31 }
 0x51b   : > { %v5233_v59 = vpop.xlane.xlu1 %693 }
 0x51c   : > { %4101 = vrcp.f32 %v5233_v59 }
 0x522   : > { %660 = vadd.xlane.f32.xlu0 %v659_v8  ;;  %v5237_v8 = vpop.permute.xlu2 %1382 }
 0x523   : > { %7007 = vst [vmem:[#allocation90_spill] sm:$0xff] %v5237_v8  ;;  %v5243_v31 = vpop.xlane.xlu1 %648 }
 0x524   : > { %1174 = vperm.xlu2 %3974, %v4981_v2   ;;  %v5235_v2 = vpop.permute.xlu0 %2683  ;;  %7009 = vst [vmem:[#allocation91_spill] sm:$0xff] %v5243_v31 }
 0x525   : > { %7006 = vst [vmem:[#allocation89_spill] sm:$0xff] %v5235_v2 }
 0x52a   : > { %v5248_v30 = vpop.permute.xlu2 %1654 }
 0x52b   : > { %7011 = vst [vmem:[#allocation93_spill] sm:$0xff] %v5248_v30  ;;  %v5253_v8 = vpop.permute.xlu1 %880 }
 0x52c   : > { %1334 = vperm.xlu1 %3975, %v4535_v48   ;;  %1178 = vperm.xlu2 %3974, %v4989_v61   ;;  %v7008_v61 = vmov 42   ;;  %v5245_v27 = vpop.permute.xlu0 %816  ;;  %7012 = vst [vmem:[#allocation94_spill] sm:$0xff] %v5253_v8 }
 0x52d   : > { %7010 = vst [vmem:[#allocation92_spill] sm:$0xff] %v5245_v27 }
 0x532   : > { %v5261_v27 = vpop.permute.xlu2 %1726 }
 0x533   : > { %7014 = vst [vmem:[#allocation96_spill] sm:$0xff] %v5261_v27  ;;  %v5264_v30 = vpop.permute.xlu1 %912 }
 0x534   : > { %1342 = vperm.xlu1 %3975, %v4715_v20   ;;  %1190 = vperm.xlu2 %3974, %v5047_v25   ;;  %v5256_v2 = vpop.permute.xlu0 %1154  ;;  %7015 = vst [vmem:[#allocation97_spill] sm:$0xff] %v5264_v30 }
 0x535   : > { %7013 = vst [vmem:[#allocation95_spill] sm:$0xff] %v5256_v2 }
 0x536   : > { %1374 = vperm.xlu0 %4010, %v4715_v20  }
 0x53a   : > { %v5273_v2 = vpop.permute.xlu2 %1794 }
 0x53b   : > { %7017 = vst [vmem:[#allocation99_spill] sm:$0xff] %v5273_v2  ;;  %v5275_v8 = vpop.permute.xlu1 %1186 }
 0x53c   : > { %1350 = vperm.xlu1 %3975, %v4772_v46   ;;  %3976 = vset.pattern.permute.xlu2 %v7008_v61  ;;  %v5266_v36 = vpop.xlane.xlu0 %699  ;;  %7018 = vst [vmem:[#allocation100_spill] sm:$0xff] %v5275_v8  ;;  %v1094_v46 = vsel %vm278_vm8, %v4803_v9, %v4832_v28  ;;  %v1774_v9 = vsel %vm278_vm8, %v4841_v47, %v4861_v16 }
 0x53d   : > { %1426 = vperm.xlu2 %3976, %v4779_v53   ;;  %7016 = vst [vmem:[#allocation98_spill] sm:$0xff] %v5266_v36 }
 0x53e   : > { %1378 = vperm.xlu0 %4010, %v4740_v24  }
 0x542   : > { %v5285_v36 = vpop.permute.xlu2 %742 }
 0x543   : > { %7020 = vst [vmem:[#allocation102_spill] sm:$0xff] %v5285_v36  ;;  %v5287_v30 = vpop.permute.xlu1 %1218 }
 0x544   : > { %1354 = vperm.xlu1 %3975, %v4779_v53   ;;  %v5277_v27 = vpop.permute.xlu0 %1526  ;;  %7021 = vst [vmem:[#allocation103_spill] sm:$0xff] %v5287_v30  ;;  %v1166_v30 = vsel %vm278_vm8, %v4809_v11, %v4839_v39 }
 0x545   : > { %3979 = vset.pattern.permute.xlu2 %v6989_v42  ;;  %7019 = vst [vmem:[#allocation101_spill] sm:$0xff] %v5277_v27 }
 0x546   : > { %1690 = vperm.xlu2 %3979, %v4779_v53   ;;  %1386 = vperm.xlu0 %4010, %v4779_v53  }
 0x54a   : > { %v5296_v27 = vpop.permute.xlu2 %848 }
 0x54b   : > { %7023 = vst [vmem:[#allocation105_spill] sm:$0xff] %v5296_v27 }
 0x54c   : > { %3977 = vset.pattern.permute.xlu1 %v6958_v52  ;;  %v5289_v2 = vpop.xlane.xlu0 %657 }
 0x54d   : > { %1458 = vperm.xlu1 %3977, %v4779_v53   ;;  %7022 = vst [vmem:[#allocation104_spill] sm:$0xff] %v5289_v2 }
 0x54e   : > { %3981 = vset.pattern.permute.xlu2 %v6934_v58  ;;  %1390 = vperm.xlu0 %4010, %v4875_v51  }
 0x54f   : > { %1762 = vperm.xlu2 %3981, %v4779_v53  }
 0x552   : > { %v5307_v2 = vpop.permute.xlu2 %1082 }
 0x553   : > { %7025 = vst [vmem:[#allocation107_spill] sm:$0xff] %v5307_v2  ;;  %v5322_v2 = vld [vmem:[%s6826_s4 + $0x18] ss:$0 sm:$0xff] }
 0x554   : > { %v5298_v8 = vpop.permute.xlu0 %828  ;;  %v1886_v16 = vsub.f32 %v1774_v9, %v5322_v2 }
 0x555   : > { %3980 = vset.pattern.permute.xlu1 %v6990_v1 }
 0x556   : > { %1730 = vperm.xlu1 %3980, %v4779_v53   ;;  %1394 = vperm.xlu0 %4010, %v4830_v22   ;;  %v1894_v31 = vand.u32 2147483647, %v1886_v16  ;;  %v932_v16 = vsel %vm278_vm8, %v5093_v45, %v5099_v10 }
 0x557   : > { %3983 = vset.pattern.permute.xlu2 %v6941_v23 }
 0x558   : > { %747 = vperm.xlu2 %3983, %v4875_v51   ;;  %v1902_v56 = vsub.f32 1.0, %v1894_v31 }
 0x55c   : > { %v833_v36 = vpop.permute.xlu0 %832 }
 0x55e   : > { %3982 = vset.pattern.permute.xlu1 %v6960_v63  ;;  %4017 = vset.pattern.permute.xlu0 %v6968_v57  ;;  %v5300_v57 = vpop.permute.xlu1 %1490 }
 0x55f   : > { %1830 = vperm.xlu1 %3982, %v5047_v25   ;;  %1798 = vperm.xlu0 %4017, %v5047_v25   ;;  %7024 = vst [vmem:[#allocation106_spill] sm:$0xff] %v5300_v57  ;;  %v860_v57 = vsel %vm278_vm8, %v4821_v15, %v833_v36  ;;  %v5337_v36 = vld [vmem:[%s6826_s4 + $0x17] ss:$0 sm:$0xff] }
 0x560   : > { %3985 = vset.pattern.permute.xlu2 %v6942_v40  ;;  %v974_v15 = vsub.f32 %v860_v57, %v5322_v2  ;;  %v1470_v57 = vsel %vm278_vm8, %v4857_v33, %v4823_v17 }
 0x561   : > { %820 = vperm.xlu2 %3985, %v4875_v51   ;;  %v1582_v17 = vsub.f32 %v1470_v57, %v5322_v2 }
 0x566   : > { %v5312_v27 = vpop.permute.xlu1 %1522 }
 0x567   : > { %3984 = vset.pattern.permute.xlu1 %v6936_v43  ;;  %1802 = vperm.xlu0 %4017, %v5029_v34   ;;  %7026 = vst [vmem:[#allocation108_spill] sm:$0xff] %v5312_v27  ;;  %v788_v27 = vsel %vm278_vm8, %v4815_v13, %v4795_v62  ;;  %v1398_v62 = vsel %vm278_vm8, %v4817_v14, %v4846_v7  ;;  %v982_v7 = vand.u32 2147483647, %v974_v15 }
 0x568   : > { %780 = vperm.xlu1 %3984, %v4875_v51   ;;  %v941_v11 = vsub.f32 %v788_v27, %v5337_v36  ;;  %v1278_v13 = vsub.f32 %v1166_v30, %v5322_v2  ;;  %v1246_v14 = vsub.f32 %v1094_v46, %v5337_v36  ;;  %v1550_v28 = vsub.f32 %v1398_v62, %v5337_v36 }
 0x569   : > { %3987 = vset.pattern.permute.xlu2 %v6957_v44  ;;  %v1702_v30 = vsel %vm278_vm8, %v4836_v35, %v4853_v19  ;;  %v1590_v35 = vand.u32 2147483647, %v1582_v17 }
 0x56a   : > { %1086 = vperm.xlu2 %3987, %v4875_v51   ;;  %v949_v33 = vand.u32 2147483647, %v941_v11  ;;  %v1286_v27 = vand.u32 2147483647, %v1278_v13  ;;  %v1254_v46 = vand.u32 2147483647, %v1246_v14  ;;  %v1854_v15 = vsub.f32 %v1702_v30, %v5337_v36 }
 0x56b   : > { %v1558_v62 = vand.u32 2147483647, %v1550_v28  ;;  %v1598_v32 = vsub.f32 1.0, %v1590_v35  ;;  %v7032_v35 = vld [vmem:[#allocation68_spill] sm:$0xff] }
 0x56c   : > { %v957_v19 = vsub.f32 1.0, %v949_v33  ;;  %v1294_v24 = vsub.f32 1.0, %v1286_v27  ;;  %v1262_v11 = vsub.f32 1.0, %v1254_v46  ;;  %v1862_v9 = vand.u32 2147483647, %v1854_v15  ;;  %v5382_v33 = vpop.permute.xlu0 %852  ;;  %v7031_v15 = vld [vmem:[#allocation70_spill] sm:$0xff] }
 0x56d   : > { %v1566_v13 = vsub.f32 1.0, %v1558_v62  ;;  %v1606_v27 = vmax.f32 %v1598_v32, 0.0  ;;  %v1846_v10 = vsel %vm278_vm8, %v7032_v35, %v7031_v15 }
 0x56e   : > { %v5370_v47 = vpop.permute.xlu1 %1686  ;;  %v965_v14 = vmax.f32 %v957_v19, 0.0  ;;  %v1302_v28 = vmax.f32 %v1294_v24, 0.0  ;;  %v1270_v30 = vmax.f32 %v1262_v11, 0.0  ;;  %v1870_v41 = vsub.f32 1.0, %v1862_v9  ;;  %v4102_v11 = vpop.eup %4101 }
 0x56f   : > { %1806 = vperm.xlu0 %4017, %v5039_v55   ;;  %7028 = vst [vmem:[#allocation110_spill] sm:$0xff] %v5370_v47 }
 0x570   : > { %3986 = vset.pattern.permute.xlu1 %v6956_v3  ;;  %v1310_v24 = vmul.f32 %v1302_v28, %v1270_v30  ;;  %v1878_v32 = vmax.f32 %v1870_v41, 0.0  ;;  %v1958_v30 = vsel %vm278_vm8, %v4100_v29, %v4102_v11 }
 0x571   : > { %1054 = vperm.xlu1 %3986, %v4875_v51  }
 0x572   : > { %3989 = vset.pattern.permute.xlu2 %v6962_v12 }
 0x573   : > { %1158 = vperm.xlu2 %3989, %v4875_v51  }
 0x574   : > { %v5409_v28 = vpop.permute.xlu0 %856 }
 0x577   : > { %4024 = vset.pattern.permute.xlu0 %v6961_v49 }
 0x578   : > { %876 = vperm.xlu0 %4024, %v5004_v54  }
 0x579   : > { %3988 = vset.pattern.permute.xlu1 %v6975_v18 }
 0x57a   : > { %1126 = vperm.xlu1 %3988, %v4875_v51  }
 0x57b   : > { %3992 = vset.pattern.permute.xlu2 %v6961_v49 }
 0x57c   : > { %888 = vperm.xlu2 %3992, %v5029_v34  }
 0x57f   : > { %v5350_v39 = vpop.xlane.xlu2 %654 }
 0x580   : > { %7027 = vst [vmem:[#allocation109_spill] sm:$0xff] %v5350_v39  ;;  %884 = vperm.xlu0 %4024, %v5047_v25   ;;  %v990_v39 = vsub.f32 1.0, %v982_v7  ;;  %v1574_v7 = vmax.f32 %v1566_v13, 0.0 }
 0x582   : > { %3991 = vset.pattern.permute.xlu1 %v6988_v38  ;;  %v998_v47 = vmax.f32 %v990_v39, 0.0  ;;  %v5378_v38 = vpop.permute.xlu1 %1758  ;;  %v1910_v39 = vmax.f32 %v1902_v56, 0.0  ;;  %v1614_v56 = vmul.f32 %v1606_v27, %v1574_v7 }
 0x583   : > { %7029 = vst [vmem:[#allocation111_spill] sm:$0xff] %v5378_v38  ;;  %v7084_v38 = vld [vmem:[#allocation31_spill] sm:$0xff] }
 0x584   : > { %3993 = vset.pattern.permute.xlu2 %v6964_v4  ;;  %v1006_v17 = vmul.f32 %v998_v47, %v965_v14  ;;  %v7030_v47 = vld [vmem:[#allocation67_spill] sm:$0xff]  ;;  %v1622_v45 = vmul.f32 %v1614_v56, %v1542_v0  ;;  %v1918_v19 = vmul.f32 %v1910_v39, %v1878_v32 }
 0x585   : > { %920 = vperm.xlu2 %3993, %v5029_v34  }
 0x586   : > { %v1014_v59 = vmul.f32 %v1006_v17, %v932_v16  ;;  %v1926_v13 = vmul.f32 %v1918_v19, %v1846_v10  ;;  %v7035_v17 = vmov 34  }
 0x587   : > { %v5375_v57 = vpop.permute.xlu2 %1174 }
 0x588   : > { %896 = vperm.xlu0 %4024, %v5060_v37  }
 0x58a   : > { %v5404_v41 = vpop.permute.xlu1 %1826 }
 0x58b   : > { %7033 = vst [vmem:[#allocation67_spill] sm:$0xff] %v5404_v41 }
 0x58d   : > { %3994 = vset.pattern.permute.xlu2 %v6987_v6 }
 0x58e   : > { %1194 = vperm.xlu2 %3994, %v5029_v34  }
 0x58f   : > { %v1179_v31 = vpop.permute.xlu2 %1178 }
 0x590   : > { %v1238_v46 = vsel %vm278_vm8, %v1179_v31, %v7030_v47  ;;  %4027 = vset.pattern.permute.xlu0 %v6964_v4  ;;  %v7039_v31 = vld [vmem:[#allocation79_spill] sm:$0xff] }
 0x591   : > { %v1318_v62 = vmul.f32 %v1310_v24, %v1238_v46  ;;  %908 = vperm.xlu0 %4027, %v5004_v54   ;;  %v704_v16 = vsel %vm640_vm7, %v7039_v31, 0.0 }
 0x592   : > { %v5420_v24 = vpop.permute.xlu1 %776 }
 0x593   : > { %v1326_v21 = vadd.f32 %v1318_v62, %v1014_v59  ;;  %7038 = vst [vmem:[#allocation113_spill] sm:$0xff] %v5420_v24  ;;  %v7042_v59 = vmov 54  }
 0x595   : > { %v1630_v9 = vadd.f32 %v1622_v45, %v1326_v21  ;;  %v5417_v39 = vpop.xlane.xlu0 %660 }
 0x596   : > { %3995 = vset.pattern.permute.xlu2 %v6965_v26  ;;  %7037 = vst [vmem:[#allocation112_spill] sm:$0xff] %v5417_v39 }
 0x597   : > { %1226 = vperm.xlu2 %3995, %v5029_v34   ;;  %v5407_v14 = vpop.permute.xlu2 %1190  ;;  %v1934_v54 = vadd.f32 %v1926_v13, %v1630_v9 }
 0x598   : > { %7034 = vst [vmem:[#allocation70_spill] sm:$0xff] %v5407_v14  ;;  %v7071_v14 = vld [vmem:[#allocation24_spill] sm:$0xff] }
 0x599   : > { %916 = vperm.xlu0 %4027, %v5047_v25   ;;  %v1966_v7 = vmul.f32 %v1958_v30, %v1934_v54 }
 0x59a   : > { %v5433_v46 = vpop.permute.xlu1 %1050 }
 0x59b   : > { %2014 = vmatmul.f32.vlgmr.msrb.gmra.mxu1 %v1966_v7  ;;  %7040 = vst [vmem:[#allocation79_spill] sm:$0xff] %v5433_v46  ;;  %v7081_v46 = vld [vmem:[#allocation28_spill] sm:$0xff] }
 0x59f   : > { %3996 = vset.pattern.permute.xlu2 %v7035_v17  ;;  %v5415_v27 = vpop.permute.xlu2 %1426 }
 0x5a0   : > { %7036 = vst [vmem:[#allocation68_spill] sm:$0xff] %v5415_v27  ;;  %1358 = vperm.xlu2 %3996, %v4875_v51   ;;  %v2680_v27 = vld [vmem:[%s6824_s2 + $0xd8] sm:$0xff] }
 0x5a1   : > { %928 = vperm.xlu0 %4027, %v5060_v37  }
 0x5a2   : > { %v5442_v62 = vpop.permute.xlu1 %1122 }
 0x5a3   : > { %7043 = vst [vmem:[#allocation115_spill] sm:$0xff] %v5442_v62 }
 0x5a4   : > { %705 = vadd.xlane.f32.xlu1 %v704_v16 }
 0x5a7   : > { %v5425_v0 = vpop.permute.xlu2 %1690 }
 0x5a8   : > { %3997 = vset.pattern.permute.xlu2 %v6958_v52  ;;  %v5428_v47 = vpop.permute.xlu0 %1374 }
 0x5a9   : > { %1462 = vperm.xlu2 %3997, %v4875_v51   ;;  %4028 = vset.pattern.permute.xlu0 %v6965_v26 }
 0x5aa   : > { %1222 = vperm.xlu0 %4028, %v5047_v25   ;;  %v5452_v10 = vpop.xlane.xlu1 %702  ;;  %v7092_v25 = vld [vmem:[#allocation63_spill] sm:$0xff] }
 0x5ab   : > { %7045 = vst [vmem:[#allocation117_spill] sm:$0xff] %v5452_v10 }
 0x5af   : > { %v5435_v32 = vpop.permute.xlu2 %1762 }
 0x5b0   : > { %v5437_v56 = vpop.permute.xlu0 %1378 }
 0x5b1   : > { %7041 = vst [vmem:[#allocation114_spill] sm:$0xff] %v5437_v56  ;;  %3998 = vset.pattern.permute.xlu2 %v7042_v59 }
 0x5b2   : > { %1530 = vperm.xlu2 %3998, %v5029_v34   ;;  %1234 = vperm.xlu0 %4028, %v5060_v37   ;;  %v5461_v21 = vpop.permute.xlu1 %1334 }
 0x5b7   : > { %v5444_v15 = vpop.permute.xlu2 %747 }
 0x5b8   : > { %v5446_v35 = vpop.permute.xlu0 %1386 }
 0x5b9   : > { %7044 = vst [vmem:[#allocation116_spill] sm:$0xff] %v5446_v35  ;;  %v7075_v35 = vld [vmem:[#allocation32_spill] sm:$0xff] }
 0x5ba   : > { %3999 = vset.pattern.permute.xlu2 %v6989_v42  ;;  %4030 = vset.pattern.permute.xlu0 %v7042_v59 }
 0x5bb   : > { %1694 = vperm.xlu2 %3999, %v4875_v51   ;;  %1538 = vperm.xlu0 %4030, %v5060_v37  }
 0x5bd   : > { %1638 = vperm.xlu1 %3991, %v4535_v48   ;;  %v5471_v48 = vpop.permute.xlu1 %1342 }
 0x5be   : > { %v1399_v24 = vsel %vm278_vm8, %v5471_v48, %v5428_v47 }
 0x5bf   : > { %v5455_v45 = vpop.permute.xlu2 %820 }
 0x5c0   : > { %v5457_v19 = vpop.permute.xlu0 %1390 }
 0x5c1   : > { %7046 = vst [vmem:[#allocation118_spill] sm:$0xff] %v5457_v19 }
 0x5c3   : > { %4001 = vset.pattern.permute.xlu2 %v6934_v58 }
 0x5c4   : > { %1766 = vperm.xlu2 %4001, %v4875_v51  }
 0x5c5   : > { %1646 = vperm.xlu1 %3991, %v4715_v20   ;;  %v5482_v54 = vpop.permute.xlu1 %1350 }
 0x5c6   : > { %7050 = vst [vmem:[#allocation122_spill] sm:$0xff] %v5482_v54  ;;  %v7083_v54 = vld [vmem:[#allocation43_spill] sm:$0xff] }
 0x5c7   : > { %v5464_v29 = vpop.permute.xlu2 %1086 }
 0x5c8   : > { %v5466_v11 = vpop.permute.xlu0 %1394 }
 0x5c9   : > { %7047 = vst [vmem:[#allocation119_spill] sm:$0xff] %v5466_v11 }
 0x5cc   : > { %4003 = vset.pattern.permute.xlu2 %v6941_v23 }
 0x5cd   : > { %1658 = vperm.xlu1 %3991, %v4779_v53   ;;  %752 = vperm.xlu2 %4003, %v4830_v22  }
 0x5cf   : > { %v5473_v13 = vpop.permute.xlu2 %1158 }
 0x5d1   : > { %v5475_v9 = vpop.permute.xlu0 %1798 }
 0x5d2   : > { %7048 = vst [vmem:[#allocation120_spill] sm:$0xff] %v5475_v9 }
 0x5d5   : > { %1662 = vperm.xlu1 %3991, %v4875_v51   ;;  %4005 = vset.pattern.permute.xlu2 %v6942_v40  ;;  %v5494_v40 = vpop.permute.xlu1 %1354 }
 0x5d6   : > { %824 = vperm.xlu2 %4005, %v4830_v22   ;;  %7053 = vst [vmem:[#allocation125_spill] sm:$0xff] %v5494_v40  ;;  %v7073_v40 = vld [vmem:[#allocation22_spill] sm:$0xff] }
 0x5d7   : > { %v5480_v20 = vpop.permute.xlu2 %888 }
 0x5d8   : > { %7049 = vst [vmem:[#allocation121_spill] sm:$0xff] %v5480_v20 }
 0x5d9   : > { %v5484_v23 = vpop.permute.xlu0 %1802 }
 0x5dd   : > { %4000 = vset.pattern.permute.xlu1 %v6990_v1 }
 0x5de   : > { %1734 = vperm.xlu1 %4000, %v4875_v51   ;;  %4007 = vset.pattern.permute.xlu2 %v6957_v44  ;;  %v5504_v44 = vpop.permute.xlu1 %1458 }
 0x5df   : > { %1090 = vperm.xlu2 %4007, %v4830_v22   ;;  %v5490_v53 = vpop.permute.xlu2 %920  ;;  %7055 = vst [vmem:[#allocation127_spill] sm:$0xff] %v5504_v44 }
 0x5e0   : > { %7051 = vst [vmem:[#allocation123_spill] sm:$0xff] %v5490_v53 }
 0x5e1   : > { %v5492_v30 = vpop.permute.xlu0 %1806 }
 0x5e2   : > { %7052 = vst [vmem:[#allocation124_spill] sm:$0xff] %v5492_v30 }
 0x5e6   : > { %4002 = vset.pattern.permute.xlu1 %v6960_v63 }
 0x5e7   : > { %1834 = vperm.xlu1 %4002, %v5029_v34   ;;  %4009 = vset.pattern.permute.xlu2 %v6962_v12  ;;  %v5514_v12 = vpop.permute.xlu1 %1730 }
 0x5e8   : > { %1162 = vperm.xlu2 %4009, %v4830_v22   ;;  %v5500_v7 = vpop.permute.xlu2 %1194 }
 0x5e9   : > { %7054 = vst [vmem:[#allocation126_spill] sm:$0xff] %v5500_v7 }
 0x5ea   : > { %v5502_v31 = vpop.permute.xlu0 %876 }
 0x5ef   : > { %4004 = vset.pattern.permute.xlu1 %v6936_v43 }
 0x5f0   : > { %784 = vperm.xlu1 %4004, %v4830_v22   ;;  %4012 = vset.pattern.permute.xlu2 %v6961_v49  ;;  %v5522_v49 = vpop.permute.xlu1 %1830 }
 0x5f1   : > { %892 = vperm.xlu2 %4012, %v5039_v55   ;;  %v5510_v16 = vpop.permute.xlu2 %1226  ;;  %7059 = vst [vmem:[#allocation131_spill] sm:$0xff] %v5522_v49  ;;  %v7064_v49 = vld [vmem:[#allocation15_spill] sm:$0xff] }
 0x5f2   : > { %7056 = vst [vmem:[#allocation128_spill] sm:$0xff] %v5510_v16  ;;  %v5512_v11 = vpop.permute.xlu0 %884 }
 0x5f3   : > { %7057 = vst [vmem:[#allocation129_spill] sm:$0xff] %v5512_v11  ;;  %v7069_v11 = vld [vmem:[#allocation16_spill] sm:$0xff] }
 0x5f8   : > { %4006 = vset.pattern.permute.xlu1 %v6956_v3 }
 0x5f9   : > { %1058 = vperm.xlu1 %4006, %v4830_v22   ;;  %4013 = vset.pattern.permute.xlu2 %v6964_v4  ;;  %v5533_v4 = vpop.permute.xlu1 %780 }
 0x5fa   : > { %924 = vperm.xlu2 %4013, %v5039_v55   ;;  %v5520_v43 = vpop.permute.xlu2 %1358  ;;  %v897_v30 = vpop.permute.xlu0 %896 }
 0x5fb   : > { %7058 = vst [vmem:[#allocation130_spill] sm:$0xff] %v5520_v43 }
 0x601   : > { %4008 = vset.pattern.permute.xlu1 %v6975_v18  ;;  %v5546_v9 = vpop.permute.xlu1 %1054 }
 0x602   : > { %1130 = vperm.xlu1 %4008, %v4830_v22   ;;  %4014 = vset.pattern.permute.xlu2 %v6987_v6 }
 0x603   : > { %1198 = vperm.xlu2 %4014, %v5039_v55   ;;  %v5528_v3 = vpop.permute.xlu2 %1462  ;;  %v5530_v20 = vpop.permute.xlu0 %908 }
 0x604   : > { %7060 = vst [vmem:[#allocation132_spill] sm:$0xff] %v5528_v3  ;;  %v7067_v3 = vld [vmem:[#allocation18_spill] sm:$0xff] }
 0x609   : > { %v5563_v19 = vpop.permute.xlu1 %1126 }
 0x60a   : > { %4011 = vset.pattern.permute.xlu1 %v7008_v61 }
 0x60b   : > { %4015 = vset.pattern.permute.xlu2 %v6965_v26  ;;  %v5536_v53 = vpop.permute.xlu0 %916  ;;  %v7063_v26 = vld [vmem:[#allocation21_spill] sm:$0xff] }
 0x60c   : > { %7061 = vst [vmem:[#allocation133_spill] sm:$0xff] %v5536_v53  ;;  %1230 = vperm.xlu2 %4015, %v5039_v55   ;;  %v5539_v18 = vpop.permute.xlu2 %1530  ;;  %v1093_v43 = vsel %vm278_vm8, %v7064_v49, %v7063_v26  ;;  %v859_v49 = vsel %vm278_vm8, %v7067_v3, %v5298_v8  ;;  %v7068_v26 = vld [vmem:[#allocation14_spill] sm:$0xff]  ;;  %v7072_v3 = vld [vmem:[#allocation25_spill] sm:$0xff] }
 0x60d   : > { %7062 = vst [vmem:[#allocation134_spill] sm:$0xff] %v5539_v18  ;;  %v7065_v18 = vld [vmem:[#allocation23_spill] sm:$0xff]  ;;  %v1245_v10 = vsub.f32 %v1093_v43, %v5337_v36  ;;  %v787_v53 = vsel %vm278_vm8, %v7069_v11, %v7068_v26  ;;  %v973_v26 = vsub.f32 %v859_v49, %v5322_v2 }
 0x613   : > { %v929_v7 = vpop.permute.xlu0 %928 }
 0x614   : > { %4016 = vset.pattern.permute.xlu2 %v7035_v17  ;;  %v5544_v16 = vsel %vm278_vm8, %v897_v30, %v929_v7  ;;  %v7066_v30 = vld [vmem:[#allocation17_spill] sm:$0xff] }
 0x615   : > { %1362 = vperm.xlu2 %4016, %v4830_v22   ;;  %v5549_v61 = vpop.permute.xlu2 %1694  ;;  %v1165_v7 = vsel %vm278_vm8, %v7066_v30, %v7065_v18  ;;  %v2681_v18 = vld [vmem:[%s6824_s2 + $0x138] sm:$0xff] }
 0x616   : > { %v1277_v43 = vsub.f32 %v1165_v7, %v5322_v2  ;;  %v7070_v30 = vld [vmem:[#allocation20_spill] sm:$0xff]  ;;  %2700 = vmatpush.msra.mxu0 %v2681_v18  ;;  %v1253_v18 = vand.u32 2147483647, %v1245_v10 }
 0x617   : > { %v1469_v8 = vsel %vm278_vm8, %v7071_v14, %v7070_v30  ;;  %v940_v14 = vsub.f32 %v787_v53, %v5337_v36 }
 0x618   : > { %2701 = vmatpush.msra.mxu0 %v2680_v27  ;;  %v1581_v30 = vsub.f32 %v1469_v8, %v5322_v2  ;;  %v2679_v27 = vld [vmem:[%s6824_s2 + $0x78] sm:$0xff]  ;;  %v1285_v10 = vand.u32 2147483647, %v1277_v43 }
 0x61a   : > { %2702 = vmatpush.msra.mxu0 %v2679_v27 }
 0x61d   : > { %4018 = vset.pattern.permute.xlu2 %v6958_v52  ;;  %v1397_v52 = vsel %vm278_vm8, %v5461_v21, %v5228_v50  ;;  %v1773_v50 = vsel %vm278_vm8, %v7073_v40, %v7072_v3  ;;  %v7074_v21 = vld [vmem:[#allocation29_spill] sm:$0xff]  ;;  %v7076_v40 = vld [vmem:[#allocation30_spill] sm:$0xff]  ;;  %v7077_v3 = vld [vmem:[#allocation40_spill] sm:$0xff] }
 0x61e   : > { %1466 = vperm.xlu2 %4018, %v4830_v22   ;;  %v5557_v17 = vpop.permute.xlu2 %1766  ;;  %v1167_v11 = vsel %vm278_vm8, %v7075_v35, %v7074_v21  ;;  %v1549_v7 = vsub.f32 %v1397_v52, %v5337_v36  ;;  %v789_v44 = vsel %vm278_vm8, %v7077_v3, %v7076_v40  ;;  %v7078_v35 = vld [vmem:[#allocation41_spill] sm:$0xff]  ;;  %v7079_v21 = vld [vmem:[#allocation27_spill] sm:$0xff]  ;;  %v7080_v52 = vld [vmem:[#allocation42_spill] sm:$0xff]  ;;  %v1885_v53 = vsub.f32 %v1773_v50, %v5322_v2 }
 0x61f   : > { %v861_v49 = vsel %vm278_vm8, %v7079_v21, %v7078_v35  ;;  %v1095_v62 = vsel %vm278_vm8, %v7081_v46, %v7080_v52  ;;  %v1279_v8 = vsub.f32 %v1167_v11, %v5322_v2  ;;  %v981_v40 = vand.u32 2147483647, %v973_v26  ;;  %v5619_v35 = vpop.xlane.xlu1 %705  ;;  %v2678_v46 = vld [vmem:[%s6824_s2 + $0x18] sm:$0xff] }
 0x620   : > { %v1557_v3 = vand.u32 2147483647, %v1549_v7  ;;  %7082 = vst [vmem:[#allocation21_spill] sm:$0xff] %v5619_v35  ;;  %v942_v43 = vsub.f32 %v789_v44, %v5337_v36  ;;  %v975_v50 = vsub.f32 %v861_v49, %v5322_v2  ;;  %v1247_v11 = vsub.f32 %v1095_v62, %v5337_v36  ;;  %2703 = vmatpush.msra.mxu0 %v2678_v46 }
 0x621   : > { %v1261_v26 = vsub.f32 1.0, %v1253_v18  ;;  %v1589_v7 = vand.u32 2147483647, %v1581_v30  ;;  %v1293_v52 = vsub.f32 1.0, %v1285_v10  ;;  %v1893_v27 = vand.u32 2147483647, %v1885_v53 }
 0x622   : > { %v1287_v35 = vand.u32 2147483647, %v1279_v8  ;;  %v1471_v44 = vsel %vm278_vm8, %v7084_v38, %v7083_v54  ;;  %v989_v49 = vsub.f32 1.0, %v981_v40  ;;  %v1565_v41 = vsub.f32 1.0, %v1557_v3  ;;  %v7085_v38 = vld [vmem:[#allocation34_spill] sm:$0xff]  ;;  %v7086_v54 = vld [vmem:[#allocation44_spill] sm:$0xff] }
 0x623   : > { %v707_v62 = vsel %vm640_vm7, %v5200_v60, 0.0  ;;  %v983_v18 = vand.u32 2147483647, %v975_v50  ;;  %v1255_v30 = vand.u32 2147483647, %v1247_v11  ;;  %v1597_v53 = vsub.f32 1.0, %v1589_v7 }
 0x624   : > { %v1551_v8 = vsub.f32 %v1399_v24, %v5337_v36  ;;  %v1269_v46 = vmax.f32 %v1261_v26, 0.0  ;;  %v1301_v47 = vmax.f32 %v1293_v52, 0.0  ;;  %v1901_v48 = vsub.f32 1.0, %v1893_v27  ;;  %v7088_v24 = vld [vmem:[#allocation26_spill] sm:$0xff] }
 0x625   : > { %v1583_v56 = vsub.f32 %v1471_v44, %v5322_v2  ;;  %v1295_v39 = vsub.f32 1.0, %v1287_v35  ;;  %v1775_v40 = vsel %vm278_vm8, %v7086_v54, %v7085_v38  ;;  %v997_v60 = vmax.f32 %v989_v49, 0.0 }
 0x626   : > { %4019 = vset.pattern.permute.xlu2 %v7042_v59  ;;  %v948_v59 = vand.u32 2147483647, %v940_v14  ;;  %v950_v14 = vand.u32 2147483647, %v942_v43  ;;  %v1573_v3 = vmax.f32 %v1565_v41, 0.0  ;;  %v7087_v50 = vmov 35  }
 0x627   : > { %1534 = vperm.xlu2 %4019, %v5039_v55   ;;  %v5622_v21 = vpop.permute.xlu2 %752  ;;  %v1263_v7 = vsub.f32 1.0, %v1255_v30  ;;  %v1605_v27 = vmax.f32 %v1597_v53, 0.0  ;;  %v1559_v44 = vand.u32 2147483647, %v1551_v8  ;;  %v1591_v41 = vand.u32 2147483647, %v1583_v56 }
 0x628   : > { %v956_v10 = vsub.f32 1.0, %v948_v59  ;;  %v958_v11 = vsub.f32 1.0, %v950_v14  ;;  %v991_v59 = vsub.f32 1.0, %v983_v18  ;;  %v1309_v38 = vmul.f32 %v1301_v47, %v1269_v46  ;;  %v7089_v14 = vld [vmem:[#allocation62_spill] sm:$0xff]  ;;  %v7090_v8 = vld [vmem:[#allocation83_spill] sm:$0xff]  ;;  %v7091_v47 = vld [vmem:[#allocation65_spill] sm:$0xff] }
 0x629   : > { %v1237_v18 = vsel %vm278_vm8, %v5375_v57, %v7089_v14  ;;  %v1909_v30 = vmax.f32 %v1901_v48, 0.0  ;;  %v1271_v53 = vmax.f32 %v1263_v7, 0.0  ;;  %4103 = vrcp.f32 %v7090_v8  ;;  %v7093_v48 = vld [vmem:[#allocation61_spill] sm:$0xff]  ;;  %v7100_v8 = vld [vmem:[#allocation64_spill] sm:$0xff] }
 0x62a   : > { %v964_v52 = vmax.f32 %v956_v10, 0.0  ;;  %v966_v37 = vmax.f32 %v958_v11, 0.0  ;;  %v999_v10 = vmax.f32 %v991_v59, 0.0  ;;  %v1567_v56 = vsub.f32 1.0, %v1559_v44  ;;  %v7097_v44 = vld [vmem:[#allocation69_spill] sm:$0xff] }
 0x62b   : > { %v1541_v57 = vsel %vm278_vm8, %v7092_v25, %v7091_v47  ;;  %v933_v25 = vsel %vm278_vm8, %v5502_v31, %v5530_v20 }
 0x62c   : > { %708 = vadd.xlane.f32.xlu1 %v707_v62  ;;  %v1887_v62 = vsub.f32 %v1775_v40, %v5322_v2  ;;  %v1005_v54 = vmul.f32 %v997_v60, %v964_v52  ;;  %v1599_v40 = vsub.f32 1.0, %v1591_v41  ;;  %v7094_v60 = vld [vmem:[#allocation60_spill] sm:$0xff]  ;;  %v1007_v41 = vmul.f32 %v999_v10, %v966_v37  ;;  %v7099_v10 = vld [vmem:[#allocation66_spill] sm:$0xff] }
 0x62d   : > { %v1845_v20 = vsel %vm278_vm8, %v7100_v8, %v7099_v10  ;;  %v7107_v10 = vld [vmem:[#allocation13_spill] sm:$0xff] }
 0x62e   : > { %v1895_v46 = vand.u32 2147483647, %v1887_v62  ;;  %v7098_v62 = vld [vmem:[#allocation33_spill] sm:$0xff]  ;;  %v1607_v37 = vmax.f32 %v1599_v40, 0.0 }
 0x62f   : > { %v1639_v43 = vpop.permute.xlu1 %1638  ;;  %4020 = vset.pattern.permute.xlu2 %v7087_v50  ;;  %v4104_v47 = vpop.eup %4103 }
 0x630   : > { %v1701_v26 = vsel %vm278_vm8, %v1639_v43, %v7088_v24  ;;  %1666 = vperm.xlu2 %4020, %v4830_v22   ;;  %v5651_v35 = vpop.permute.xlu2 %824  ;;  %v1613_v43 = vmul.f32 %v1605_v27, %v1573_v3  ;;  %v1303_v24 = vmax.f32 %v1295_v39, 0.0  ;;  %v931_v39 = vsel %vm278_vm8, %v7094_v60, %v7093_v48  ;;  %v7095_v3 = vld [vmem:[#allocation87_spill] sm:$0xff]  ;;  %v7096_v27 = vld [vmem:[#allocation72_spill] sm:$0xff] }
 0x631   : > { %v1853_v49 = vsub.f32 %v1701_v26, %v5337_v36  ;;  %v1317_v26 = vmul.f32 %v1309_v38, %v1237_v18  ;;  %4105 = vrcp.f32 %v7095_v3  ;;  %v1013_v11 = vmul.f32 %v1005_v54, %v931_v39  ;;  %v7101_v60 = vld [vmem:[#allocation84_spill] sm:$0xff] }
 0x632   : > { %v1621_v59 = vmul.f32 %v1613_v43, %v1541_v57  ;;  %v1311_v31 = vmul.f32 %v1303_v24, %v1271_v53  ;;  %v1015_v57 = vmul.f32 %v1007_v41, %v933_v25  ;;  %4107 = vrcp.f32 %v7101_v60 }
 0x633   : > { %v1861_v50 = vand.u32 2147483647, %v1853_v49  ;;  %v1239_v49 = vsel %vm278_vm8, %v7097_v44, %v7096_v27  ;;  %v1325_v14 = vadd.f32 %v1317_v26, %v1013_v11  ;;  %v7103_v44 = vld [vmem:[#allocation76_spill] sm:$0xff] }
 0x635   : > { %v1869_v34 = vsub.f32 1.0, %v1861_v50  ;;  %v1903_v50 = vsub.f32 1.0, %v1895_v46  ;;  %v1629_v26 = vadd.f32 %v1621_v59, %v1325_v14  ;;  %v7104_v59 = vld [vmem:[#allocation75_spill] sm:$0xff] }
 0x637   : > { %v1877_v7 = vmax.f32 %v1869_v34, 0.0  ;;  %v1647_v52 = vpop.permute.xlu1 %1646  ;;  %v1575_v34 = vmax.f32 %v1567_v56, 0.0  ;;  %v4106_v48 = vpop.eup %4105  ;;  %v1911_v40 = vmax.f32 %v1903_v50, 0.0 }
 0x638   : > { %v1703_v38 = vsel %vm278_vm8, %v1647_v52, %v7098_v62  ;;  %4022 = vset.pattern.permute.xlu2 %v6990_v1  ;;  %v1957_v46 = vsel %vm278_vm8, %v4106_v48, %v4104_v47  ;;  %v7105_v62 = vld [vmem:[#allocation73_spill] sm:$0xff] }
 0x639   : > { %v1917_v18 = vmul.f32 %v1909_v30, %v1877_v7  ;;  %v1855_v54 = vsub.f32 %v1703_v38, %v5337_v36  ;;  %1738 = vperm.xlu2 %4022, %v4830_v22   ;;  %v5683_v43 = vpop.permute.xlu2 %1090  ;;  %v1319_v30 = vmul.f32 %v1311_v31, %v1239_v49  ;;  %v1615_v39 = vmul.f32 %v1607_v37, %v1575_v34  ;;  %v7102_v7 = vld [vmem:[#allocation91_spill] sm:$0xff]  ;;  %v7106_v38 = vld [vmem:[#allocation77_spill] sm:$0xff] }
 0x63a   : > { %4109 = vrcp.f32 %v7102_v7  ;;  %v1543_v49 = vsel %vm278_vm8, %v7104_v59, %v7103_v44  ;;  %v1847_v14 = vsel %vm278_vm8, %v7106_v38, %v7105_v62 }
 0x63b   : > { %v1863_v1 = vand.u32 2147483647, %v1855_v54  ;;  %v1925_v56 = vmul.f32 %v1917_v18, %v1845_v20  ;;  %v1327_v52 = vadd.f32 %v1319_v30, %v1015_v57  ;;  %v1623_v25 = vmul.f32 %v1615_v39, %v1543_v49  ;;  %v4108_v18 = vpop.eup %4107  ;;  %v7109_v39 = vld [vmem:[#allocation19_spill] sm:$0xff] }
 0x63c   : > { %v7108_v30 = vmov 50   ;;  %v1099_v49 = vsel %vm278_vm8, %v5546_v9, %v5464_v29 }
 0x63d   : > { %v1871_v3 = vsub.f32 1.0, %v1863_v1  ;;  %v1933_v11 = vadd.f32 %v1925_v56, %v1629_v26  ;;  %v1631_v54 = vadd.f32 %v1623_v25, %v1327_v52  ;;  %v1778_v1 = vsel %vm278_vm8, %v5514_v12, %v5435_v32 }
 0x63e   : > { %v1890_v48 = vsub.f32 %v1778_v1, %v5322_v2 }
 0x63f   : > { %v1879_v24 = vmax.f32 %v1871_v3, 0.0  ;;  %v1659_v53 = vpop.permute.xlu1 %1658  ;;  %v1965_v27 = vmul.f32 %v1957_v46, %v1933_v11 }
 0x640   : > { %v4110_v50 = vpop.eup %4109  ;;  %v1706_v20 = vsel %vm278_vm8, %v1659_v53, %v5425_v0  ;;  %v4197_v0 = vld [vmem:[%s6828_s6] sm:$0xff]  ;;  %v1171_v53 = vsel %vm278_vm8, %v5563_v19, %v5473_v13 }
 0x641   : > { %v1919_v41 = vmul.f32 %v1911_v40, %v1879_v24  ;;  %4025 = vset.pattern.permute.xlu2 %v6960_v63  ;;  %2011 = vmatmul.f32.vlgmr.msrb.gmra.mxu0 %v1965_v27  ;;  %v1959_v31 = vsel %vm278_vm8, %v4110_v50, %v4108_v18  ;;  %v1858_v56 = vsub.f32 %v1706_v20, %v5337_v36 }
 0x642   : > { %1838 = vperm.xlu2 %4025, %v5039_v55   ;;  %v5703_v34 = vpop.permute.xlu2 %1162  ;;  %v793_v24 = vsel %vm278_vm8, %v5444_v15, %v5533_v4  ;;  %v1283_v13 = vsub.f32 %v1171_v53, %v5322_v2  ;;  %v7110_v53 = vld [vmem:[#allocation81_spill] sm:$0xff] }
 0x643   : > { %v1927_v37 = vmul.f32 %v1919_v41, %v1847_v14  ;;  %v1866_v12 = vand.u32 2147483647, %v1858_v56  ;;  %v946_v19 = vsub.f32 %v793_v24, %v5337_v36 }
 0x644   : > { %v1291_v18 = vand.u32 2147483647, %v1283_v13 }
 0x645   : > { %1418 = vperm.xlu1 %4011, %v7107_v10   ;;  %v1935_v8 = vadd.f32 %v1927_v37, %v1631_v54  ;;  %v1874_v40 = vsub.f32 1.0, %v1866_v12  ;;  %v954_v9 = vand.u32 2147483647, %v946_v19  ;;  %v866_v37 = vsel %vm278_vm8, %v5651_v35, %v5409_v28 }
 0x647   : > { %v1663_v47 = vpop.permute.xlu1 %1662  ;;  %v1967_v57 = vmul.f32 %v1959_v31, %v1935_v8  ;;  %v1882_v41 = vmax.f32 %v1874_v40, 0.0  ;;  %v962_v31 = vsub.f32 1.0, %v954_v9  ;;  %v7115_v9 = vld [vmem:[#allocation112_spill] sm:$0xff] }
 0x648   : > { %v1707_v26 = vsel %vm278_vm8, %v1663_v47, %v5549_v61  ;;  %v1898_v61 = vand.u32 2147483647, %v1890_v48  ;;  %v1299_v47 = vsub.f32 1.0, %v1291_v18  ;;  %4111 = vrcp.f32 %v7115_v9 }
 0x649   : > { %2017 = vmatmul.f32.vlgmr.msra.gmra.mxu2 %v1967_v57  ;;  %3692 = vmatmul.msk.f32.vlgmr.msra.gmra.mxu0 %vm367_vm1, %v4197_v0  ;;  %v1859_v32 = vsub.f32 %v1707_v26, %v5337_v36  ;;  %v980_v57 = vsub.f32 %v866_v37, %v5322_v2  ;;  %v970_v26 = vmax.f32 %v962_v31, 0.0  ;;  %v7117_v31 = vld [vmem:[#allocation39_spill] sm:$0xff] }
 0x64a   : > { %4026 = vset.pattern.permute.xlu2 %v7108_v30  ;;  %v1906_v52 = vsub.f32 1.0, %v1898_v61  ;;  %v1307_v56 = vmax.f32 %v1299_v47, 0.0 }
 0x64b   : > { %v893_v60 = vpop.permute.xlu2 %892  ;;  %v1867_v3 = vand.u32 2147483647, %v1859_v32  ;;  %v988_v0 = vand.u32 2147483647, %v980_v57  ;;  %v7118_v57 = vld [vmem:[#allocation38_spill] sm:$0xff] }
 0x64c   : > { %v1914_v25 = vmax.f32 %v1906_v52, 0.0 }
 0x64d   : > { %1422 = vperm.xlu1 %4011, %v7109_v39   ;;  %v1875_v27 = vsub.f32 1.0, %v1867_v3  ;;  %v996_v32 = vsub.f32 1.0, %v988_v0  ;;  %v7122_v0 = vld [vmem:[#allocation36_spill] sm:$0xff] }
 0x64e   : > { %v1922_v29 = vmul.f32 %v1914_v25, %v1882_v41  ;;  %v4112_v37 = vpop.eup %4111 }
 0x650   : > { %v1735_v11 = vpop.permute.xlu1 %1734 }
 0x651   : > { %v1779_v46 = vsel %vm278_vm8, %v1735_v11, %v5557_v17  ;;  %v865_v17 = vsel %vm278_vm8, %v5455_v45, %v5382_v33  ;;  %v1251_v33 = vsub.f32 %v1099_v49, %v5337_v36  ;;  %v1883_v45 = vmax.f32 %v1875_v27, 0.0 }
 0x652   : > { %v1891_v7 = vsub.f32 %v1779_v46, %v5322_v2  ;;  %v979_v62 = vsub.f32 %v865_v17, %v5322_v2 }
 0x653   : > { %v1259_v8 = vand.u32 2147483647, %v1251_v33  ;;  %v7112_v33 = vld [vmem:[#allocation57_spill] sm:$0xff] }
 0x654   : > { %v1899_v44 = vand.u32 2147483647, %v1891_v7  ;;  %v925_v59 = vpop.permute.xlu2 %924  ;;  %v987_v10 = vand.u32 2147483647, %v979_v62 }
 0x655   : > { %v937_v15 = vsel %vm278_vm8, %v893_v60, %v925_v59  ;;  %1430 = vperm.xlu1 %4011, %v4875_v51  }
 0x656   : > { %v1907_v4 = vsub.f32 1.0, %v1899_v44  ;;  %v995_v1 = vsub.f32 1.0, %v987_v10 }
 0x658   : > { %v1915_v38 = vmax.f32 %v1907_v4, 0.0  ;;  %v1003_v35 = vmax.f32 %v995_v1, 0.0  ;;  %v7119_v1 = vld [vmem:[#allocation45_spill] sm:$0xff] }
 0x659   : > { %v1835_v14 = vpop.permute.xlu1 %1834 }
 0x65a   : > { %v1850_v51 = vsel %vm278_vm8, %v5484_v23, %v1835_v14  ;;  %v5757_v54 = vmul.f32 %v1915_v38, %v1883_v45  ;;  %v1267_v23 = vsub.f32 1.0, %v1259_v8  ;;  %v1011_v12 = vmul.f32 %v1003_v35, %v970_v26  ;;  %v7113_v45 = vld [vmem:[#allocation80_spill] sm:$0xff]  ;;  %v2038_v38 = vld [vmem:[%s6824_s2 + $0xc8] sm:$0xff]  ;;  %v7114_v14 = vld [vmem:[#allocation59_spill] sm:$0xff] }
 0x65b   : > { %v5763_v50 = vmul.f32 %v1922_v29, %v1850_v51  ;;  %v2036_v29 = vld [vmem:[%s6824_s2 + $0x8] sm:$0xff] }
 0x65c   : > { %v1275_v48 = vmax.f32 %v1267_v23, 0.0  ;;  %v1019_v40 = vmul.f32 %v1011_v12, %v937_v15  ;;  %v7120_v23 = vld [vmem:[#allocation37_spill] sm:$0xff]  ;;  %v7121_v26 = vld [vmem:[#allocation46_spill] sm:$0xff] }
 0x65d   : > { %1434 = vperm.xlu1 %4011, %v4830_v22   ;;  %v1199_v20 = vpop.permute.xlu2 %1198  ;;  %v7124_v12 = vld [vmem:[#allocation49_spill] sm:$0xff] }
 0x65e   : > { %v1315_v61 = vmul.f32 %v1307_v56, %v1275_v48  ;;  %v1096_v56 = vsel %vm278_vm8, %v7121_v26, %v7120_v23  ;;  %v7134_v23 = vld [vmem:[#allocation97_spill] sm:$0xff]  ;;  %v7135_v26 = vld [vmem:[#allocation94_spill] sm:$0xff] }
 0x662   : > { %v785_v30 = vpop.permute.xlu1 %784 }
 0x663   : > { %v794_v28 = vsel %vm278_vm8, %v5622_v21, %v785_v30  ;;  %v1004_v21 = vmax.f32 %v996_v32, 0.0  ;;  %v7123_v30 = vld [vmem:[#allocation35_spill] sm:$0xff]  ;;  %v1248_v32 = vsub.f32 %v1096_v56, %v5337_v36  ;;  %v934_v56 = vsel %vm278_vm8, %v7135_v26, %v7134_v23  ;;  %v7151_v23 = vld [vmem:[#allocation110_spill] sm:$0xff]  ;;  %v7152_v26 = vld [vmem:[#allocation93_spill] sm:$0xff] }
 0x664   : > { %v947_v60 = vsub.f32 %v794_v28, %v5337_v36  ;;  %v790_v28 = vsel %vm278_vm8, %v7123_v30, %v7122_v0  ;;  %v7136_v30 = vld [vmem:[#allocation98_spill] sm:$0xff] }
 0x665   : > { %4021 = vset.pattern.permute.xlu1 %v6989_v42  ;;  %v710_v42 = vsel %vm640_vm7, %v7110_v53, 0.0  ;;  %v7129_v53 = vld [vmem:[#allocation54_spill] sm:$0xff] }
 0x666   : > { %v955_v39 = vand.u32 2147483647, %v947_v60  ;;  %1698 = vperm.xlu1 %4021, %v4830_v22   ;;  %v1231_v3 = vpop.permute.xlu2 %1230 }
 0x667   : > { %v1243_v11 = vsel %vm278_vm8, %v1199_v20, %v1231_v3  ;;  %v7116_v20 = vld [vmem:[#allocation47_spill] sm:$0xff]  ;;  %v943_v3 = vsub.f32 %v790_v28, %v5337_v36 }
 0x668   : > { %v963_v46 = vsub.f32 1.0, %v955_v39  ;;  %v1323_v7 = vmul.f32 %v1315_v61, %v1243_v11  ;;  %v1168_v47 = vsel %vm278_vm8, %v7117_v31, %v7116_v20  ;;  %v7125_v39 = vld [vmem:[#allocation51_spill] sm:$0xff]  ;;  %v7126_v11 = vld [vmem:[#allocation114_spill] sm:$0xff]  ;;  %v7133_v20 = vld [vmem:[#allocation100_spill] sm:$0xff] }
 0x669   : > { %v1280_v35 = vsub.f32 %v1168_v47, %v5322_v2  ;;  %v1704_v61 = vsel %vm278_vm8, %v7125_v39, %v7124_v12 }
 0x66a   : > { %v971_v52 = vmax.f32 %v963_v46, 0.0  ;;  %v5775_v24 = vadd.f32 %v1323_v7, %v1019_v40  ;;  %v7127_v40 = vld [vmem:[#allocation48_spill] sm:$0xff] }
 0x66b   : > { %v1059_v27 = vpop.permute.xlu1 %1058  ;;  %711 = vadd.xlane.f32.xlu2 %v710_v42  ;;  %v1400_v46 = vsel %vm278_vm8, %v7127_v40, %v7126_v11  ;;  %v1288_v7 = vand.u32 2147483647, %v1280_v35  ;;  %v7140_v40 = vld [vmem:[#allocation67_spill] sm:$0xff] }
 0x66c   : > { %v1012_v44 = vmul.f32 %v1004_v21, %v971_v52  ;;  %v1100_v59 = vsel %vm278_vm8, %v1059_v27, %v5683_v43  ;;  %v7128_v52 = vld [vmem:[#allocation55_spill] sm:$0xff]  ;;  %v1856_v27 = vsub.f32 %v1704_v61, %v5337_v36  ;;  %v7138_v61 = vld [vmem:[#allocation108_spill] sm:$0xff] }
 0x66d   : > { %v1252_v49 = vsub.f32 %v1100_v59, %v5337_v36  ;;  %v1776_v42 = vsel %vm278_vm8, %v7129_v53, %v7128_v52  ;;  %v1552_v59 = vsub.f32 %v1400_v46, %v5337_v36  ;;  %v7141_v46 = vld [vmem:[#allocation99_spill] sm:$0xff] }
 0x66e   : > { %4023 = vset.pattern.permute.xlu1 %v6934_v58  ;;  %v5784_v17 = vmul.f32 %v1012_v44, %v5544_v16  ;;  %v1256_v44 = vand.u32 2147483647, %v1248_v32  ;;  %v7137_v32 = vld [vmem:[#allocation86_spill] sm:$0xff] }
 0x66f   : > { %1770 = vperm.xlu1 %4023, %v4830_v22   ;;  %v1260_v41 = vand.u32 2147483647, %v1252_v49  ;;  %v7111_v22 = vld [vmem:[#allocation58_spill] sm:$0xff]  ;;  %v5815_v51 = vpop.permute.xlu2 %1362  ;;  %v951_v49 = vand.u32 2147483647, %v943_v3 }
 0x670   : > { %v7139_v3 = vld [vmem:[#allocation106_spill] sm:$0xff] }
 0x671   : > { %v1268_v43 = vsub.f32 1.0, %v1260_v41  ;;  %v1296_v41 = vsub.f32 1.0, %v1288_v7  ;;  %v1544_v11 = vsel %vm278_vm8, %v7139_v3, %v7138_v61  ;;  %v1848_v7 = vsel %vm278_vm8, %v7141_v46, %v7140_v40  ;;  %v7157_v61 = vld [vmem:[#allocation122_spill] sm:$0xff]  ;;  %v7158_v40 = vld [vmem:[#allocation113_spill] sm:$0xff] }
 0x672   : > { %v7159_v46 = vld [vmem:[#allocation102_spill] sm:$0xff] }
 0x673   : > { %v1276_v25 = vmax.f32 %v1268_v43, 0.0  ;;  %v1264_v43 = vsub.f32 1.0, %v1256_v44 }
 0x674   : > { %v1131_v15 = vpop.permute.xlu1 %1130 }
 0x675   : > { %v1172_v19 = vsel %vm278_vm8, %v1131_v15, %v5703_v34  ;;  %v2039_v34 = vld [vmem:[%s6824_s2 + $0x128] sm:$0xff]  ;;  %v1888_v15 = vsub.f32 %v1776_v42, %v5322_v2 }
 0x676   : > { %v1284_v13 = vsub.f32 %v1172_v19, %v5322_v2  ;;  %2078 = vmatpush.msra.mxu3 %v2039_v34  ;;  %v1304_v34 = vmax.f32 %v1296_v41, 0.0 }
 0x677   : > { %4029 = vset.pattern.permute.xlu1 %v6987_v6  ;;  %v662_v6 = vsel %vm640_vm7, %v7113_v45, 0.0  ;;  %v1896_v45 = vand.u32 2147483647, %v1888_v15 }
 0x678   : > { %v1292_v4 = vand.u32 2147483647, %v1284_v13  ;;  %2079 = vmatpush.msra.mxu3 %v2038_v38  ;;  %v5840_v60 = vpop.permute.xlu2 %1466  ;;  %v1864_v13 = vand.u32 2147483647, %v1856_v27 }
 0x679   : > { %v1904_v47 = vsub.f32 1.0, %v1896_v45  ;;  %v7145_v45 = vld [vmem:[#allocation56_spill] sm:$0xff] }
 0x67a   : > { %v1300_v58 = vsub.f32 1.0, %v1292_v4  ;;  %v1560_v4 = vand.u32 2147483647, %v1552_v59  ;;  %v1872_v38 = vsub.f32 1.0, %v1864_v13 }
 0x67c   : > { %v1308_v16 = vmax.f32 %v1300_v58, 0.0  ;;  %v1568_v9 = vsub.f32 1.0, %v1560_v4 }
 0x67e   : > { %v5793_v62 = vmul.f32 %v1308_v16, %v1276_v25  ;;  %v959_v25 = vsub.f32 1.0, %v951_v49  ;;  %v1576_v28 = vmax.f32 %v1568_v9, 0.0  ;;  %v2015_v49 = vpop.f32.mrf.mxu1 }
 0x681   : > { %v5860_v16 = vpop.permute.xlu2 %1534 }
 0x683   : > { %1494 = vperm.xlu2 %4026, %v7111_v22   ;;  %v7130_v22 = vld [vmem:[#allocation53_spill] sm:$0xff] }
 0x68b   : > { %1498 = vperm.xlu2 %4026, %v7112_v33  }
 0x693   : > { %1502 = vperm.xlu2 %4026, %v5039_v55   ;;  %v2037_v55 = vld [vmem:[%s6824_s2 + $0x68] sm:$0xff] }
 0x694   : > { %2080 = vmatpush.msra.mxu3 %v2037_v55  ;;  %v7131_v55 = vmov 51  }
 0x696   : > { %2081 = vmatpush.msra.mxu3 %v2036_v29  ;;  %v1272_v29 = vmax.f32 %v1264_v43, 0.0 }
 0x699   : > { %663 = vadd.xlane.f32.xlu1 %v662_v6 }
 0x69b   : > { %1506 = vperm.xlu2 %4026, %v7114_v14  }
 0x69f   : > { %v709_v18 = vpop.xlane.xlu1 %708 }
 0x6a0   : > { %4113 = vrcp.f32 %v709_v18 }
 0x6a1   : > { %4115 = vrcp.f32 %v7136_v30 }
 0x6a2   : > { %4117 = vrcp.f32 %v7137_v32  ;;  %v7155_v32 = vld [vmem:[#allocation96_spill] sm:$0xff] }
 0x6a3   : > { %4032 = vset.pattern.permute.xlu2 %v6960_v63  ;;  %v862_v63 = vsel %vm278_vm8, %v7119_v1, %v7118_v57  ;;  %v1312_v57 = vmul.f32 %v1304_v34, %v1272_v29 }
 0x6a4   : > { %1842 = vperm.xlu2 %4032, %v7114_v14   ;;  %v976_v48 = vsub.f32 %v862_v63, %v5322_v2  ;;  %v1880_v63 = vmax.f32 %v1872_v38, 0.0  ;;  %v7147_v38 = vld [vmem:[#allocation85_spill] sm:$0xff] }
 0x6a6   : > { %v4114_v10 = vpop.eup %4113  ;;  %v984_v21 = vand.u32 2147483647, %v976_v48  ;;  %v1912_v48 = vmax.f32 %v1904_v47, 0.0 }
 0x6a7   : > { %v5820_v8 = vsel %vm278_vm8, %v4112_v37, %v4114_v10  ;;  %v967_v37 = vmax.f32 %v959_v25, 0.0  ;;  %v7132_v10 = vld [vmem:[#allocation103_spill] sm:$0xff]  ;;  %v4116_v27 = vpop.eup %4115 }
 0x6a8   : > { %v992_v19 = vsub.f32 1.0, %v984_v21  ;;  %v1240_v31 = vsel %vm278_vm8, %v7133_v20, %v7132_v10  ;;  %v5887_v21 = vpop.permute.xlu2 %1666  ;;  %v1920_v53 = vmul.f32 %v1912_v48, %v1880_v63  ;;  %v4118_v15 = vpop.eup %4117  ;;  %v5923_v20 = vld [vmem:[%s6826_s4 + $0x18] ss:$0 sm:$0xff] }
 0x6a9   : > { %v1960_v4 = vsel %vm278_vm8, %v4118_v15, %v4116_v27  ;;  %v7154_v48 = vld [vmem:[#allocation111_spill] sm:$0xff] }
 0x6aa   : > { %v1000_v6 = vmax.f32 %v992_v19, 0.0  ;;  %v1928_v44 = vmul.f32 %v1920_v53, %v1848_v7  ;;  %v7142_v19 = vld [vmem:[#allocation89_spill] sm:$0xff]  ;;  %v792_v7 = vsel %vm278_vm8, %v7159_v46, %v7158_v40  ;;  %v7161_v53 = vld [vmem:[#allocation115_spill] sm:$0xff] }
 0x6b0   : > { %v5901_v25 = vpop.permute.xlu2 %1738 }
 0x6b2   : > { %1202 = vperm.xlu1 %4029, %v7114_v14  }
 0x6b7   : > { %v1419_v58 = vpop.permute.xlu1 %1418 }
 0x6b8   : > { %v1472_v33 = vsel %vm278_vm8, %v1419_v58, %v7130_v22  ;;  %v7143_v22 = vld [vmem:[#allocation78_spill] sm:$0xff]  ;;  %v5958_v27 = vpop.permute.xlu2 %1838 }
 0x6b9   : > { %v1584_v36 = vsub.f32 %v1472_v33, %v5322_v2  ;;  %v1008_v2 = vmul.f32 %v1000_v6, %v967_v37  ;;  %v7144_v33 = vld [vmem:[#allocation52_spill] sm:$0xff]  ;;  %v7150_v37 = vld [vmem:[#allocation74_spill] sm:$0xff] }
 0x6ba   : > { %4031 = vset.pattern.permute.xlu1 %v7131_v55  ;;  %v863_v34 = vsel %vm278_vm8, %v7144_v33, %v7143_v22  ;;  %v7148_v55 = vld [vmem:[#allocation82_spill] sm:$0xff] }
 0x6bb   : > { %v1592_v18 = vand.u32 2147483647, %v1584_v36  ;;  %1810 = vperm.xlu1 %4031, %v7114_v14   ;;  %v1320_v14 = vmul.f32 %v1312_v57, %v1240_v31  ;;  %v1016_v12 = vmul.f32 %v1008_v2, %v934_v56  ;;  %v7146_v36 = vld [vmem:[#allocation50_spill] sm:$0xff]  ;;  %v1169_v29 = vsel %vm278_vm8, %v7148_v55, %v7147_v38  ;;  %v5929_v57 = vld [vmem:[%s6826_s4 + $0x17] ss:$0 sm:$0xff] }
 0x6bc   : > { %v791_v6 = vsel %vm278_vm8, %v7146_v36, %v7145_v45  ;;  %v977_v31 = vsub.f32 %v863_v34, %v5923_v20  ;;  %v1281_v63 = vsub.f32 %v1169_v29, %v5923_v20  ;;  %v1705_v56 = vsel %vm278_vm8, %v7152_v26, %v7151_v23  ;;  %v7169_v23 = vld [vmem:[#allocation125_spill] sm:$0xff] }
 0x6bd   : > { %v1600_v1 = vsub.f32 1.0, %v1592_v18  ;;  %v1328_v52 = vadd.f32 %v1320_v14, %v1016_v12  ;;  %v7149_v18 = vld [vmem:[#allocation71_spill] sm:$0xff]  ;;  %v1777_v12 = vsel %vm278_vm8, %v7155_v32, %v7154_v48  ;;  %v945_v36 = vsub.f32 %v792_v7, %v5929_v57  ;;  %v1223_v32 = vpop.permute.xlu0 %1222 }
 0x6be   : > { %v2012_v0 = vpop.f32.mrf.mxu0  ;;  %v1097_v10 = vsel %vm278_vm8, %v7150_v37, %v7149_v18  ;;  %v985_v14 = vand.u32 2147483647, %v977_v31  ;;  %v7166_v37 = vld [vmem:[#allocation127_spill] sm:$0xff] }
 0x6bf   : > { %v1608_v35 = vmax.f32 %v1600_v1, 0.0  ;;  %3668 = vmatmul.msk.f32.vlgmr.msra.gmra.mxu3 %vm367_vm1, %v2012_v0  ;;  %v1423_v47 = vpop.permute.xlu1 %1422  ;;  %v944_v1 = vsub.f32 %v791_v6, %v5929_v57  ;;  %v1249_v2 = vsub.f32 %v1097_v10, %v5929_v57  ;;  %v7153_v0 = vld [vmem:[#allocation88_spill] sm:$0xff] }
 0x6c0   : > { %v1473_v30 = vsel %vm278_vm8, %v1423_v47, %v7153_v0  ;;  %v7167_v10 = vld [vmem:[#allocation68_spill] sm:$0xff] }
 0x6c1   : > { %v1616_v39 = vmul.f32 %v1608_v35, %v1576_v28  ;;  %v952_v28 = vand.u32 2147483647, %v944_v1  ;;  %v1289_v35 = vand.u32 2147483647, %v1281_v63  ;;  %v1474_v31 = vsel %vm278_vm8, %v7167_v10, %v7166_v37  ;;  %v7175_v37 = vld [vmem:[#allocation109_spill] sm:$0xff]  ;;  %v7176_v10 = vld [vmem:[#allocation118_spill] sm:$0xff] }
 0x6c2   : > { %v1586_v48 = vsub.f32 %v1474_v31, %v5923_v20  ;;  %v7177_v31 = vld [vmem:[#allocation130_spill] sm:$0xff] }
 0x6c3   : > { %v1624_v42 = vmul.f32 %v1616_v39, %v1544_v11  ;;  %v7156_v39 = vld [vmem:[#allocation90_spill] sm:$0xff]  ;;  %v1857_v11 = vsub.f32 %v1705_v56, %v5929_v57  ;;  %v960_v34 = vsub.f32 1.0, %v952_v28  ;;  %v1297_v45 = vsub.f32 1.0, %v1289_v35 }
 0x6c4   : > { %v1401_v3 = vsel %vm278_vm8, %v7157_v61, %v7156_v39 }
 0x6c5   : > { %v1632_v59 = vadd.f32 %v1624_v42, %v1328_v52  ;;  %v7160_v52 = vld [vmem:[#allocation95_spill] sm:$0xff]  ;;  %v1553_v33 = vsub.f32 %v1401_v3, %v5929_v57  ;;  %v1865_v38 = vand.u32 2147483647, %v1857_v11  ;;  %v968_v56 = vmax.f32 %v960_v34, 0.0 }
 0x6c6   : > { %v2705_v41 = vpop.f32.mrf.mxu0  ;;  %v1170_v42 = vsel %vm278_vm8, %v7161_v53, %v7160_v52  ;;  %v1305_v0 = vmax.f32 %v1297_v45, 0.0  ;;  %v7173_v45 = vld [vmem:[#allocation132_spill] sm:$0xff] }
 0x6c7   : > { %v5890_v13 = vadd.f32 %v2705_v41, %v7142_v19  ;;  %3669 = vmatmul.msk.f32.gmra.mxu3 %vm367_vm1, %v2015_v49  ;;  %v1936_v43 = vadd.f32 %v1928_v44, %v1632_v59  ;;  %v1585_v44 = vsub.f32 %v1473_v30, %v5923_v20  ;;  %v1257_v59 = vand.u32 2147483647, %v1249_v2  ;;  %v7162_v49 = vld [vmem:[#allocation105_spill] sm:$0xff]  ;;  %v7163_v41 = vld [vmem:[#allocation92_spill] sm:$0xff]  ;;  %v1431_v52 = vpop.permute.xlu1 %1430 }
 0x6c8   : > { %v864_v15 = vsel %vm278_vm8, %v7163_v41, %v7162_v49  ;;  %v993_v19 = vsub.f32 1.0, %v985_v14  ;;  %v1282_v6 = vsub.f32 %v1170_v42, %v5923_v20  ;;  %v1561_v63 = vand.u32 2147483647, %v1553_v33  ;;  %v7168_v2 = vld [vmem:[#allocation116_spill] sm:$0xff]  ;;  %v7172_v33 = vld [vmem:[#allocation129_spill] sm:$0xff] }
 0x6c9   : > { %2779 = vrot.lane.b32.xlu2 %v5890_v13, %s4297_s23  ;;  %2781 = vrot.lane.b32.xlu0 %v5890_v13, %s4289_s18  ;;  %v1968_v58 = vmul.f32 %v1960_v4, %v1936_v43  ;;  %v1889_v43 = vsub.f32 %v1777_v12, %v5923_v20  ;;  %v7164_v4 = vld [vmem:[#allocation107_spill] sm:$0xff]  ;;  %v978_v55 = vsub.f32 %v864_v15, %v5923_v20  ;;  %v1593_v29 = vand.u32 2147483647, %v1585_v44 }
 0x6ca   : > { %2709 = vrot.lane.b32.xlu1 %v5890_v13, %s4296_s22  ;;  %v1001_v47 = vmax.f32 %v993_v19, 0.0  ;;  %v1402_v26 = vsel %vm278_vm8, %v7169_v23, %v7168_v2  ;;  %v953_v30 = vand.u32 2147483647, %v945_v36  ;;  %v1290_v14 = vand.u32 2147483647, %v1282_v6  ;;  %s4326_s22 = smov 37  }
 0x6cb   : > { %2020 = vmatmul.f32.gmra.mxu2 %v1968_v58  ;;  %v7165_v58 = vld [vmem:[#allocation79_spill] sm:$0xff]  ;;  %v1897_v1 = vand.u32 2147483647, %v1889_v43  ;;  %v1873_v28 = vsub.f32 1.0, %v1865_v38  ;;  %v986_v35 = vand.u32 2147483647, %v978_v55  ;;  %v1554_v11 = vsub.f32 %v1402_v26, %v5929_v57 }
 0x6cc   : > { %v2018_v9 = vpop.f32.mrf.mxu2  ;;  %v1098_v22 = vsel %vm278_vm8, %v7165_v58, %v7164_v4  ;;  %v1601_v12 = vsub.f32 1.0, %v1593_v29  ;;  %v1569_v46 = vsub.f32 1.0, %v1561_v63  ;;  %v1009_v7 = vmul.f32 %v1001_v47, %v968_v56  ;;  %v7174_v38 = vld [vmem:[#allocation117_spill] sm:$0xff] }
 0x6cd   : > { %v1250_v18 = vsub.f32 %v1098_v22, %v5929_v57  ;;  %v1905_v40 = vsub.f32 1.0, %v1897_v1  ;;  %v961_v53 = vsub.f32 1.0, %v953_v30  ;;  %v1298_v42 = vsub.f32 1.0, %v1290_v14  ;;  %v7171_v22 = vld [vmem:[#allocation133_spill] sm:$0xff]  ;;  %v7178_v30 = vld [vmem:[#allocation131_spill] sm:$0xff]  ;;  %v7179_v14 = vld [vmem:[#allocation120_spill] sm:$0xff] }
 0x6ce   : > { %v1881_v41 = vmax.f32 %v1873_v28, 0.0  ;;  %v994_v15 = vsub.f32 1.0, %v986_v35  ;;  %v1594_v19 = vand.u32 2147483647, %v1586_v48  ;;  %v1609_v43 = vmax.f32 %v1601_v12, 0.0  ;;  %v7180_v35 = vld [vmem:[#allocation101_spill] sm:$0xff] }
 0x6cf   : > { %3670 = vmatmul.msk.f32.gmra.mxu3 %vm367_vm1, %v2018_v9  ;;  %v1265_v9 = vsub.f32 1.0, %v1257_v59  ;;  %v1258_v3 = vand.u32 2147483647, %v1250_v18  ;;  %v7170_v59 = vld [vmem:[#allocation70_spill] sm:$0xff]  ;;  %v1562_v58 = vand.u32 2147483647, %v1554_v11  ;;  %v935_v34 = vsel %vm278_vm8, %v7172_v33, %v7171_v22 }
 0x6d0   : > { %v1241_v49 = vsel %vm278_vm8, %v7170_v59, %v1223_v32  ;;  %v1475_v36 = vsel %vm278_vm8, %v1431_v52, %v7173_v45  ;;  %v1913_v6 = vmax.f32 %v1905_v40, 0.0  ;;  %4119 = vrcp.f32 %v7174_v38  ;;  %v7181_v40 = vld [vmem:[#allocation128_spill] sm:$0xff] }
 0x6d1   : > { %v1273_v61 = vmax.f32 %v1265_v9, 0.0  ;;  %v1266_v4 = vsub.f32 1.0, %v1258_v3  ;;  %v1577_v55 = vmax.f32 %v1569_v46, 0.0  ;;  %v969_v9 = vmax.f32 %v961_v53, 0.0  ;;  %v7182_v46 = vld [vmem:[#allocation126_spill] sm:$0xff] }
 0x6d2   : > { %v1306_v18 = vmax.f32 %v1298_v42, 0.0  ;;  %4121 = vrcp.f32 %v7175_v37  ;;  %v1403_v47 = vsel %vm278_vm8, %v7177_v31, %v7176_v10  ;;  %v1602_v1 = vsub.f32 1.0, %v1594_v19  ;;  %v7187_v10 = vld [vmem:[#allocation134_spill] sm:$0xff] }
 0x6d3   : > { %v1313_v44 = vmul.f32 %v1305_v0, %v1273_v61  ;;  %v1017_v63 = vmul.f32 %v1009_v7, %v935_v34  ;;  %v1587_v2 = vsub.f32 %v1475_v36, %v5923_v20  ;;  %v1617_v26 = vmul.f32 %v1609_v43, %v1577_v55  ;;  %v7185_v34 = vld [vmem:[#allocation21_spill] sm:$0xff]  ;;  %v7186_v36 = vld [vmem:[#allocation104_spill] sm:$0xff] }
 0x6d4   : > { %v1274_v56 = vmax.f32 %v1266_v4, 0.0  ;;  %v1570_v0 = vsub.f32 1.0, %v1562_v58  ;;  %v1849_v28 = vsel %vm278_vm8, %v7179_v14, %v7178_v30  ;;  %v1921_v32 = vmul.f32 %v1913_v6, %v1881_v41  ;;  %v7183_v4 = vld [vmem:[#allocation123_spill] sm:$0xff]  ;;  %v7184_v41 = vld [vmem:[#allocation121_spill] sm:$0xff] }
 0x6d5   : > { %v1321_v29 = vmul.f32 %v1313_v44, %v1241_v49  ;;  %v1555_v12 = vsub.f32 %v1403_v47, %v5929_v57  ;;  %v1002_v11 = vmax.f32 %v994_v15, 0.0  ;;  %v1242_v7 = vsel %vm278_vm8, %v7182_v46, %v7181_v40  ;;  %v1435_v46 = vpop.permute.xlu1 %1434 }
 0x6d6   : > { %v1314_v52 = vmul.f32 %v1306_v18, %v1274_v56  ;;  %v4120_v53 = vpop.eup %4119  ;;  %v1610_v42 = vmax.f32 %v1602_v1, 0.0  ;;  %v1929_v44 = vmul.f32 %v1921_v32, %v1849_v28  ;;  %v1595_v59 = vand.u32 2147483647, %v1587_v2 }
 0x6d7   : > { %v1329_v61 = vadd.f32 %v1321_v29, %v1017_v63  ;;  %v1578_v43 = vmax.f32 %v1570_v0, 0.0  ;;  %v936_v58 = vsel %vm278_vm8, %v7184_v41, %v7183_v4  ;;  %v1010_v22 = vmul.f32 %v1002_v11, %v969_v9 }
 0x6d8   : > { %v4122_v19 = vpop.eup %4121  ;;  %v1322_v15 = vmul.f32 %v1314_v52, %v1242_v7  ;;  %v1563_v33 = vand.u32 2147483647, %v1555_v12  ;;  %4123 = vrcp.f32 %v7185_v34  ;;  %v1603_v55 = vsub.f32 1.0, %v1595_v59 }
 0x6d9   : > { %4125 = vrcp.f32 %v7186_v36  ;;  %v1961_v6 = vsel %vm278_vm8, %v4122_v19, %v4120_v53  ;;  %v1018_v38 = vmul.f32 %v1010_v22, %v936_v58  ;;  %v1618_v18 = vmul.f32 %v1610_v42, %v1578_v43  ;;  %v7189_v53 = vld [vmem:[#allocation119_spill] sm:$0xff]  ;;  %v1235_v42 = vpop.permute.xlu0 %1234 }
 0x6da   : > { %v1571_v47 = vsub.f32 1.0, %v1563_v33  ;;  %v1611_v2 = vmax.f32 %v1603_v55, 0.0 }
 0x6db   : > { %v1330_v9 = vadd.f32 %v1322_v15, %v1018_v38 }
 0x6dc   : > { %v1579_v56 = vmax.f32 %v1571_v47, 0.0 }
 0x6dd   : > { %v1699_v7 = vpop.permute.xlu1 %1698 }
 0x6de   : > { %v5984_v39 = vpop.xlane.xlu2 %711  ;;  %v4124_v63 = vpop.eup %4123  ;;  %v1619_v28 = vmul.f32 %v1611_v2, %v1579_v56 }
 0x6e1   : > { %v1539_v33 = vpop.permute.xlu0 %1538 }
 0x6e5   : > { %v1771_v52 = vpop.permute.xlu1 %1770 }
 0x6e6   : > { %v1495_v23 = vpop.permute.xlu2 %1494 }
 0x6e7   : > { %v1545_v48 = vsel %vm278_vm8, %v1495_v23, %v7180_v35 }
 0x6e8   : > { %v1625_v3 = vmul.f32 %v1617_v26, %v1545_v48  ;;  %v4126_v26 = vpop.eup %4125  ;;  %v7188_v48 = vld [vmem:[#allocation124_spill] sm:$0xff] }
 0x6e9   : > { %v1962_v30 = vsel %vm278_vm8, %v4126_v26, %v4124_v63  ;;  %v1851_v32 = vsel %vm278_vm8, %v7188_v48, %v5958_v27  ;;  %v1476_v27 = vsel %vm278_vm8, %v1435_v46, %v5840_v60  ;;  %v1708_v60 = vsel %vm278_vm8, %v5887_v21, %v1699_v7  ;;  %v6084_v7 = vld [vmem:[%s6826_s4 + $0x2] ss:$0 sm:$0xff] }
 0x6ea   : > { %v1633_v49 = vadd.f32 %v1625_v3, %v1329_v61  ;;  %v1931_v3 = vmul.f32 %v5757_v54, %v1851_v32  ;;  %v1588_v54 = vsub.f32 %v1476_v27, %v5923_v20 }
 0x6ec   : > { %v1937_v45 = vadd.f32 %v1929_v44, %v1633_v49  ;;  %v1596_v44 = vand.u32 2147483647, %v1588_v54 }
 0x6ee   : > { %v1499_v29 = vpop.permute.xlu2 %1498  ;;  %v1969_v37 = vmul.f32 %v1961_v6, %v1937_v45  ;;  %v1604_v43 = vsub.f32 1.0, %v1596_v44 }
 0x6ef   : > { %v1546_v31 = vsel %vm278_vm8, %v1499_v29, %v7187_v10 }
 0x6f0   : > { %v1626_v1 = vmul.f32 %v1618_v18, %v1546_v31  ;;  %2023 = vmatmul.f32.gmra.mxu2 %v1969_v37  ;;  %v1612_v58 = vmax.f32 %v1604_v43, 0.0 }
 0x6f2   : > { %v1634_v23 = vadd.f32 %v1626_v1, %v1330_v9 }
 0x6f4   : > { %v1938_v0 = vadd.f32 %v5763_v50, %v1634_v23 }
 0x6f6   : > { %v1503_v14 = vpop.permute.xlu2 %1502  ;;  %v1970_v35 = vmul.f32 %v1962_v30, %v1938_v0 }
 0x6f7   : > { %v1547_v12 = vsel %vm278_vm8, %v1503_v14, %v5860_v16  ;;  %v1404_v16 = vsel %vm278_vm8, %v5815_v51, %v7189_v53  ;;  %v1860_v51 = vsub.f32 %v1708_v60, %v5929_v57 }
 0x6f8   : > { %v1627_v61 = vmul.f32 %v1619_v28, %v1547_v12  ;;  %2026 = vmatmul.f32.gmra.mxu2 %v1970_v35 }
 0x6f9   : > { %v1868_v15 = vand.u32 2147483647, %v1860_v51 }
 0x6fa   : > { %v1635_v50 = vadd.f32 %v1627_v61, %v5775_v24  ;;  %v1556_v24 = vsub.f32 %v1404_v16, %v5929_v57 }
 0x6fb   : > { %v1876_v38 = vsub.f32 1.0, %v1868_v15 }
 0x6fc   : > { %v1939_v11 = vadd.f32 %v1931_v3, %v1635_v50  ;;  %v1564_v59 = vand.u32 2147483647, %v1556_v24 }
 0x6fd   : > { %v1884_v37 = vmax.f32 %v1876_v38, 0.0 }
 0x6fe   : > { %v1971_v40 = vmul.f32 %v5820_v8, %v1939_v11  ;;  %v1780_v8 = vsel %vm278_vm8, %v5901_v25, %v1771_v52  ;;  %v1572_v4 = vsub.f32 1.0, %v1564_v59  ;;  %v1507_v22 = vpop.permute.xlu2 %1506  ;;  %v7190_v52 = vld [vmem:[#allocation7_spill] sm:$0xff] }
 0x6ff   : > { %v1892_v19 = vsub.f32 %v1780_v8, %v5923_v20  ;;  %v1548_v36 = vsel %vm278_vm8, %v1507_v22, %v1539_v33 }
 0x700   : > { %2029 = vmatmul.f32.gmra.mxu2 %v1971_v40  ;;  %v1580_v34 = vmax.f32 %v1572_v4, 0.0 }
 0x701   : > { %v1900_v41 = vand.u32 2147483647, %v1892_v19 }
 0x702   : > { %v1620_v6 = vmul.f32 %v1612_v58, %v1580_v34  ;;  %v7191_v58 = vld [vmem:[#allocation12_spill] sm:$0xff] }
 0x703   : > { %v1908_v25 = vsub.f32 1.0, %v1900_v41 }
 0x704   : > { %v1628_v57 = vmul.f32 %v1620_v6, %v1548_v36  ;;  %v7192_v36 = vld [vmem:[#allocation5_spill] sm:$0xff] }
 0x705   : > { %v1916_v29 = vmax.f32 %v1908_v25, 0.0 }
 0x706   : > { %v1843_v10 = vpop.permute.xlu2 %1842 }
 0x707   : > { %v1924_v9 = vmul.f32 %v1916_v29, %v1884_v37  ;;  %v7194_v37 = vld [vmem:[#allocation8_spill] sm:$0xff] }
 0x70c   : > { %v664_v49 = vpop.xlane.xlu1 %663 }
 0x70d   : > { %4127 = vrcp.f32 %v664_v49 }
 0x70e   : > { %4129 = vrcp.f32 %v5984_v39 }
 0x713   : > { %v4128_v1 = vpop.eup %4127 }
 0x714   : > { %v4130_v2 = vpop.eup %4129 }
 0x715   : > { %v1964_v23 = vsel %vm278_vm8, %v4128_v1, %v4130_v2 }
 0x723   : > { %v2780_v39 = vpop.permute.xlu2 %2779 }
 0x724   : > { %v1203_v45 = vpop.permute.xlu1 %1202 }
 0x725   : > { %v1244_v21 = vsel %vm278_vm8, %v1203_v45, %v1235_v42 }
 0x726   : > { %v1324_v20 = vmul.f32 %v5793_v62, %v1244_v21 }
 0x728   : > { %v1332_v55 = vadd.f32 %v1324_v20, %v5784_v17 }
 0x72a   : > { %v1636_v18 = vadd.f32 %v1628_v57, %v1332_v55  ;;  %v7193_v57 = vld [vmem:[#allocation6_spill] sm:$0xff] }
 0x72d   : > { %v1811_v31 = vpop.permute.xlu1 %1810 }
 0x72e   : > { %v1852_v47 = vsel %vm278_vm8, %v1811_v31, %v1843_v10 }
 0x72f   : > { %v1932_v63 = vmul.f32 %v1924_v9, %v1852_v47  ;;  %v7195_v47 = vld [vmem:[#allocation10_spill] sm:$0xff] }
 0x731   : > { %v1940_v62 = vadd.f32 %v1932_v63, %v1636_v18 }
 0x733   : > { %v1972_v17 = vmul.f32 %v1964_v23, %v1940_v62  ;;  %v7196_v62 = vld [vmem:[#allocation9_spill] sm:$0xff] }
 0x735   : > { %2032 = vmatmul.f32.gmra.mxu2 %v1972_v17 }
 0x73b   : > { %v2782_v26 = vpop.permute.xlu0 %2781 }
 0x73c   : > { %v2710_v56 = vpop.permute.xlu1 %2709  ;;  %3696 = vmatpush.xpose.msk.msrb.mxu2 %vm2711_vm9, %v2782_v26 }
 0x73d   : > { %3693 = vmatpush.xpose.msk.msrb.mxu0 %vm2711_vm9, %v2710_v56 }
 0x73f   : > { %3697 = vmatmul.msk.f32.vlgmr.msrb.gmra.mxu2 %vm2711_vm9, %v2780_v39 }
 0x740   : > { %3694 = vmatmul.msk.f32.vlgmr.msrb.gmra.mxu0 %vm2711_vm9, %v5890_v13 }
 0x742   : > { %v2083_v11 = vpop.f32.mrf.mxu3 }
 0x743   : > { %v2084_v45 = vadd.f32 %v6084_v7, %v2083_v11 }
 0x745   : > { %v2107_v21 = vadd.f32 %v2084_v45, %v7192_v36  ;;  %v2776_v36 = vld [vmem:[%s6824_s2 + $0x80] sm:$0xff] }
 0x747   : > { %v2115_v38 = vsel %vm367_vm1, %v2107_v21, 0.0 }
 0x74a   : > { %v2086_v40 = vpop.f32.mrf.mxu3 }
 0x74b   : > { %v2087_v20 = vadd.f32 %v6084_v7, %v2086_v40 }
 0x74d   : > { %v2108_v55 = vadd.f32 %v2087_v20, %v7193_v57 }
 0x74e   : > { %v2021_v0 = vpop.f32.mrf.mxu2 }
 0x74f   : > { %3671 = vmatmul.msk.f32.gmra.mxu3 %vm367_vm1, %v2021_v0  ;;  %v2118_v18 = vsel %vm367_vm1, %v2108_v55, 0.0 }
 0x752   : > { %v2089_v46 = vpop.f32.mrf.mxu3 }
 0x753   : > { %v2090_v27 = vadd.f32 %v6084_v7, %v2089_v46 }
 0x755   : > { %v6088_v53 = vadd.f32 %v2090_v27, %v7190_v52 }
 0x757   : > { %v2121_v16 = vsel %vm367_vm1, %v6088_v53, 0.0 }
 0x773   : > { %v2024_v30 = vpop.f32.mrf.mxu2 }
 0x774   : > { %3672 = vmatmul.msk.f32.gmra.mxu3 %vm367_vm1, %v2024_v30 }
 0x77b   : > { %v2027_v14 = vpop.f32.mrf.mxu2 }
 0x77c   : > { %3673 = vmatmul.msk.f32.gmra.mxu3 %vm367_vm1, %v2027_v14 }
 0x783   : > { %v2030_v28 = vpop.f32.mrf.mxu2 }
 0x784   : > { %3674 = vmatmul.msk.f32.gmra.mxu3 %vm367_vm1, %v2030_v28 }
 0x7b8   : > { %v2033_v35 = vpop.f32.mrf.mxu2 }
 0x7b9   : > { %3675 = vmatmul.msk.f32.gmra.mxu3 %vm367_vm1, %v2033_v35 }
 0x7bd   : > { %v2733_v48 = vpop.f32.mrf.mxu0 }
 0x7be   : > { %v2736_v32 = vmul.f32 0.25, %v2733_v48 }
 0x7c0   : > { %v2738_v12 = vsel %vm2737_vm10, %v2736_v32, -inf }
 0x7c1   : > { %2739 = vmax.xlane.f32.xlu1 %v2738_v12 }
 0x7c2   : > { %v2804_v61 = vpop.f32.mrf.mxu2 }
 0x7c3   : > { %v2807_v3 = vmul.f32 0.25, %v2804_v61 }
 0x7c5   : > { %v2808_v50 = vsel %vm2737_vm10, %v2807_v3, -inf }
 0x7c6   : > { %2809 = vmax.xlane.f32.xlu0 %v2808_v50 }
 0x7d2   : > { %v2092_v54 = vpop.f32.mrf.mxu3 }
 0x7d3   : > { %v2093_v29 = vadd.f32 %v6084_v7, %v2092_v54  ;;  %v7197_v54 = vld [vmem:[#allocation11_spill] sm:$0xff] }
 0x7d5   : > { %v2110_v10 = vadd.f32 %v2093_v29, %v7194_v37 }
 0x7d7   : > { %v2124_v9 = vsel %vm367_vm1, %v2110_v10, 0.0 }
 0x7da   : > { %2749 = vrot.lane.b32.xlu0 %v5890_v13, %s4298_s8  ;;  %s4327_s8 = smov 104  }
 0x7f7   : > { %v2095_v24 = vpop.f32.mrf.mxu3 }
 0x7f8   : > { %v2096_v2 = vadd.f32 %v6084_v7, %v2095_v24 }
 0x7fa   : > { %v6118_v23 = vadd.f32 %v2096_v2, %v7196_v62  ;;  %v2319_v2 = vld [vmem:[%s6824_s2 + $0x70] sm:$0xff] }
 0x7fb   : > { %v2318_v62 = vld [vmem:[%s6824_s2 + $0x10] sm:$0xff] }
 0x7fc   : > { %v2127_v17 = vsel %vm367_vm1, %v6118_v23, 0.0 }
 0x7ff   : > { %v2098_v42 = vpop.f32.mrf.mxu3 }
 0x800   : > { %v2099_v31 = vadd.f32 %v6084_v7, %v2098_v42 }
 0x802   : > { %v2112_v1 = vadd.f32 %v2099_v31, %v7195_v47  ;;  %v2778_v47 = vld [vmem:[%s6824_s2 + $0x140] sm:$0xff] }
 0x803   : > { %2862 = vmatpush.msra.mxu2 %v2778_v47 }
 0x804   : > { %2122 = vadd.xlane.f32.xlu0 %v2121_v16  ;;  %v2130_v63 = vsel %vm367_vm1, %v2112_v1, 0.0 }
 0x807   : > { %v6092_v44 = vpop.f32.mrf.mxu3 }
 0x808   : > { %v2102_v27 = vadd.f32 %v6084_v7, %v6092_v44 }
 0x80a   : > { %v6135_v24 = vadd.f32 %v2102_v27, %v7197_v54 }
 0x834   : > { %v2740_v8 = vpop.xlane.xlu1 %2739 }
 0x835   : > { %v2741_v59 = vsub.f32 %v2736_v32, %v2740_v8 }
 0x837   : > { %v2742_v60 = vmul.f32 1.442695, %v2741_v59  ;;  %v2133_v59 = vsel %vm367_vm1, %v6135_v24, 0.0 }
 0x839   : > { %4131 = vpow2.f32 %v2742_v60  ;;  %v2810_v49 = vpop.xlane.xlu0 %2809 }
 0x83a   : > { %v2811_v19 = vsub.f32 %v2807_v3, %v2810_v49 }
 0x83c   : > { %v2812_v43 = vmul.f32 1.442695, %v2811_v19  ;;  %v2104_v51 = vpop.f32.mrf.mxu3 }
 0x83d   : > { %v2105_v4 = vadd.f32 %v6084_v7, %v2104_v51 }
 0x83e   : > { %4133 = vpow2.f32 %v2812_v43 }
 0x83f   : > { %v4132_v41 = vpop.eup %4131  ;;  %v6096_v22 = vadd.f32 %v2105_v4, %v7191_v58 }
 0x840   : > { %v2744_v15 = vsel %vm2737_vm10, %v4132_v41, 0.0 }
 0x841   : > { %2745 = vadd.xlane.f32.xlu2 %v2744_v15  ;;  %v2136_v33 = vsel %vm367_vm1, %v6096_v22, 0.0 }
 0x842   : > { %2137 = vadd.xlane.f32.xlu0 %v2136_v33 }
 0x844   : > { %v4134_v34 = vpop.eup %4133 }
 0x845   : > { %v2814_v25 = vsel %vm2737_vm10, %v4134_v34, 0.0 }
 0x846   : > { %2815 = vadd.xlane.f32.xlu1 %v2814_v25 }
 0x84c   : > { %v2750_v6 = vpop.permute.xlu0 %2749 }
 0x84d   : > { %2770 = vmatpush.msra.mxu0 %v2750_v6 }
 0x84e   : > { %2116 = vadd.xlane.f32.xlu1 %v2115_v38 }
 0x856   : > { %2119 = vadd.xlane.f32.xlu1 %v2118_v18 }
 0x859   : > { %2819 = vrot.lane.b32.xlu2 %v5890_v13, %s4285_s17  ;;  %v4299_v13 = vmov 32.0   ;;  %s3571_s17 = scalar_lea.hbm %s6829_s7, %s4392_s28 }
 0x85a   : > { %4135 = vrcp.f32 %v4299_v13  ;;  %s3575_s19 = sshll.u32 %s3571_s17, 4  ;;  %s3576_s19 = int_to_ptr.hbm [resolvable:$true] %s3575_s19 }
 0x85b   : > { %s4218_s21 = sshra.s32 %s3576_s19, 4  ;;  %s4219_s21 = int_to_ptr.hbm [resolvable:$true] %s4218_s21 }
 0x85c   : > { %s4220_s18 = scalar_lea.hbm %s4219_s21, 1  ;;  %p4225_p0 = scmp.lt.s32.totalorder %s4219_s21, %s6829_s7 }
 0x85d   : > { %p4221_p11 = scmp.ne.s32.totalorder %s4219_s21, %s4220_s18  ;;  %p4226_p1 = scmp.lt.s32.totalorder %s4224_s29, %s4220_s18 }
 0x85e   : > { %2125 = vadd.xlane.f32.xlu1 %v2124_v9  ;;  %v2775_v9 = vld [vmem:[%s6824_s2 + $0x20] sm:$0xff] }
 0x85f   : > { %p4222_p12 = pnand %p4221_p11, %p4409_p5  ;;  %p4227_p2 = por %p4226_p1, %p4225_p0 }
 0x860   : > { %v4136_v26 = vpop.eup %4135 }
 0x861   : > { %v2140_v56 = vmul.f32 32.0, %v4136_v26  ;;  %vm2144_vm11 = vweird.f32 %v4136_v26  ;;  %p4223_p13 = pneg %p4222_p12 }
 0x863   : > { %v2141_v0 = vsub.f32 1.0, %v2140_v56  ;;  %p4228_p3 = pnand %p4227_p2, %p4223_p13 }
 0x865   : > { %v2142_v30 = vmul.f32 %v4136_v26, %v2141_v0 }
 0x866   : > { %2131 = vadd.xlane.f32.xlu1 %v2130_v63  ;;  %v2320_v63 = vld [vmem:[%s6824_s2 + $0xd0] sm:$0xff] }
 0x867   : > { %v2143_v32 = vadd.f32 %v4136_v26, %v2142_v30 }
 0x869   : > { %v6123_v61 = vsel %vm2144_vm11, %v4136_v26, %v2143_v32 }
 0x877   : > { %v2123_v60 = vpop.xlane.xlu0 %2122 }
 0x878   : > { %v2148_v7 = vmul.f32 %v6123_v61, %v2123_v60  ;;  %v6223_v60 = vld [vmem:[%s6826_s4 + $0x4] ss:$0 sm:$0xff] }
 0x87a   : > { %v6151_v4 = vsub.f32 %v6088_v53, %v2148_v7 }
 0x882   : > { %2128 = vadd.xlane.f32.xlu2 %v2127_v17 }
 0x8b4   : > { %v2746_v39 = vpop.xlane.xlu2 %2745 }
 0x8b5   : > { %4137 = vrcp.f32 %v2746_v39  ;;  %v2138_v6 = vpop.xlane.xlu0 %2137 }
 0x8b6   : > { %v2153_v57 = vmul.f32 %v6123_v61, %v2138_v6 }
 0x8b8   : > { %v6175_v18 = vsub.f32 %v6096_v22, %v2153_v57  ;;  %v2777_v22 = vld [vmem:[%s6824_s2 + $0xe0] sm:$0xff] }
 0x8b9   : > { %v2816_v14 = vpop.xlane.xlu1 %2815  ;;  %2863 = vmatpush.msra.mxu2 %v2777_v22 }
 0x8ba   : > { %4139 = vrcp.f32 %v2816_v14 }
 0x8bb   : > { %v4138_v28 = vpop.eup %4137 }
 0x8bc   : > { %v2748_v35 = vmul.f32 %v4138_v28, %v4132_v41  ;;  %v2820_v48 = vpop.permute.xlu2 %2819 }
 0x8bd   : > { %2840 = vmatpush.msrb.mxu0 %v2820_v48 }
 0x8be   : > { %3695 = vmatmul.msk.f32.vlgmr.msra.gmra.mxu0 %vm2737_vm10, %v2748_v35 }
 0x8bf   : > { %2885 = vmatpush.msra.mxu0 %v2776_v36 }
 0x8c0   : > { %v4140_v12 = vpop.eup %4139 }
 0x8c1   : > { %v2117_v3 = vpop.xlane.xlu1 %2116  ;;  %v2818_v11 = vmul.f32 %v4140_v12, %v4134_v34  ;;  %v2164_v34 = vmul.f32 %v6151_v4, %v6151_v4  ;;  %2886 = vmatpush.msra.mxu0 %v2775_v9 }
 0x8c2   : > { %v2146_v50 = vmul.f32 %v6123_v61, %v2117_v3 }
 0x8c3   : > { %v2176_v25 = vsel %vm367_vm1, %v2164_v34, 0.0 }
 0x8c4   : > { %v6126_v40 = vsub.f32 %v2107_v21, %v2146_v50 }
 0x8c6   : > { %3698 = vmatmul.msk.f32.vlgmr.msrb.gmra.mxu0 %vm2737_vm10, %v2818_v11  ;;  %v2162_v46 = vmul.f32 %v6126_v40, %v6126_v40 }
 0x8c8   : > { %v2170_v52 = vsel %vm367_vm1, %v2162_v46, 0.0 }
 0x8c9   : > { %2171 = vadd.xlane.f32.xlu1 %v2170_v52  ;;  %v2120_v16 = vpop.xlane.xlu1 %2119 }
 0x8ca   : > { %v2147_v42 = vmul.f32 %v6123_v61, %v2120_v16 }
 0x8cc   : > { %v6138_v8 = vsub.f32 %v2108_v55, %v2147_v42 }
 0x8ce   : > { %v2163_v43 = vmul.f32 %v6138_v8, %v6138_v8 }
 0x8d0   : > { %v2173_v41 = vsel %vm367_vm1, %v2163_v43, 0.0 }
 0x8d1   : > { %2134 = vadd.xlane.f32.xlu1 %v2133_v59  ;;  %v2126_v49 = vpop.xlane.xlu1 %2125 }
 0x8d2   : > { %v2149_v19 = vmul.f32 %v6123_v61, %v2126_v49 }
 0x8d4   : > { %v6144_v44 = vsub.f32 %v2110_v10, %v2149_v19  ;;  %v2169_v10 = vmul.f32 %v6175_v18, %v6175_v18 }
 0x8d6   : > { %v2165_v51 = vmul.f32 %v6144_v44, %v6144_v44  ;;  %v2191_v31 = vsel %vm367_vm1, %v2169_v10, 0.0 }
 0x8d8   : > { %v2179_v58 = vsel %vm367_vm1, %v2165_v51, 0.0 }
 0x8d9   : > { %2174 = vadd.xlane.f32.xlu1 %v2173_v41  ;;  %2180 = vadd.xlane.f32.xlu2 %v2179_v58  ;;  %v2132_v15 = vpop.xlane.xlu1 %2131 }
 0x8da   : > { %v2151_v33 = vmul.f32 %v6123_v61, %v2132_v15 }
 0x8dc   : > { %v6158_v45 = vsub.f32 %v2112_v1, %v2151_v33  ;;  %v2321_v1 = vld [vmem:[%s6824_s2 + $0x130] sm:$0xff] }
 0x8dd   : > { %2360 = vmatpush.msra.mxu1 %v2321_v1 }
 0x8de   : > { %v2167_v53 = vmul.f32 %v6158_v45, %v6158_v45 }
 0x8df   : > { %2361 = vmatpush.msra.mxu1 %v2320_v63 }
 0x8e0   : > { %v2185_v21 = vsel %vm367_vm1, %v2167_v53, 0.0 }
 0x8e1   : > { %2177 = vadd.xlane.f32.xlu1 %v2176_v25  ;;  %2362 = vmatpush.msra.mxu1 %v2319_v2 }
 0x8e3   : > { %2363 = vmatpush.msra.mxu1 %v2318_v62 }
 0x8e9   : > { %2186 = vadd.xlane.f32.xlu1 %v2185_v21 }
 0x8f5   : > { %v2129_v20 = vpop.xlane.xlu2 %2128 }
 0x8f6   : > { %v2150_v38 = vmul.f32 %v6123_v61, %v2129_v20 }
 0x8f8   : > { %v6170_v55 = vsub.f32 %v6118_v23, %v2150_v38 }
 0x8fa   : > { %v2166_v29 = vmul.f32 %v6170_v55, %v6170_v55 }
 0x8fc   : > { %v2182_v37 = vsel %vm367_vm1, %v2166_v29, 0.0 }
 0x8fd   : > { %2183 = vadd.xlane.f32.xlu0 %v2182_v37 }
 0x905   : > { %2192 = vadd.xlane.f32.xlu0 %v2191_v31 }
 0x93b   : > { %v2772_v23 = vpop.f32.mrf.mxu0 }
 0x93c   : > { %3700 = vmatmul.msk.f32.vlgmr.msra.gmra.mxu0 %vm2711_vm9, %v2772_v23  ;;  %v2172_v17 = vpop.xlane.xlu1 %2171 }
 0x93d   : > { %v2194_v13 = vmul.f32 %v2172_v17, %v6123_v61 }
 0x93f   : > { %v2202_v26 = vadd.f32 1e-05, %v2194_v13 }
 0x941   : > { %4141 = vrsqrt.f32 %v2202_v26  ;;  %vm2216_vm13 = vweird.f32 %v2202_v26 }
 0x943   : > { %v2842_v56 = vpop.f32.mrf.mxu0 }
 0x944   : > { %3699 = vmatmul.msk.f32.vlgmr.msra.gmra.mxu2 %vm2711_vm9, %v2842_v56  ;;  %v2135_v39 = vpop.xlane.xlu1 %2134 }
 0x945   : > { %v2152_v0 = vmul.f32 %v6123_v61, %v2135_v39 }
 0x947   : > { %v4142_v30 = vpop.eup %4141  ;;  %v6207_v14 = vsub.f32 %v6135_v24, %v2152_v0  ;;  %v6217_v24 = vld [vmem:[%s6826_s4 + $0x3] ss:$0 sm:$0xff] }
 0x948   : > { %v2211_v28 = vmul.f32 %v4142_v30, %v2202_v26  ;;  %vm2217_vm12 = vweird.f32 %v4142_v30 }
 0x949   : > { %v2168_v35 = vmul.f32 %v6207_v14, %v6207_v14  ;;  %vm2218_vm14 = vmor %vm2216_vm13, %vm2217_vm12 }
 0x94a   : > { %v2212_v48 = vmul.f32 %v4142_v30, %v2211_v28 }
 0x94b   : > { %v2188_v32 = vsel %vm367_vm1, %v2168_v35, 0.0 }
 0x94c   : > { %v2213_v12 = vmul.f32 0.5, %v2212_v48  ;;  %v2181_v3 = vpop.xlane.xlu2 %2180  ;;  %2189 = vadd.xlane.f32.xlu2 %v2188_v32  ;;  %v2175_v50 = vpop.xlane.xlu1 %2174 }
 0x94d   : > { %v2197_v11 = vmul.f32 %v2181_v3, %v6123_v61  ;;  %v2195_v46 = vmul.f32 %v2175_v50, %v6123_v61 }
 0x94e   : > { %v2214_v27 = vsub.f32 1.5, %v2213_v12 }
 0x94f   : > { %v2205_v52 = vadd.f32 1e-05, %v2197_v11  ;;  %v2203_v16 = vadd.f32 1e-05, %v2195_v46 }
 0x950   : > { %v2215_v54 = vmul.f32 %v4142_v30, %v2214_v27 }
 0x951   : > { %4143 = vrsqrt.f32 %v2205_v52  ;;  %vm2226_vm0 = vweird.f32 %v2203_v16  ;;  %vm2246_vm12 = vweird.f32 %v2205_v52 }
 0x952   : > { %v2219_v42 = vsel %vm2218_vm14, %v4142_v30, %v2215_v54  ;;  %4145 = vrsqrt.f32 %v2203_v16 }
 0x953   : > { %v2290_v59 = vmul.f32 %v2219_v42, %v6126_v40 }
 0x954   : > { %v2178_v49 = vpop.xlane.xlu1 %2177 }
 0x955   : > { %v2300_v19 = vmul.f32 %v6217_v24, %v2290_v59  ;;  %v2196_v7 = vmul.f32 %v2178_v49, %v6123_v61 }
 0x957   : > { %v4144_v43 = vpop.eup %4143  ;;  %v2204_v51 = vadd.f32 1e-05, %v2196_v7  ;;  %v6228_v41 = vadd.f32 %v6223_v60, %v2300_v19 }
 0x958   : > { %v4146_v58 = vpop.eup %4145  ;;  %v2241_v15 = vmul.f32 %v4144_v43, %v2205_v52  ;;  %vm2247_vm10 = vweird.f32 %v4144_v43 }
 0x959   : > { %v2221_v33 = vmul.f32 %v4146_v58, %v2203_v16  ;;  %4147 = vrsqrt.f32 %v2204_v51  ;;  %3676 = vmatmul.msk.f32.vlgmr.msra.gmra.mxu1 %vm367_vm1, %v6228_v41  ;;  %vm2227_vm15 = vweird.f32 %v4146_v58  ;;  %vm2236_vm9 = vweird.f32 %v2204_v51  ;;  %vm2248_vm13 = vmor %vm2246_vm12, %vm2247_vm10 }
 0x95a   : > { %v2242_v34 = vmul.f32 %v4144_v43, %v2241_v15  ;;  %vm2228_vm2 = vmor %vm2226_vm0, %vm2227_vm15  ;;  %v2402_v15 = vld [vmem:[%s6825_s3 + $0x50] sm:$0xff] }
 0x95b   : > { %v2222_v40 = vmul.f32 %v4146_v58, %v2221_v33 }
 0x95c   : > { %v2187_v6 = vpop.xlane.xlu1 %2186  ;;  %v2243_v20 = vmul.f32 0.5, %v2242_v34  ;;  %v2400_v34 = vld [vmem:[%s6825_s3 + $0x30] sm:$0xff] }
 0x95d   : > { %v2223_v25 = vmul.f32 0.5, %v2222_v40  ;;  %v2199_v37 = vmul.f32 %v2187_v6, %v6123_v61  ;;  %v2401_v40 = vld [vmem:[%s6825_s3 + $0x40] sm:$0xff] }
 0x95e   : > { %v2244_v9 = vsub.f32 1.5, %v2243_v20 }
 0x95f   : > { %v4148_v53 = vpop.eup %4147  ;;  %v2224_v36 = vsub.f32 1.5, %v2223_v25  ;;  %v2207_v1 = vadd.f32 1e-05, %v2199_v37  ;;  %v4065_v37 = vld [vmem:[%s6826_s4 + $0x9] ss:$0 sm:$0xff] }
 0x960   : > { %v2231_v21 = vmul.f32 %v4148_v53, %v2204_v51  ;;  %vm2237_vm5 = vweird.f32 %v4148_v53  ;;  %v2245_v62 = vmul.f32 %v4144_v43, %v2244_v9 }
 0x961   : > { %v2225_v38 = vmul.f32 %v4146_v58, %v2224_v36  ;;  %vm2238_vm11 = vmor %vm2236_vm9, %vm2237_vm5  ;;  %4149 = vrsqrt.f32 %v2207_v1  ;;  %vm2266_vm5 = vweird.f32 %v2207_v1  ;;  %v2398_v36 = vld [vmem:[%s6825_s3 + $0x10] sm:$0xff] }
 0x962   : > { %v2232_v57 = vmul.f32 %v4148_v53, %v2231_v21  ;;  %v2249_v17 = vsel %vm2248_vm13, %v4144_v43, %v2245_v62  ;;  %v2397_v21 = vld [vmem:[%s6825_s3] sm:$0xff] }
 0x963   : > { %v2229_v29 = vsel %vm2228_vm2, %v4146_v58, %v2225_v38  ;;  %v2293_v39 = vmul.f32 %v2249_v17, %v6144_v44 }
 0x964   : > { %v2233_v10 = vmul.f32 0.5, %v2232_v57  ;;  %v2291_v31 = vmul.f32 %v2229_v29, %v6138_v8 }
 0x966   : > { %v2234_v47 = vsub.f32 1.5, %v2233_v10  ;;  %v2301_v22 = vmul.f32 %v6217_v24, %v2291_v31 }
 0x967   : > { %v4150_v0 = vpop.eup %4149 }
 0x968   : > { %v2235_v63 = vmul.f32 %v4148_v53, %v2234_v47  ;;  %v6236_v2 = vadd.f32 %v6223_v60, %v2301_v22  ;;  %v2261_v35 = vmul.f32 %v4150_v0, %v2207_v1  ;;  %vm2267_vm15 = vweird.f32 %v4150_v0 }
 0x969   : > { %vm2268_vm9 = vmor %vm2266_vm5, %vm2267_vm15 }
 0x96a   : > { %v2239_v23 = vsel %vm2238_vm11, %v4148_v53, %v2235_v63  ;;  %3677 = vmatmul.msk.f32.gmra.mxu1 %vm367_vm1, %v6236_v2  ;;  %v2262_v48 = vmul.f32 %v4150_v0, %v2261_v35  ;;  %v2399_v53 = vld [vmem:[%s6825_s3 + $0x20] sm:$0xff] }
 0x96b   : > { %v2292_v8 = vmul.f32 %v2239_v23, %v6151_v4  ;;  %v2303_v4 = vmul.f32 %v6217_v24, %v2293_v39  ;;  %v4200_v23 = vld [vmem:[%s6828_s6] sm:$0xff] }
 0x96c   : > { %v2263_v44 = vmul.f32 0.5, %v2262_v48  ;;  %v4066_v35 = vld [vmem:[%s6826_s4 + $0x5] ss:$0 sm:$0xff] }
 0x96d   : > { %v2302_v13 = vmul.f32 %v6217_v24, %v2292_v8  ;;  %v6251_v32 = vadd.f32 %v6223_v60, %v2303_v4 }
 0x96e   : > { %v2264_v11 = vsub.f32 1.5, %v2263_v44 }
 0x96f   : > { %v6243_v26 = vadd.f32 %v6223_v60, %v2302_v13 }
 0x970   : > { %v2184_v56 = vpop.xlane.xlu0 %2183  ;;  %v2265_v52 = vmul.f32 %v4150_v0, %v2264_v11 }
 0x971   : > { %v2198_v30 = vmul.f32 %v2184_v56, %v6123_v61 }
 0x972   : > { %3678 = vmatmul.msk.f32.gmra.mxu1 %vm367_vm1, %v6243_v26  ;;  %v2269_v59 = vsel %vm2268_vm9, %v4150_v0, %v2265_v52 }
 0x973   : > { %v2206_v28 = vadd.f32 1e-05, %v2198_v30  ;;  %v2295_v7 = vmul.f32 %v2269_v59, %v6158_v45  ;;  %v2403_v45 = vld [vmem:[%s6825_s3 + $0x60] sm:$0xff] }
 0x975   : > { %4151 = vrsqrt.f32 %v2206_v28  ;;  %vm2256_vm0 = vweird.f32 %v2206_v28  ;;  %v2305_v43 = vmul.f32 %v6217_v24, %v2295_v7 }
 0x977   : > { %v6265_v51 = vadd.f32 %v6223_v60, %v2305_v43 }
 0x978   : > { %v2193_v58 = vpop.xlane.xlu0 %2192 }
 0x979   : > { %v2201_v33 = vmul.f32 %v2193_v58, %v6123_v61 }
 0x97a   : > { %3679 = vmatmul.msk.f32.gmra.mxu1 %vm367_vm1, %v6251_v32 }
 0x97b   : > { %v4152_v12 = vpop.eup %4151  ;;  %v2209_v25 = vadd.f32 1e-05, %v2201_v33 }
 0x97c   : > { %v2251_v3 = vmul.f32 %v4152_v12, %v2206_v28  ;;  %vm2257_vm14 = vweird.f32 %v4152_v12 }
 0x97d   : > { %vm2258_vm2 = vmor %vm2256_vm0, %vm2257_vm14  ;;  %4153 = vrsqrt.f32 %v2209_v25  ;;  %vm2286_vm14 = vweird.f32 %v2209_v25  ;;  %vm2407_vm0 = vcmask 523264  }
 0x97e   : > { %v2252_v50 = vmul.f32 %v4152_v12, %v2251_v3 }
 0x980   : > { %v2253_v46 = vmul.f32 0.5, %v2252_v50 }
 0x982   : > { %v2254_v27 = vsub.f32 1.5, %v2253_v46 }
 0x983   : > { %v4154_v20 = vpop.eup %4153 }
 0x984   : > { %v2255_v16 = vmul.f32 %v4152_v12, %v2254_v27  ;;  %v2281_v29 = vmul.f32 %v4154_v20, %v2209_v25  ;;  %vm2287_vm11 = vweird.f32 %v4154_v20 }
 0x985   : > { %vm2288_vm15 = vmor %vm2286_vm14, %vm2287_vm11 }
 0x986   : > { %v2259_v54 = vsel %vm2258_vm2, %v4152_v12, %v2255_v16  ;;  %v2282_v10 = vmul.f32 %v4154_v20, %v2281_v29 }
 0x987   : > { %v2294_v42 = vmul.f32 %v2259_v54, %v6170_v55  ;;  %v2404_v55 = vld [vmem:[%s6825_s3 + $0x70] sm:$0xff] }
 0x988   : > { %2440 = vmatpush.msrb.mxu3 %v2404_v55  ;;  %v2283_v63 = vmul.f32 0.5, %v2282_v10 }
 0x989   : > { %v2304_v49 = vmul.f32 %v6217_v24, %v2294_v42 }
 0x98a   : > { %2441 = vmatpush.msrb.mxu3 %v2403_v45  ;;  %v2284_v56 = vsub.f32 1.5, %v2283_v63 }
 0x98b   : > { %v6258_v19 = vadd.f32 %v6223_v60, %v2304_v49 }
 0x98c   : > { %2442 = vmatpush.msrb.mxu3 %v2402_v15  ;;  %v2285_v30 = vmul.f32 %v4154_v20, %v2284_v56 }
 0x98d   : > { %3680 = vmatmul.msk.f32.gmra.mxu1 %vm367_vm1, %v6258_v19 }
 0x98e   : > { %2443 = vmatpush.msrb.mxu3 %v2401_v40  ;;  %v2289_v44 = vsel %vm2288_vm15, %v4154_v20, %v2285_v30  ;;  %v6334_v20 = vld [vmem:[%s6826_s4 + $0x6] ss:$0 sm:$0xff] }
 0x98f   : > { %v2297_v27 = vmul.f32 %v2289_v44, %v6175_v18  ;;  %v2995_v44 = vld [vmem:[%s6824_s2 + $0x90] sm:$0xff] }
 0x990   : > { %2444 = vmatpush.msrb.mxu3 %v2400_v34 }
 0x991   : > { %v2307_v52 = vmul.f32 %v6217_v24, %v2297_v27 }
 0x992   : > { %2445 = vmatpush.msrb.mxu3 %v2399_v53 }
 0x994   : > { %2446 = vmatpush.msrb.mxu3 %v2398_v36 }
 0x995   : > { %3681 = vmatmul.msk.f32.gmra.mxu1 %vm367_vm1, %v6265_v51 }
 0x996   : > { %2447 = vmatpush.msrb.mxu3 %v2397_v21 }
 0x9b9   : > { %v2888_v31 = vpop.f32.mrf.mxu0 }
 0x9bf   : > { %v2190_v6 = vpop.xlane.xlu2 %2189 }
 0x9c0   : > { %v2200_v38 = vmul.f32 %v2190_v6, %v6123_v61 }
 0x9c2   : > { %v2208_v57 = vadd.f32 1e-05, %v2200_v38 }
 0x9c4   : > { %4155 = vrsqrt.f32 %v2208_v57  ;;  %vm2276_vm12 = vweird.f32 %v2208_v57 }
 0x9c7   : > { %v2865_v9 = vpop.f32.mrf.mxu2 }
 0x9c8   : > { %v2889_v47 = vadd.f32 %v2888_v31, %v2865_v9 }
 0x9ca   : > { %v4156_v22 = vpop.eup %4155  ;;  %v2893_v1 = vadd.f32 %v4065_v37, %v2889_v47 }
 0x9cb   : > { %v2271_v62 = vmul.f32 %v4156_v22, %v2208_v57  ;;  %vm2277_vm10 = vweird.f32 %v4156_v22 }
 0x9cc   : > { %v2894_v8 = vadd.f32 %v4200_v23, %v2893_v1  ;;  %vm2278_vm13 = vmor %vm2276_vm12, %vm2277_vm10 }
 0x9cd   : > { %v2272_v17 = vmul.f32 %v4156_v22, %v2271_v62 }
 0x9ce   : > { %v2895_v13 = vsel %vm367_vm1, %v2894_v8, 0.0 }
 0x9cf   : > { %v2273_v39 = vmul.f32 0.5, %v2272_v17  ;;  %2896 = vadd.xlane.f32.xlu1 %v2895_v13 }
 0x9d1   : > { %v2274_v0 = vsub.f32 1.5, %v2273_v39 }
 0x9d3   : > { %v2275_v28 = vmul.f32 %v4156_v22, %v2274_v0 }
 0x9d5   : > { %v2279_v4 = vsel %vm2278_vm13, %v4156_v22, %v2275_v28 }
 0x9d6   : > { %v2365_v48 = vpop.f32.mrf.mxu1  ;;  %v2296_v12 = vmul.f32 %v2279_v4, %v6207_v14  ;;  %v6316_v14 = vadd.f32 %v6223_v60, %v2307_v52 }
 0x9d7   : > { %v2366_v3 = vadd.f32 %v4066_v35, %v2365_v48 }
 0x9d8   : > { %v2306_v50 = vmul.f32 %v6217_v24, %v2296_v12  ;;  %v2997_v12 = vld [vmem:[%s6824_s2 + $0x150] sm:$0xff] }
 0x9d9   : > { %v2389_v11 = vmax.f32 %v2366_v3, 0.0  ;;  %3014 = vmatpush.msrb.mxu0 %v2997_v12 }
 0x9da   : > { %v6308_v46 = vadd.f32 %v6223_v60, %v2306_v50 }
 0x9db   : > { %3684 = vmatmul.msk.f32.vlgmr.msrb.gmra.mxu3 %vm2407_vm0, %v2389_v11 }
 0x9dc   : > { %3682 = vmatmul.msk.f32.gmra.mxu1 %vm367_vm1, %v6308_v46 }
 0x9e4   : > { %3683 = vmatmul.msk.f32.gmra.mxu1 %vm367_vm1, %v6316_v14 }
 0x9e7   : > { %v2368_v16 = vpop.f32.mrf.mxu1 }
 0x9e8   : > { %v2369_v54 = vadd.f32 %v4066_v35, %v2368_v16 }
 0x9ea   : > { %v2390_v42 = vmax.f32 %v2369_v54, 0.0 }
 0x9ec   : > { %3685 = vmatmul.msk.f32.gmra.mxu3 %vm2407_vm0, %v2390_v42 }
 0x9ef   : > { %v2371_v59 = vpop.f32.mrf.mxu1 }
 0x9f0   : > { %v2372_v18 = vadd.f32 %v4066_v35, %v2371_v59 }
 0x9f2   : > { %v2391_v49 = vmax.f32 %v2372_v18, 0.0  ;;  %v4068_v18 = vld [vmem:[%s6826_s4 + $0xa] ss:$0 sm:$0xff] }
 0x9f4   : > { %3686 = vmatmul.msk.f32.gmra.mxu3 %vm2407_vm0, %v2391_v49 }
 0x9f7   : > { %v2374_v7 = vpop.f32.mrf.mxu1 }
 0x9f8   : > { %v2375_v43 = vadd.f32 %v4066_v35, %v2374_v7 }
 0x9fa   : > { %v2392_v55 = vmax.f32 %v2375_v43, 0.0  ;;  %v4069_v43 = vld [vmem:[%s6826_s4 + $0xb] ss:$0 sm:$0xff] }
 0x9fc   : > { %3687 = vmatmul.msk.f32.gmra.mxu3 %vm2407_vm0, %v2392_v55 }
 0xa0a   : > { %v2377_v24 = vpop.f32.mrf.mxu1 }
 0xa0b   : > { %v2378_v60 = vadd.f32 %v4066_v35, %v2377_v24 }
 0xa0d   : > { %v2393_v45 = vmax.f32 %v2378_v60, 0.0 }
 0xa0f   : > { %3688 = vmatmul.msk.f32.gmra.mxu3 %vm2407_vm0, %v2393_v45 }
 0xa12   : > { %v2380_v58 = vpop.f32.mrf.mxu1 }
 0xa13   : > { %v2381_v15 = vadd.f32 %v4066_v35, %v2380_v58 }
 0xa15   : > { %v2394_v33 = vmax.f32 %v2381_v15, 0.0 }
 0xa17   : > { %3689 = vmatmul.msk.f32.gmra.mxu3 %vm2407_vm0, %v2394_v33 }
 0xa42   : > { %v2897_v40 = vpop.xlane.xlu1 %2896 }
 0xa43   : > { %v2898_v34 = vmul.f32 %v2897_v40, %v6123_v61 }
 0xa45   : > { %v6326_v25 = vsub.f32 %v2894_v8, %v2898_v34 }
 0xa47   : > { %v2900_v53 = vmul.f32 %v6326_v25, %v6326_v25 }
 0xa49   : > { %v2901_v36 = vsel %vm367_vm1, %v2900_v53, 0.0 }
 0xa4a   : > { %2902 = vadd.xlane.f32.xlu2 %v2901_v36 }
 0xa59   : > { %v2383_v21 = vpop.f32.mrf.mxu1 }
 0xa5a   : > { %v2384_v6 = vadd.f32 %v4066_v35, %v2383_v21 }
 0xa5c   : > { %v2395_v38 = vmax.f32 %v2384_v6, 0.0 }
 0xa5e   : > { %v2449_v57 = vpop.f32.mrf.mxu3  ;;  %3690 = vmatmul.msk.f32.gmra.mxu3 %vm2407_vm0, %v2395_v38 }
 0xa5f   : > { %v2450_v29 = vadd.f32 %v6334_v20, %v2449_v57 }
 0xa61   : > { %v2473_v37 = vadd.f32 %v2450_v29, %v6228_v41  ;;  %v2386_v10 = vpop.f32.mrf.mxu1 }
 0xa62   : > { %v2387_v31 = vadd.f32 %v4066_v35, %v2386_v10 }
 0xa63   : > { %v2481_v9 = vsel %vm367_vm1, %v2473_v37, 0.0 }
 0xa64   : > { %v2396_v47 = vmax.f32 %v2387_v31, 0.0  ;;  %2482 = vadd.xlane.f32.xlu0 %v2481_v9 }
 0xa66   : > { %3691 = vmatmul.msk.f32.gmra.mxu3 %vm2407_vm0, %v2396_v47 }
 0xa6f   : > { %v2452_v22 = vpop.f32.mrf.mxu3 }
 0xa70   : > { %v2453_v1 = vadd.f32 %v6334_v20, %v2452_v22 }
 0xa72   : > { %v6343_v63 = vadd.f32 %v2453_v1, %v6236_v2 }
 0xa74   : > { %v2484_v62 = vsel %vm367_vm1, %v6343_v63, 0.0 }
 0xa75   : > { %2485 = vadd.xlane.f32.xlu1 %v2484_v62 }
 0xa77   : > { %v2455_v23 = vpop.f32.mrf.mxu3 }
 0xa78   : > { %v2456_v41 = vadd.f32 %v6334_v20, %v2455_v23 }
 0xa7a   : > { %v6349_v8 = vadd.f32 %v2456_v41, %v6243_v26 }
 0xa7c   : > { %v2487_v17 = vsel %vm367_vm1, %v6349_v8, 0.0 }
 0xa7d   : > { %2488 = vadd.xlane.f32.xlu2 %v2487_v17 }
 0xa7f   : > { %v2458_v13 = vpop.f32.mrf.mxu3 }
 0xa80   : > { %v2459_v56 = vadd.f32 %v6334_v20, %v2458_v13 }
 0xa82   : > { %v6355_v2 = vadd.f32 %v2459_v56, %v6251_v32 }
 0xa84   : > { %v2490_v39 = vsel %vm367_vm1, %v6355_v2, 0.0 }
 0xa85   : > { %2491 = vadd.xlane.f32.xlu0 %v2490_v39 }
 0xa92   : > { %v2461_v0 = vpop.f32.mrf.mxu3 }
 0xa93   : > { %v2462_v30 = vadd.f32 %v6334_v20, %v2461_v0 }
 0xa95   : > { %v6361_v26 = vadd.f32 %v2462_v30, %v6258_v19  ;;  %v2996_v19 = vld [vmem:[%s6824_s2 + $0xf0] sm:$0xff] }
 0xa96   : > { %3015 = vmatpush.msrb.mxu0 %v2996_v19 }
 0xa97   : > { %v2493_v28 = vsel %vm367_vm1, %v6361_v26, 0.0 }
 0xa98   : > { %2494 = vadd.xlane.f32.xlu1 %v2493_v28  ;;  %3016 = vmatpush.msrb.mxu0 %v2995_v44 }
 0xa9a   : > { %v2464_v35 = vpop.f32.mrf.mxu3 }
 0xa9b   : > { %v2465_v4 = vadd.f32 %v6334_v20, %v2464_v35  ;;  %v2926_v35 = vld [vmem:[%s6824_s2 + $0x148] sm:$0xff] }
 0xa9c   : > { %2965 = vmatpush.msrb.mxu2 %v2926_v35 }
 0xa9d   : > { %v6367_v32 = vadd.f32 %v2465_v4, %v6265_v51  ;;  %v2994_v51 = vld [vmem:[%s6824_s2 + $0x30] sm:$0xff]  ;;  %v2925_v4 = vld [vmem:[%s6824_s2 + $0xe8] sm:$0xff] }
 0xa9e   : > { %3017 = vmatpush.msrb.mxu0 %v2994_v51  ;;  %2966 = vmatpush.msrb.mxu2 %v2925_v4  ;;  %v2998_v51 = vld [vmem:[%s6828_s6 + $0x8] sm:$0xff] }
 0xa9f   : > { %v2496_v48 = vsel %vm367_vm1, %v6367_v32, 0.0 }
 0xaa0   : > { %2497 = vadd.xlane.f32.xlu2 %v2496_v48  ;;  %v2923_v48 = vld [vmem:[%s6824_s2 + $0x28] sm:$0xff] }
 0xabd   : > { %v2903_v3 = vpop.xlane.xlu2 %2902 }
 0xabe   : > { %v2904_v50 = vmul.f32 %v2903_v3, %v6123_v61 }
 0xac0   : > { %v2905_v11 = vadd.f32 1e-05, %v2904_v50 }
 0xac2   : > { %4157 = vrsqrt.f32 %v2905_v11  ;;  %vm2912_vm5 = vweird.f32 %v2905_v11 }
 0xac8   : > { %v4158_v27 = vpop.eup %4157 }
 0xac9   : > { %v2907_v52 = vmul.f32 %v4158_v27, %v2905_v11  ;;  %vm2913_vm2 = vweird.f32 %v4158_v27 }
 0xaca   : > { %vm2914_vm9 = vmor %vm2912_vm5, %vm2913_vm2 }
 0xacb   : > { %v2908_v16 = vmul.f32 %v4158_v27, %v2907_v52 }
 0xacd   : > { %v2909_v54 = vmul.f32 0.5, %v2908_v16 }
 0xacf   : > { %v2910_v42 = vsub.f32 1.5, %v2909_v54 }
 0xad1   : > { %v2911_v59 = vmul.f32 %v4158_v27, %v2910_v42 }
 0xad3   : > { %v2915_v49 = vsel %vm2914_vm9, %v4158_v27, %v2911_v59  ;;  %v4301_v27 = vmov 8   ;;  %v4302_v59 = vmov 0  }
 0xad4   : > { %v2916_v7 = vmul.f32 %v2915_v49, %v6326_v25  ;;  %4035 = vset.pattern.permute.xlu2 %v4301_v27  ;;  %4033 = vset.pattern.permute.xlu0 %v4302_v59 }
 0xad6   : > { %v2919_v55 = vmul.f32 %v4068_v18, %v2916_v7 }
 0xad7   : > { %v2483_v24 = vpop.xlane.xlu0 %2482 }
 0xad8   : > { %v2505_v60 = vmul.f32 %v2483_v24, %v6123_v61  ;;  %v6392_v45 = vadd.f32 %v4069_v43, %v2919_v55  ;;  %v4303_v55 = vmov 12  }
 0xada   : > { %v6394_v58 = vsub.f32 %v2473_v37, %v2505_v60  ;;  %3709 = vmatmul.msk.f32.vlgmr.msrb.gmra.mxu0 %vm367_vm1, %v6392_v45 }
 0xadc   : > { %v2521_v15 = vmul.f32 %v6394_v58, %v6394_v58 }
 0xade   : > { %v2529_v33 = vsel %vm367_vm1, %v2521_v15, 0.0 }
 0xadf   : > { %2530 = vadd.xlane.f32.xlu0 %v2529_v33 }
 0xae1   : > { %v2467_v40 = vpop.f32.mrf.mxu3 }
 0xae2   : > { %v2468_v34 = vadd.f32 %v6334_v20, %v2467_v40 }
 0xae4   : > { %v2479_v25 = vadd.f32 %v2468_v34, %v6308_v46 }
 0xae6   : > { %v2499_v53 = vsel %vm367_vm1, %v2479_v25, 0.0 }
 0xae7   : > { %2500 = vadd.xlane.f32.xlu1 %v2499_v53 }
 0xae8   : > { %v2486_v36 = vpop.xlane.xlu1 %2485 }
 0xae9   : > { %v2506_v21 = vmul.f32 %v2486_v36, %v6123_v61  ;;  %v2470_v6 = vpop.f32.mrf.mxu3  ;;  %v6479_v36 = vld [vmem:[%s6826_s4 + $0x7] ss:$0 sm:$0xff] }
 0xaea   : > { %v2471_v38 = vadd.f32 %v6334_v20, %v2470_v6 }
 0xaeb   : > { %v6407_v57 = vsub.f32 %v6343_v63, %v2506_v21 }
 0xaec   : > { %v6410_v29 = vadd.f32 %v2471_v38, %v6316_v14 }
 0xaed   : > { %v2522_v37 = vmul.f32 %v6407_v57, %v6407_v57 }
 0xaee   : > { %v2502_v46 = vsel %vm367_vm1, %v6410_v29, 0.0 }
 0xaef   : > { %2503 = vadd.xlane.f32.xlu0 %v2502_v46  ;;  %v2532_v10 = vsel %vm367_vm1, %v2522_v37, 0.0 }
 0xaf0   : > { %v2489_v31 = vpop.xlane.xlu2 %2488  ;;  %2533 = vadd.xlane.f32.xlu2 %v2532_v10 }
 0xaf1   : > { %v2507_v9 = vmul.f32 %v2489_v31, %v6123_v61 }
 0xaf3   : > { %v6419_v20 = vsub.f32 %v6349_v8, %v2507_v9 }
 0xaf5   : > { %v2523_v14 = vmul.f32 %v6419_v20, %v6419_v20 }
 0xaf7   : > { %v2535_v47 = vsel %vm367_vm1, %v2523_v14, 0.0 }
 0xaf8   : > { %v2492_v22 = vpop.xlane.xlu0 %2491  ;;  %2536 = vadd.xlane.f32.xlu1 %v2535_v47 }
 0xaf9   : > { %v2508_v1 = vmul.f32 %v2492_v22, %v6123_v61 }
 0xafb   : > { %v6426_v63 = vsub.f32 %v6355_v2, %v2508_v1 }
 0xafd   : > { %v2524_v62 = vmul.f32 %v6426_v63, %v6426_v63 }
 0xaff   : > { %v2538_v23 = vsel %vm367_vm1, %v2524_v62, 0.0 }
 0xb00   : > { %2539 = vadd.xlane.f32.xlu2 %v2538_v23 }
 0xb0b   : > { %v2495_v41 = vpop.xlane.xlu1 %2494 }
 0xb0c   : > { %v2509_v8 = vmul.f32 %v2495_v41, %v6123_v61 }
 0xb0e   : > { %v6433_v17 = vsub.f32 %v6361_v26, %v2509_v8  ;;  %v4300_v26 = vmov 4  }
 0xb0f   : > { %4034 = vset.pattern.permute.xlu1 %v4300_v26 }
 0xb10   : > { %v2525_v13 = vmul.f32 %v6433_v17, %v6433_v17 }
 0xb12   : > { %v2541_v56 = vsel %vm367_vm1, %v2525_v13, 0.0 }
 0xb13   : > { %v2498_v39 = vpop.xlane.xlu2 %2497  ;;  %2542 = vadd.xlane.f32.xlu0 %v2541_v56 }
 0xb14   : > { %v2510_v2 = vmul.f32 %v2498_v39, %v6123_v61 }
 0xb16   : > { %v6440_v0 = vsub.f32 %v6367_v32, %v2510_v2  ;;  %v2924_v32 = vld [vmem:[%s6824_s2 + $0x88] sm:$0xff] }
 0xb17   : > { %2967 = vmatpush.msrb.mxu2 %v2924_v32 }
 0xb18   : > { %v2526_v30 = vmul.f32 %v6440_v0, %v6440_v0 }
 0xb19   : > { %2968 = vmatpush.msrb.mxu2 %v2923_v48 }
 0xb1a   : > { %v2544_v28 = vsel %vm367_vm1, %v2526_v30, 0.0 }
 0xb1b   : > { %2545 = vadd.xlane.f32.xlu1 %v2544_v28 }
 0xb52   : > { %v2531_v12 = vpop.xlane.xlu0 %2530 }
 0xb53   : > { %v2553_v19 = vmul.f32 %v2531_v12, %v6123_v61 }
 0xb55   : > { %v2561_v44 = vadd.f32 1e-05, %v2553_v19 }
 0xb57   : > { %4159 = vrsqrt.f32 %v2561_v44  ;;  %v3019_v3 = vpop.f32.mrf.mxu0  ;;  %vm2575_vm11 = vweird.f32 %v2561_v44 }
 0xb58   : > { %v6461_v50 = vadd.f32 %v3019_v3, %v2998_v51 }
 0xb5a   : > { %3057 = vperm.xlu1 %4034, %v6461_v50   ;;  %v2501_v11 = vpop.xlane.xlu1 %2500 }
 0xb5b   : > { %v2511_v52 = vmul.f32 %v2501_v11, %v6123_v61 }
 0xb5d   : > { %v4160_v16 = vpop.eup %4159  ;;  %v6465_v54 = vsub.f32 %v2479_v25, %v2511_v52  ;;  %v4304_v52 = vmov 9  }
 0xb5e   : > { %v2570_v42 = vmul.f32 %v4160_v16, %v2561_v44  ;;  %vm2576_vm10 = vweird.f32 %v4160_v16 }
 0xb5f   : > { %v2527_v18 = vmul.f32 %v6465_v54, %v6465_v54  ;;  %vm2577_vm12 = vmor %vm2575_vm11, %vm2576_vm10 }
 0xb60   : > { %v2571_v49 = vmul.f32 %v4160_v16, %v2570_v42 }
 0xb61   : > { %v2547_v7 = vsel %vm367_vm1, %v2527_v18, 0.0 }
 0xb62   : > { %v2572_v43 = vmul.f32 0.5, %v2571_v49  ;;  %4036 = vset.pattern.permute.xlu1 %v4303_v55  ;;  %v2504_v24 = vpop.xlane.xlu0 %2503  ;;  %2548 = vadd.xlane.f32.xlu2 %v2547_v7 }
 0xb63   : > { %v2512_v60 = vmul.f32 %v2504_v24, %v6123_v61  ;;  %3066 = vperm.xlu1 %4036, %v6461_v50   ;;  %v2534_v15 = vpop.xlane.xlu2 %2533 }
 0xb64   : > { %v2573_v33 = vsub.f32 1.5, %v2572_v43  ;;  %v2554_v40 = vmul.f32 %v2534_v15, %v6123_v61 }
 0xb65   : > { %v6474_v34 = vsub.f32 %v6410_v29, %v2512_v60  ;;  %v6488_v29 = vld [vmem:[%s6826_s4 + $0x8] ss:$0 sm:$0xff] }
 0xb66   : > { %v2574_v25 = vmul.f32 %v4160_v16, %v2573_v33  ;;  %v2562_v53 = vadd.f32 1e-05, %v2554_v40 }
 0xb67   : > { %v2528_v21 = vmul.f32 %v6474_v34, %v6474_v34 }
 0xb68   : > { %v2578_v6 = vsel %vm2577_vm12, %v4160_v16, %v2574_v25  ;;  %4161 = vrsqrt.f32 %v2562_v53  ;;  %vm2585_vm14 = vweird.f32 %v2562_v53 }
 0xb69   : > { %v2649_v38 = vmul.f32 %v2578_v6, %v6394_v58  ;;  %v2550_v37 = vsel %vm367_vm1, %v2528_v21, 0.0 }
 0xb6a   : > { %2551 = vadd.xlane.f32.xlu0 %v2550_v37 }
 0xb6b   : > { %v2659_v46 = vmul.f32 %v6479_v36, %v2649_v38  ;;  %v2537_v10 = vpop.xlane.xlu1 %2536  ;;  %4039 = vset.pattern.permute.xlu1 %v4304_v52  ;;  %v4305_v38 = vmov 5  }
 0xb6c   : > { %v2555_v31 = vmul.f32 %v2537_v10, %v6123_v61 }
 0xb6d   : > { %v2669_v9 = vadd.f32 %v6488_v29, %v2659_v46 }
 0xb6e   : > { %v4162_v14 = vpop.eup %4161  ;;  %v2563_v47 = vadd.f32 1e-05, %v2555_v31 }
 0xb6f   : > { %v2580_v22 = vmul.f32 %v4162_v14, %v2562_v53  ;;  %3701 = vmatmul.msk.f32.vlgmr.msrb.gmra.mxu2 %vm367_vm1, %v2669_v9  ;;  %vm2586_vm13 = vweird.f32 %v4162_v14 }
 0xb70   : > { %4163 = vrsqrt.f32 %v2563_v47  ;;  %vm2587_vm15 = vmor %vm2585_vm14, %vm2586_vm13  ;;  %vm2595_vm5 = vweird.f32 %v2563_v47  ;;  %vm3022_vm13 = vcmask 162944  }
 0xb71   : > { %v2581_v58 = vmul.f32 %v4162_v14, %v2580_v22  ;;  %v3023_v43 = vsel %vm3022_vm13, %v6461_v50, -inf }
 0xb73   : > { %v2582_v1 = vmul.f32 0.5, %v2581_v58  ;;  %v2540_v62 = vpop.xlane.xlu2 %2539 }
 0xb74   : > { %v2556_v23 = vmul.f32 %v2540_v62, %v6123_v61 }
 0xb75   : > { %v2583_v41 = vsub.f32 1.5, %v2582_v1 }
 0xb76   : > { %v4164_v8 = vpop.eup %4163  ;;  %v2564_v13 = vadd.f32 1e-05, %v2556_v23 }
 0xb77   : > { %v2584_v56 = vmul.f32 %v4162_v14, %v2583_v41  ;;  %v2590_v39 = vmul.f32 %v4164_v8, %v2563_v47  ;;  %vm2596_vm2 = vweird.f32 %v4164_v8 }
 0xb78   : > { %4165 = vrsqrt.f32 %v2564_v13  ;;  %vm2597_vm9 = vmor %vm2595_vm5, %vm2596_vm2  ;;  %vm2605_vm11 = vweird.f32 %v2564_v13  ;;  %vm3026_vm5 = vcmask 195744  }
 0xb79   : > { %v2588_v2 = vsel %vm2587_vm15, %v4162_v14, %v2584_v56  ;;  %v2591_v30 = vmul.f32 %v4164_v8, %v2590_v39  ;;  %v3027_v62 = vsel %vm3026_vm5, %v6461_v50, -inf  ;;  %v4307_v56 = vmov 14  }
 0xb7a   : > { %3062 = vperm.xlu2 %4035, %v6461_v50   ;;  %v2650_v28 = vmul.f32 %v2588_v2, %v6407_v57  ;;  %v4308_v39 = vmov 7   ;;  %v4310_v2 = vmov 10  }
 0xb7b   : > { %v2592_v26 = vmul.f32 0.5, %v2591_v30 }
 0xb7c   : > { %v2660_v35 = vmul.f32 %v6479_v36, %v2650_v28  ;;  %v4311_v28 = vmov 3  }
 0xb7d   : > { %v2593_v4 = vsub.f32 1.5, %v2592_v26 }
 0xb7e   : > { %v4166_v32 = vpop.eup %4165  ;;  %3053 = vperm.xlu0 %4033, %v6461_v50   ;;  %v2670_v48 = vadd.f32 %v6488_v29, %v2660_v35 }
 0xb7f   : > { %v2594_v12 = vmul.f32 %v4164_v8, %v2593_v4  ;;  %v2600_v19 = vmul.f32 %v4166_v32, %v2564_v13  ;;  %vm2606_vm10 = vweird.f32 %v4166_v32  ;;  %v4306_v13 = vmov 2  }
 0xb80   : > { %3702 = vmatmul.msk.f32.gmra.mxu2 %vm367_vm1, %v2670_v48  ;;  %vm2607_vm12 = vmor %vm2605_vm11, %vm2606_vm10 }
 0xb81   : > { %v2598_v44 = vsel %vm2597_vm9, %v4164_v8, %v2594_v12  ;;  %v2601_v51 = vmul.f32 %v4166_v32, %v2600_v19 }
 0xb82   : > { %v2651_v57 = vmul.f32 %v2598_v44, %v6419_v20  ;;  %4038 = vset.pattern.permute.xlu2 %v4305_v38 }
 0xb83   : > { %v2602_v3 = vmul.f32 0.5, %v2601_v51  ;;  %v4312_v51 = vmov 15  }
 0xb84   : > { %v2661_v11 = vmul.f32 %v6479_v36, %v2651_v57 }
 0xb85   : > { %v2603_v27 = vsub.f32 1.5, %v2602_v3 }
 0xb86   : > { %v2543_v16 = vpop.xlane.xlu0 %2542  ;;  %v2671_v42 = vadd.f32 %v6488_v29, %v2661_v11 }
 0xb87   : > { %v2604_v59 = vmul.f32 %v4166_v32, %v2603_v27  ;;  %v2557_v18 = vmul.f32 %v2543_v16, %v6123_v61 }
 0xb88   : > { %3703 = vmatmul.msk.f32.gmra.mxu2 %vm367_vm1, %v2671_v42 }
 0xb89   : > { %v2608_v49 = vsel %vm2607_vm12, %v4166_v32, %v2604_v59  ;;  %v2565_v7 = vadd.f32 1e-05, %v2557_v18 }
 0xb8a   : > { %v2652_v20 = vmul.f32 %v2608_v49, %v6426_v63 }
 0xb8b   : > { %4167 = vrsqrt.f32 %v2565_v7  ;;  %vm2615_vm15 = vweird.f32 %v2565_v7 }
 0xb8c   : > { %v2662_v55 = vmul.f32 %v6479_v36, %v2652_v20  ;;  %v6537_v20 = vld [vmem:[%s6826_s4 + $0x18] ss:$0 sm:$0xff] }
 0xb8d   : > { %3024 = vmax.xlane.f32.xlu1 %v3023_v43 }
 0xb8e   : > { %v2546_v24 = vpop.xlane.xlu1 %2545  ;;  %v2672_v60 = vadd.f32 %v6488_v29, %v2662_v55 }
 0xb8f   : > { %v2558_v15 = vmul.f32 %v2546_v24, %v6123_v61 }
 0xb90   : > { %3704 = vmatmul.msk.f32.gmra.mxu2 %vm367_vm1, %v2672_v60 }
 0xb91   : > { %v4168_v33 = vpop.eup %4167  ;;  %v2566_v40 = vadd.f32 1e-05, %v2558_v15 }
 0xb92   : > { %v2610_v25 = vmul.f32 %v4168_v33, %v2565_v7  ;;  %vm2616_vm14 = vweird.f32 %v4168_v33 }
 0xb93   : > { %4169 = vrsqrt.f32 %v2566_v40  ;;  %vm2617_vm2 = vmor %vm2615_vm15, %vm2616_vm14  ;;  %vm2625_vm10 = vweird.f32 %v2566_v40 }
 0xb94   : > { %v2611_v53 = vmul.f32 %v4168_v33, %v2610_v25 }
 0xb96   : > { %v2612_v21 = vmul.f32 0.5, %v2611_v53 }
 0xb98   : > { %v2613_v63 = vsub.f32 1.5, %v2612_v21 }
 0xb99   : > { %v4170_v6 = vpop.eup %4169 }
 0xb9a   : > { %v2614_v37 = vmul.f32 %v4168_v33, %v2613_v63  ;;  %v2620_v46 = vmul.f32 %v4170_v6, %v2566_v40  ;;  %vm2626_vm9 = vweird.f32 %v4170_v6  ;;  %v6548_v63 = vld [vmem:[%s6826_s4 + $0x17] ss:$0 sm:$0xff] }
 0xb9b   : > { %vm2627_vm11 = vmor %vm2625_vm10, %vm2626_vm9  ;;  %vm3505_vm9 = vcmask 744448  }
 0xb9c   : > { %v2618_v10 = vsel %vm2617_vm2, %v4168_v33, %v2614_v37  ;;  %v2621_v31 = vmul.f32 %v4170_v6, %v2620_v46 }
 0xb9d   : > { %v2653_v9 = vmul.f32 %v2618_v10, %v6433_v17 }
 0xb9e   : > { %v2622_v14 = vmul.f32 0.5, %v2621_v31 }
 0xb9f   : > { %v2663_v47 = vmul.f32 %v6479_v36, %v2653_v9 }
 0xba0   : > { %v2623_v22 = vsub.f32 1.5, %v2622_v14 }
 0xba1   : > { %v2673_v58 = vadd.f32 %v6488_v29, %v2663_v47 }
 0xba2   : > { %v2624_v1 = vmul.f32 %v4170_v6, %v2623_v22 }
 0xba3   : > { %3705 = vmatmul.msk.f32.gmra.mxu2 %vm367_vm1, %v2673_v58  ;;  %3028 = vmax.xlane.f32.xlu2 %v3027_v62  ;;  %v4313_v58 = vmov 1  }
 0xba4   : > { %v2628_v23 = vsel %vm2627_vm11, %v4170_v6, %v2624_v1  ;;  %4037 = vset.pattern.permute.xlu0 %v4313_v58  ;;  %vm3539_vm11 = vcmask 31760  }
 0xba5   : > { %v2654_v41 = vmul.f32 %v2628_v23, %v6440_v0  ;;  %v4309_v0 = vmov 13  }
 0xba6   : > { %3100 = vperm.xlu1 %4039, %v6461_v50  }
 0xba7   : > { %v2664_v17 = vmul.f32 %v6479_v36, %v2654_v41 }
 0xba9   : > { %v2674_v8 = vadd.f32 %v6488_v29, %v2664_v17 }
 0xbab   : > { %3706 = vmatmul.msk.f32.gmra.mxu2 %vm367_vm1, %v2674_v8  ;;  %v4315_v8 = vmov 6  }
 0xbae   : > { %4041 = vset.pattern.permute.xlu1 %v4306_v13 }
 0xbaf   : > { %3129 = vperm.xlu1 %4041, %v6461_v50  }
 0xbb7   : > { %4044 = vset.pattern.permute.xlu1 %v4307_v56 }
 0xbb8   : > { %3142 = vperm.xlu1 %4044, %v6461_v50  }
 0xbbb   : > { %3095 = vperm.xlu2 %4038, %v6461_v50  }
 0xbc0   : > { %4046 = vset.pattern.permute.xlu1 %v4308_v39 }
 0xbc1   : > { %3171 = vperm.xlu1 %4046, %v6461_v50  }
 0xbc3   : > { %4040 = vset.pattern.permute.xlu2 %v4309_v0  ;;  %v4316_v0 = vmov 11  }
 0xbc4   : > { %3104 = vperm.xlu2 %4040, %v6461_v50  }
 0xbcc   : > { %4043 = vset.pattern.permute.xlu2 %v4310_v2  ;;  %v3058_v30 = vpop.permute.xlu1 %3057 }
 0xbcd   : > { %3138 = vperm.xlu2 %4043, %v6461_v50  }
 0xbd5   : > { %4045 = vset.pattern.permute.xlu2 %v4311_v28  ;;  %v2549_v26 = vpop.xlane.xlu2 %2548  ;;  %v3067_v32 = vpop.permute.xlu1 %3066 }
 0xbd6   : > { %v2559_v35 = vmul.f32 %v2549_v26, %v6123_v61  ;;  %3167 = vperm.xlu2 %4045, %v6461_v50  }
 0xbd8   : > { %v2567_v4 = vadd.f32 1e-05, %v2559_v35 }
 0xbda   : > { %4171 = vrsqrt.f32 %v2567_v4  ;;  %vm2635_vm13 = vweird.f32 %v2567_v4 }
 0xbdd   : > { %v2552_v48 = vpop.xlane.xlu0 %2551  ;;  %v3063_v12 = vpop.permute.xlu2 %3062 }
 0xbde   : > { %v2560_v19 = vmul.f32 %v2552_v48, %v6123_v61  ;;  %v3069_v44 = vsel %vm278_vm8, %v3063_v12, %v3067_v32  ;;  %4048 = vset.pattern.permute.xlu2 %v4312_v51  ;;  %v4317_v48 = vmov 16   ;;  %v4072_v12 = vld [vmem:[%s6826_s4 + $0xc] ss:$0 sm:$0xff]  ;;  %v4318_v51 = vmov 21  }
 0xbdf   : > { %3180 = vperm.xlu2 %4048, %v6461_v50   ;;  %v3083_v43 = vsub.f32 %v3069_v44, %v6537_v20  ;;  %4052 = vset.pattern.permute.xlu1 %v4318_v51 }
 0xbe0   : > { %v4172_v57 = vpop.eup %4171  ;;  %v2568_v3 = vadd.f32 1e-05, %v2560_v19 }
 0xbe1   : > { %v2630_v11 = vmul.f32 %v4172_v57, %v2567_v4  ;;  %vm2636_vm12 = vweird.f32 %v4172_v57  ;;  %v3084_v33 = vand.u32 2147483647, %v3083_v43 }
 0xbe2   : > { %4173 = vrsqrt.f32 %v2568_v3  ;;  %vm2637_vm14 = vmor %vm2635_vm13, %vm2636_vm12  ;;  %vm2645_vm2 = vweird.f32 %v2568_v3  ;;  %vm3530_vm12 = vcmask 15360   ;;  %vm3560_vm13 = vcmask 24576  }
 0xbe3   : > { %v2631_v27 = vmul.f32 %v4172_v57, %v2630_v11  ;;  %v3085_v38 = vsub.f32 1.0, %v3084_v33  ;;  %v4324_v33 = vmov 23  }
 0xbe5   : > { %v2632_v52 = vmul.f32 0.5, %v2631_v27  ;;  %v3086_v9 = vmax.f32 %v3085_v38, 0.0 }
 0xbe7   : > { %v2633_v16 = vsub.f32 1.5, %v2632_v52 }
 0xbe8   : > { %v4174_v42 = vpop.eup %4173 }
 0xbe9   : > { %v2634_v59 = vmul.f32 %v4172_v57, %v2633_v16  ;;  %v2640_v18 = vmul.f32 %v4174_v42, %v2568_v3  ;;  %vm2646_vm15 = vweird.f32 %v4174_v42 }
 0xbea   : > { %vm2647_vm5 = vmor %vm2645_vm2, %vm2646_vm15 }
 0xbeb   : > { %v2638_v49 = vsel %vm2637_vm14, %v4172_v57, %v2634_v59  ;;  %v2641_v7 = vmul.f32 %v4174_v42, %v2640_v18  ;;  %v4319_v57 = vmov 18  }
 0xbec   : > { %v2655_v55 = vmul.f32 %v2638_v49, %v6465_v54  ;;  %4053 = vset.pattern.permute.xlu2 %v4319_v57 }
 0xbed   : > { %v2642_v24 = vmul.f32 0.5, %v2641_v7 }
 0xbee   : > { %v2665_v60 = vmul.f32 %v6479_v36, %v2655_v55  ;;  %v4322_v55 = vmov 17  }
 0xbef   : > { %v2643_v15 = vsub.f32 1.5, %v2642_v24  ;;  %v4323_v24 = vmov 22  }
 0xbf0   : > { %v3054_v40 = vpop.permute.xlu0 %3053  ;;  %v2675_v25 = vadd.f32 %v6488_v29, %v2665_v60 }
 0xbf1   : > { %v2644_v53 = vmul.f32 %v4174_v42, %v2643_v15  ;;  %v3060_v21 = vsel %vm278_vm8, %v3054_v40, %v3058_v30 }
 0xbf2   : > { %v3079_v54 = vsub.f32 %v3060_v21, %v6548_v63  ;;  %3707 = vmatmul.msk.f32.gmra.mxu2 %vm367_vm1, %v2675_v25  ;;  %v2970_v2 = vpop.f32.mrf.mxu2 }
 0xbf3   : > { %v2648_v6 = vsel %vm2647_vm5, %v4174_v42, %v2644_v53  ;;  %v2971_v49 = vadd.f32 %v4072_v12, %v2970_v2 }
 0xbf4   : > { %v3080_v37 = vand.u32 2147483647, %v3079_v54  ;;  %v2656_v46 = vmul.f32 %v2648_v6, %v6474_v34  ;;  %v4325_v6 = vmov 19  }
 0xbf6   : > { %v3081_v10 = vsub.f32 1.0, %v3080_v37  ;;  %v2666_v31 = vmul.f32 %v6479_v36, %v2656_v46 }
 0xbf8   : > { %v3082_v14 = vmax.f32 %v3081_v10, 0.0  ;;  %v2676_v47 = vadd.f32 %v6488_v29, %v2666_v31 }
 0xbfa   : > { %3708 = vmatmul.msk.f32.gmra.mxu2 %vm367_vm1, %v2676_v47  ;;  %v6556_v22 = vmul.f32 %v3086_v9, %v3082_v14 }
 0xc00   : > { %v3025_v1 = vpop.xlane.xlu1 %3024 }
 0xc03   : > { %v2973_v30 = vpop.f32.mrf.mxu2 }
 0xc04   : > { %v2974_v42 = vadd.f32 %v4072_v12, %v2973_v30 }
 0xc0b   : > { %v2976_v28 = vpop.f32.mrf.mxu2 }
 0xc0c   : > { %v2977_v16 = vadd.f32 %v4072_v12, %v2976_v28 }
 0xc13   : > { %v2979_v26 = vpop.f32.mrf.mxu2 }
 0xc14   : > { %v2980_v52 = vadd.f32 %v4072_v12, %v2979_v26 }
 0xc16   : > { %v3029_v62 = vpop.xlane.xlu2 %3028 }
 0xc17   : > { %v3030_v23 = vsel %vm541_vm6, %v3025_v1, %v3029_v62 }
 0xc18   : > { %3032 = vrot.lane.b32.xlu0 %v3030_v23, %s4314_s9  ;;  %v3101_v34 = vpop.permute.xlu1 %3100  ;;  %s4329_s9 = smov 126  }
 0xc1e   : > { %v6560_v41 = vpop.permute.xlu2 %3095 }
 0xc20   : > { %3091 = vperm.xlu0 %4037, %v6461_v50  }
 0xc21   : > { %v6563_v36 = vpop.permute.xlu1 %3129 }
 0xc26   : > { %v3105_v29 = vpop.permute.xlu2 %3104  ;;  %v2982_v35 = vpop.f32.mrf.mxu2 }
 0xc27   : > { %v6567_v17 = vsel %vm278_vm8, %v3101_v34, %v3105_v29  ;;  %v2983_v27 = vadd.f32 %v4072_v12, %v2982_v35 }
 0xc28   : > { %4042 = vset.pattern.permute.xlu0 %v4315_v8  ;;  %v3121_v14 = vsub.f32 %v6567_v17, %v6537_v20 }
 0xc29   : > { %3133 = vperm.xlu0 %4042, %v6461_v50  }
 0xc2a   : > { %v3143_v13 = vpop.permute.xlu1 %3142  ;;  %v3122_v58 = vand.u32 2147483647, %v3121_v14 }
 0xc2e   : > { %v3139_v56 = vpop.permute.xlu2 %3138  ;;  %v2985_v4 = vpop.f32.mrf.mxu2 }
 0xc2f   : > { %v6572_v39 = vsel %vm278_vm8, %v3139_v56, %v3143_v13  ;;  %v2986_v11 = vadd.f32 %v4072_v12, %v2985_v4 }
 0xc30   : > { %v3159_v29 = vsub.f32 %v6572_v39, %v6537_v20 }
 0xc31   : > { %4047 = vset.pattern.permute.xlu0 %v4316_v0 }
 0xc32   : > { %3176 = vperm.xlu0 %4047, %v6461_v50   ;;  %v3160_v0 = vand.u32 2147483647, %v3159_v29  ;;  %v3302_v29 = vld [vmem:[%s6824_s2 + $0x40] sm:$0xff] }
 0xc33   : > { %v3172_v38 = vpop.permute.xlu1 %3171 }
 0xc36   : > { %v3168_v60 = vpop.permute.xlu2 %3167 }
 0xc3a   : > { %4049 = vset.pattern.permute.xlu0 %v4317_v48 }
 0xc3e   : > { %v3181_v15 = vpop.permute.xlu2 %3180 }
 0xc75   : > { %v2988_v32 = vpop.f32.mrf.mxu2 }
 0xc76   : > { %v2989_v3 = vadd.f32 %v4072_v12, %v2988_v32  ;;  %v3161_v32 = vsub.f32 1.0, %v3160_v0 }
 0xc7d   : > { %v2991_v19 = vpop.f32.mrf.mxu2 }
 0xc7e   : > { %v2992_v44 = vadd.f32 %v4072_v12, %v2991_v19  ;;  %v3162_v12 = vmax.f32 %v3161_v32, 0.0 }
 0xc80   : > { %3710 = vmatpush.msk.msrb.mxu1 %vm1984_vm3, %v2992_v44 }
 0xc82   : > { %3711 = vmatpush.msk.msrb.mxu1 %vm1984_vm3, %v2989_v3 }
 0xc84   : > { %3712 = vmatpush.msk.msrb.mxu1 %vm1984_vm3, %v2986_v11 }
 0xc86   : > { %3713 = vmatpush.msk.msrb.mxu1 %vm1984_vm3, %v2983_v27 }
 0xc88   : > { %3714 = vmatpush.msk.msrb.mxu1 %vm1984_vm3, %v2980_v52 }
 0xc8a   : > { %3715 = vmatpush.msk.msrb.mxu1 %vm1984_vm3, %v2977_v16  ;;  %v3033_v59 = vpop.permute.xlu0 %3032 }
 0xc8b   : > { %v3035_v18 = vsub.f32 %v6461_v50, %v3033_v59  ;;  %v4321_v50 = vmov 20  }
 0xc8c   : > { %3716 = vmatpush.msk.msrb.mxu1 %vm1984_vm3, %v2974_v42 }
 0xc8d   : > { %v3036_v7 = vmul.f32 1.442695, %v3035_v18 }
 0xc8e   : > { %3717 = vmatpush.msk.msrb.mxu1 %vm1984_vm3, %v2971_v49 }
 0xc8f   : > { %4175 = vpow2.f32 %v3036_v7 }
 0xc90   : > { %3718 = vmatpush.msk.msrb.mxu1 %vm1973_vm4, %v2992_v44 }
 0xc92   : > { %3719 = vmatpush.msk.msrb.mxu1 %vm1973_vm4, %v2989_v3  ;;  %v3092_v40 = vpop.permute.xlu0 %3091 }
 0xc93   : > { %v3098_v37 = vsel %vm278_vm8, %v3092_v40, %v6560_v41  ;;  %v3123_v41 = vsub.f32 1.0, %v3122_v58 }
 0xc94   : > { %3720 = vmatpush.msk.msrb.mxu1 %vm1973_vm4, %v2986_v11  ;;  %v3117_v9 = vsub.f32 %v3098_v37, %v6548_v63  ;;  %v3244_v37 = vld [vmem:[%s6824_s2 + $0x38] sm:$0xff] }
 0xc95   : > { %v6601_v43 = vpop.eup %4175  ;;  %v3124_v56 = vmax.f32 %v3123_v41, 0.0  ;;  %v3303_v41 = vld [vmem:[%s6824_s2 + $0xa0] sm:$0xff] }
 0xc96   : > { %3721 = vmatpush.msk.msrb.mxu1 %vm1973_vm4, %v2983_v27  ;;  %3071 = vperm.xlu0 %4049, %v6601_v43   ;;  %v3118_v47 = vand.u32 2147483647, %v3117_v9  ;;  %v3247_v27 = vld [vmem:[%s6824_s2 + $0x158] sm:$0xff] }
 0xc97   : > { %3045 = vrot.lane.b32.xlu2 %v6601_v43, %s4320_s15  ;;  %3039 = vrot.lane.b32.xlu1 %v6601_v43, %s4297_s23 }
 0xc98   : > { %3722 = vmatpush.msk.msrb.mxu1 %vm1973_vm4, %v2980_v52  ;;  %v3119_v23 = vsub.f32 1.0, %v3118_v47  ;;  %3265 = vmatpush.msra.mxu0 %v3247_v27  ;;  %v3245_v52 = vld [vmem:[%s6824_s2 + $0x98] sm:$0xff]  ;;  %v3332_v27 = vld [vmem:[%s6825_s3 + $0x8] sm:$0xff] }
 0xc9a   : > { %3723 = vmatpush.msk.msrb.mxu1 %vm1973_vm4, %v2977_v16  ;;  %v3120_v8 = vmax.f32 %v3119_v23, 0.0 }
 0xc9b   : > { %v3134_v21 = vpop.permute.xlu0 %3133 }
 0xc9c   : > { %3724 = vmatpush.msk.msrb.mxu1 %vm1973_vm4, %v2974_v42  ;;  %v3136_v1 = vsel %vm278_vm8, %v6563_v36, %v3134_v21  ;;  %v3125_v28 = vmul.f32 %v3124_v56, %v3120_v8  ;;  %v3174_v42 = vsel %vm278_vm8, %v3168_v60, %v3172_v38  ;;  %v3339_v8 = vld [vmem:[%s6825_s3 + $0x78] sm:$0xff] }
 0xc9d   : > { %v3155_v34 = vsub.f32 %v3136_v1, %v6548_v63  ;;  %v3193_v18 = vsub.f32 %v3174_v42, %v6548_v63  ;;  %3353 = vmatpush.msra.mxu3 %v3339_v8  ;;  %v3337_v56 = vld [vmem:[%s6825_s3 + $0x58] sm:$0xff] }
 0xc9e   : > { %3725 = vmatpush.msk.msrb.mxu1 %vm1973_vm4, %v2971_v49  ;;  %4050 = vset.pattern.permute.xlu0 %v4321_v50 }
 0xc9f   : > { %3147 = vperm.xlu2 %4053, %v6601_v43   ;;  %3113 = vperm.xlu1 %4052, %v6601_v43   ;;  %v3156_v13 = vand.u32 2147483647, %v3155_v34  ;;  %v3194_v7 = vand.u32 2147483647, %v3193_v18  ;;  %v3305_v34 = vld [vmem:[%s6824_s2 + $0x160] sm:$0xff] }
 0xca0   : > { %3075 = vperm.xlu0 %4050, %v6601_v43  }
 0xca1   : > { %v3157_v26 = vsub.f32 1.0, %v3156_v13  ;;  %v3338_v13 = vld [vmem:[%s6825_s3 + $0x68] sm:$0xff] }
 0xca2   : > { %3354 = vmatpush.msra.mxu3 %v3338_v13 }
 0xca3   : > { %v3158_v39 = vmax.f32 %v3157_v26, 0.0 }
 0xca4   : > { %v3177_v54 = vpop.permute.xlu0 %3176  ;;  %3355 = vmatpush.msra.mxu3 %v3337_v56 }
 0xca5   : > { %v3163_v51 = vmul.f32 %v3162_v12, %v3158_v39  ;;  %v3183_v16 = vsel %vm278_vm8, %v3177_v54, %v3181_v15  ;;  %v4074_v39 = vld [vmem:[%s6826_s4 + $0xe] ss:$0 sm:$0xff] }
 0xca6   : > { %v3197_v59 = vsub.f32 %v3183_v16, %v6537_v20 }
 0xca7   : > { %4056 = vset.pattern.permute.xlu2 %v4324_v33  ;;  %4055 = vset.pattern.permute.xlu1 %v4325_v6 }
 0xca8   : > { %4051 = vset.pattern.permute.xlu0 %v4322_v55  ;;  %v3198_v49 = vand.u32 2147483647, %v3197_v59  ;;  %v4077_v59 = vld [vmem:[%s6826_s4 + $0x11] ss:$0 sm:$0xff] }
 0xca9   : > { %3109 = vperm.xlu0 %4051, %v6601_v43  }
 0xcaa   : > { %v3199_v50 = vsub.f32 1.0, %v3198_v49 }
 0xcb1   : > { %4054 = vset.pattern.permute.xlu0 %v4323_v24  ;;  %v3195_v24 = vsub.f32 1.0, %v3194_v7 }
 0xcb2   : > { %3151 = vperm.xlu0 %4054, %v6601_v43  }
 0xcb3   : > { %v3196_v40 = vmax.f32 %v3195_v24, 0.0 }
 0xcba   : > { %4057 = vset.pattern.permute.xlu0 %v4324_v33  ;;  %v3200_v33 = vmax.f32 %v3199_v50, 0.0 }
 0xcbc   : > { %v3201_v15 = vmul.f32 %v3200_v33, %v3196_v40 }
 0xcf1   : > { %v3046_v25 = vpop.permute.xlu2 %3045 }
 0xcf2   : > { %v3048_v53 = vsel %vm640_vm7, %v3046_v25, 0.0 }
 0xcf3   : > { %3049 = vadd.xlane.f32.xlu2 %v3048_v53 }
 0xcf9   : > { %v3148_v19 = vpop.permute.xlu2 %3147 }
 0xd08   : > { %v3072_v46 = vpop.permute.xlu0 %3071 }
 0xd09   : > { %v3040_v10 = vpop.permute.xlu1 %3039 }
 0xd0a   : > { %v3042_v31 = vsel %vm640_vm7, %v3040_v10, 0.0  ;;  %v4073_v10 = vld [vmem:[%s6826_s4 + $0xd] ss:$0 sm:$0xff] }
 0xd0b   : > { %3189 = vperm.xlu2 %4056, %v6601_v43   ;;  %3043 = vadd.xlane.f32.xlu1 %v3042_v31 }
 0xd11   : > { %v3114_v2 = vpop.permute.xlu1 %3113 }
 0xd12   : > { %v3076_v62 = vpop.permute.xlu0 %3075 }
 0xd13   : > { %v3078_v17 = vsel %vm278_vm8, %v3072_v46, %v3076_v62 }
 0xd14   : > { %v3088_v35 = vmul.f32 %v6556_v22, %v3078_v17  ;;  %v3246_v22 = vld [vmem:[%s6824_s2 + $0xf8] sm:$0xff] }
 0xd15   : > { %3266 = vmatpush.msra.mxu0 %v3246_v22  ;;  %v4076_v22 = vld [vmem:[%s6826_s4 + $0x10] ss:$0 sm:$0xff] }
 0xd17   : > { %3267 = vmatpush.msra.mxu0 %v3245_v52 }
 0xd19   : > { %3268 = vmatpush.msra.mxu0 %v3244_v37 }
 0xd1b   : > { %v3110_v30 = vpop.permute.xlu0 %3109  ;;  %3323 = vmatpush.msrb.mxu0 %v3305_v34  ;;  %v4080_v34 = vld [vmem:[%s6826_s4 + $0x14] ss:$0 sm:$0xff] }
 0xd1c   : > { %v3116_v36 = vsel %vm278_vm8, %v3110_v30, %v3114_v2  ;;  %v3336_v2 = vld [vmem:[%s6825_s3 + $0x48] sm:$0xff] }
 0xd1d   : > { %v3126_v4 = vmul.f32 %v3125_v28, %v3116_v36  ;;  %v3335_v28 = vld [vmem:[%s6825_s3 + $0x38] sm:$0xff]  ;;  %3356 = vmatpush.msra.mxu3 %v3336_v2 }
 0xd1f   : > { %v3127_v48 = vadd.f32 %v3126_v4, %v3088_v35  ;;  %3357 = vmatpush.msra.mxu3 %v3335_v28  ;;  %v4203_v28 = vld [vmem:[%s6828_s6 + $0x8] sm:$0xff] }
 0xd24   : > { %v3152_v44 = vpop.permute.xlu0 %3151  ;;  %3185 = vperm.xlu1 %4055, %v6601_v43  }
 0xd25   : > { %v3154_v57 = vsel %vm278_vm8, %v3148_v19, %v3152_v44  ;;  %v4075_v44 = vld [vmem:[%s6826_s4 + $0xf] ss:$0 sm:$0xff] }
 0xd26   : > { %v3164_v3 = vmul.f32 %v3163_v51, %v3154_v57 }
 0xd28   : > { %v3165_v11 = vadd.f32 %v3164_v3, %v3127_v48  ;;  %v3334_v3 = vld [vmem:[%s6825_s3 + $0x28] sm:$0xff] }
 0xd29   : > { %3358 = vmatpush.msra.mxu3 %v3334_v3 }
 0xd66   : > { %v3050_v43 = vpop.xlane.xlu2 %3049 }
 0xd6e   : > { %v3190_v25 = vpop.permute.xlu2 %3189 }
 0xd7e   : > { %v3044_v55 = vpop.xlane.xlu1 %3043 }
 0xd7f   : > { %4177 = vrcp.f32 %v3044_v55 }
 0xd80   : > { %4179 = vrcp.f32 %v3050_v43 }
 0xd85   : > { %v4178_v21 = vpop.eup %4177 }
 0xd86   : > { %v4180_v54 = vpop.eup %4179 }
 0xd87   : > { %v3206_v6 = vsel %vm278_vm8, %v4178_v21, %v4180_v54 }
 0xd96   : > { %v3186_v53 = vpop.permute.xlu1 %3185 }
 0xd97   : > { %v3192_v60 = vsel %vm278_vm8, %v3186_v53, %v3190_v25  ;;  %v3397_v25 = vld [vmem:[%s6824_s2 + $0x168] sm:$0xff] }
 0xd98   : > { %v3202_v20 = vmul.f32 %v3201_v15, %v3192_v60  ;;  %v3396_v15 = vld [vmem:[%s6824_s2 + $0x108] sm:$0xff] }
 0xd99   : > { %v3395_v53 = vld [vmem:[%s6824_s2 + $0xa8] sm:$0xff] }
 0xd9a   : > { %v3203_v63 = vadd.f32 %v3202_v20, %v3165_v11  ;;  %v3333_v11 = vld [vmem:[%s6825_s3 + $0x18] sm:$0xff]  ;;  %v3394_v60 = vld [vmem:[%s6824_s2 + $0x48] sm:$0xff] }
 0xd9b   : > { %3359 = vmatpush.msra.mxu3 %v3333_v11 }
 0xd9c   : > { %v3207_v38 = vmul.f32 %v3206_v6, %v3203_v63 }
 0xd9d   : > { %3360 = vmatpush.msra.mxu3 %v3332_v27  ;;  %v7198_v27 = vlaneseq }
 0xd9e   : > { %3240 = vmatmul.f32.vlgmr.msrb.gmra.mxu1 %v3207_v38 }
 0xe1b   : > { %v3241_v46 = vpop.f32.mrf.mxu1 }
 0xe1c   : > { %3726 = vmatmul.msk.f32.vlgmr.msra.gmra.mxu0 %vm367_vm1, %v3241_v46 }
 0xe99   : > { %v3270_v31 = vpop.f32.mrf.mxu0 }
 0xe9a   : > { %v3271_v9 = vadd.f32 %v4073_v10, %v3270_v31  ;;  %v4078_v31 = vld [vmem:[%s6826_s4 + $0x12] ss:$0 sm:$0xff] }
 0xe9c   : > { %v3273_v14 = vadd.f32 %v3271_v9, %v6392_v45  ;;  %v3304_v45 = vld [vmem:[%s6824_s2 + $0x100] sm:$0xff] }
 0xe9d   : > { %3324 = vmatpush.msrb.mxu0 %v3304_v45 }
 0xe9e   : > { %v3274_v5 = vsel %vm367_vm1, %v3273_v14, 0.0 }
 0xe9f   : > { %3275 = vadd.xlane.f32.xlu0 %v3274_v5  ;;  %3325 = vmatpush.msrb.mxu0 %v3303_v41 }
 0xea1   : > { %3326 = vmatpush.msrb.mxu0 %v3302_v29 }
 0xea3   : > { %3415 = vmatpush.msra.mxu0 %v3397_v25 }
 0xea5   : > { %3416 = vmatpush.msra.mxu0 %v3396_v15 }
 0xea7   : > { %3417 = vmatpush.msra.mxu0 %v3395_v53 }
 0xea9   : > { %3418 = vmatpush.msra.mxu0 %v3394_v60 }
 0xf12   : > { %v3276_v47 = vpop.xlane.xlu0 %3275 }
 0xf13   : > { %v3277_v58 = vmul.f32 %v3276_v47, %v6123_v61 }
 0xf15   : > { %v3278_v1 = vsub.f32 %v3273_v14, %v3277_v58  ;;  %v3427_v58 = vld [vmem:[%s6824_s2 + $0x170] sm:$0xff] }
 0xf16   : > { %3447 = vmatpush.msra.mxu1 %v3427_v58 }
 0xf17   : > { %v3279_v62 = vmul.f32 %v3278_v1, %v3278_v1 }
 0xf19   : > { %v3280_v23 = vsel %vm367_vm1, %v3279_v62, 0.0  ;;  %v3425_v62 = vld [vmem:[%s6824_s2 + $0xb0] sm:$0xff] }
 0xf1a   : > { %3281 = vadd.xlane.f32.xlu1 %v3280_v23  ;;  %v3424_v23 = vld [vmem:[%s6824_s2 + $0x50] sm:$0xff] }
 0xf8d   : > { %v3282_v0 = vpop.xlane.xlu1 %3281 }
 0xf8e   : > { %v3283_v17 = vmul.f32 %v3282_v0, %v6123_v61 }
 0xf90   : > { %v3284_v30 = vadd.f32 1e-05, %v3283_v17 }
 0xf92   : > { %4181 = vrsqrt.f32 %v3284_v30  ;;  %vm3291_vm4 = vweird.f32 %v3284_v30 }
 0xf98   : > { %v4182_v26 = vpop.eup %4181 }
 0xf99   : > { %v3286_v36 = vmul.f32 %v4182_v26, %v3284_v30  ;;  %vm3292_vm3 = vweird.f32 %v4182_v26 }
 0xf9a   : > { %vm3293_vm6 = vmor %vm3291_vm4, %vm3292_vm3 }
 0xf9b   : > { %v3287_v35 = vmul.f32 %v4182_v26, %v3286_v36  ;;  %v3458_v36 = vld [vmem:[%s6824_s2 + $0x118] sm:$0xff] }
 0xf9d   : > { %v3288_v4 = vmul.f32 0.5, %v3287_v35  ;;  %v3457_v35 = vld [vmem:[%s6824_s2 + $0xb8] sm:$0xff] }
 0xf9f   : > { %v3289_v32 = vsub.f32 1.5, %v3288_v4  ;;  %v3456_v4 = vld [vmem:[%s6824_s2 + $0x58] sm:$0xff] }
 0xfa1   : > { %v3290_v48 = vmul.f32 %v4182_v26, %v3289_v32  ;;  %v4081_v32 = vld [vmem:[%s6826_s4 + $0x15] ss:$0 sm:$0xff] }
 0xfa3   : > { %v3294_v12 = vsel %vm3293_vm6, %v4182_v26, %v3290_v48  ;;  %v3459_v26 = vld [vmem:[%s6824_s2 + $0x178] sm:$0xff] }
 0xfa4   : > { %v3295_v19 = vmul.f32 %v3294_v12, %v3278_v1  ;;  %v3426_v1 = vld [vmem:[%s6824_s2 + $0x110] sm:$0xff]  ;;  %3477 = vmatpush.msrb.mxu3 %v3459_v26 }
 0xfa5   : > { %3448 = vmatpush.msra.mxu1 %v3426_v1 }
 0xfa6   : > { %v3298_v51 = vmul.f32 %v4074_v39, %v3295_v19  ;;  %3478 = vmatpush.msrb.mxu3 %v3458_v36 }
 0xfa7   : > { %3449 = vmatpush.msra.mxu1 %v3425_v62 }
 0xfa8   : > { %v3301_v57 = vadd.f32 %v4075_v44, %v3298_v51  ;;  %3479 = vmatpush.msrb.mxu3 %v3457_v35 }
 0xfa9   : > { %3450 = vmatpush.msra.mxu1 %v3424_v23 }
 0xfaa   : > { %3727 = vmatmul.msk.f32.vlgmr.msrb.gmra.mxu0 %vm367_vm1, %v3301_v57  ;;  %3480 = vmatpush.msrb.mxu3 %v3456_v4 }
0x1027   : > { %v3328_v52 = vpop.f32.mrf.mxu0 }
0x1028   : > { %v3329_v16 = vadd.f32 %v4076_v22, %v3328_v52  ;;  %v3516_v22 = vshrl.u32 %v7198_v27, 7 }
0x102a   : > { %v3331_v42 = vmax.f32 %v3329_v16, 0.0  ;;  %v3517_v16 = vcvt.s32.f32 %v3516_v22 }
0x102c   : > { %3728 = vmatmul.msk.f32.vlgmr.msra.gmra.mxu3 %vm2407_vm0, %v3331_v42 }
0x10af   : > { %v3362_v18 = vpop.f32.mrf.mxu3 }
0x10b0   : > { %v3363_v49 = vadd.f32 %v4077_v59, %v3362_v18  ;;  %v4082_v18 = vld [vmem:[%s6826_s4 + $0x16] ss:$0 sm:$0xff] }
0x10b2   : > { %v3365_v7 = vadd.f32 %v3363_v49, %v3301_v57 }
0x10b4   : > { %v3366_v43 = vsel %vm367_vm1, %v3365_v7, 0.0 }
0x10b5   : > { %3367 = vadd.xlane.f32.xlu2 %v3366_v43 }
0x1128   : > { %v3368_v50 = vpop.xlane.xlu2 %3367 }
0x1129   : > { %v3369_v55 = vmul.f32 %v3368_v50, %v6123_v61 }
0x112b   : > { %v3370_v24 = vsub.f32 %v3365_v7, %v3369_v55 }
0x112d   : > { %v3371_v33 = vmul.f32 %v3370_v24, %v3370_v24 }
0x112f   : > { %v3372_v40 = vsel %vm367_vm1, %v3371_v33, 0.0 }
0x1130   : > { %3373 = vadd.xlane.f32.xlu0 %v3372_v40 }
0x1144   : > { %3486 = vrot.lane.b32.xlu0 %v4203_v28, %s4327_s8  ;;  %s4330_s8 = smov 2  }
0x11a3   : > { %v3374_v21 = vpop.xlane.xlu0 %3373 }
0x11a4   : > { %v3375_v20 = vmul.f32 %v3374_v21, %v6123_v61  ;;  %v4079_v61 = vld [vmem:[%s6826_s4 + $0x13] ss:$0 sm:$0xff] }
0x11a6   : > { %v3376_v54 = vadd.f32 1e-05, %v3375_v20 }
0x11a8   : > { %4183 = vrsqrt.f32 %v3376_v54  ;;  %vm3383_vm8 = vweird.f32 %v3376_v54 }
0x11ae   : > { %v4184_v63 = vpop.eup %4183 }
0x11af   : > { %v3378_v6 = vmul.f32 %v4184_v63, %v3376_v54  ;;  %vm3384_vm7 = vweird.f32 %v4184_v63 }
0x11b0   : > { %vm3385_vm0 = vmor %vm3383_vm8, %vm3384_vm7 }
0x11b1   : > { %v3379_v38 = vmul.f32 %v4184_v63, %v3378_v6 }
0x11b3   : > { %v3380_v37 = vmul.f32 0.5, %v3379_v38 }
0x11b5   : > { %v3381_v46 = vsub.f32 1.5, %v3380_v37  ;;  %v4328_v37 = vmov 0.0  }
0x11b6   : > { %v3487_v43 = vpop.permute.xlu0 %3486 }
0x11b7   : > { %v3382_v10 = vmul.f32 %v4184_v63, %v3381_v46 }
0x11b9   : > { %v3386_v9 = vsel %vm3385_vm0, %v4184_v63, %v3382_v10 }
0x11ba   : > { %v3387_v14 = vmul.f32 %v3386_v9, %v3370_v24 }
0x11bc   : > { %v3390_v5 = vmul.f32 %v4078_v31, %v3387_v14 }
0x11be   : > { %v3393_v47 = vadd.f32 %v4079_v61, %v3390_v5 }
0x11c0   : > { %3729 = vmatmul.msk.f32.vlgmr.msra.gmra.mxu0 %vm367_vm1, %v3393_v47 }
0x123d   : > { %v3420_v45 = vpop.f32.mrf.mxu0 }
0x123e   : > { %v3421_v41 = vadd.f32 %v4080_v34, %v3420_v45 }
0x1240   : > { %v3423_v29 = vmax.f32 %v3421_v41, 0.0  ;;  %v3500_v8 = vsub.f32 0.0, %v3421_v41 }
0x1242   : > { %v3501_v13 = vmul.f32 1.442695, %v3500_v8  ;;  %3431 = vrot.lane.b32.xlu1 %v3423_v29, %s4326_s22 }
0x1244   : > { %4185 = vpow2.f32 %v3501_v13 }
0x124a   : > { %v4186_v56 = vpop.eup %4185 }
0x124b   : > { %v3503_v0 = vadd.f32 1.0, %v4186_v56 }
0x124d   : > { %4187 = vrcp.f32 %v3503_v0 }
0x1253   : > { %v4188_v17 = vpop.eup %4187 }
0x1254   : > { %v3506_v2 = vsel %vm3505_vm9, %v4188_v17, -inf }
0x1255   : > { %3507 = vmax.xlane.f32.xlu2 %v3506_v2 }
0x12b4   : > { %v3432_v30 = vpop.permute.xlu1 %3431 }
0x12b5   : > { %3730 = vmatmul.msk.f32.vlgmr.msra.gmra.mxu1 %vm367_vm1, %v3432_v30 }
0x12c8   : > { %v3508_v19 = vpop.xlane.xlu2 %3507 }
0x12c9   : > { %v3509_v44 = vrot.slane %v3508_v19, 4 }
0x12cb   : > { %v3510_v51 = vmax.f32 %v3508_v19, %v3509_v44 }
0x12cd   : > { %v3511_v57 = vrot.slane %v3510_v51, 2 }
0x12cf   : > { %v3512_v3 = vmax.f32 %v3510_v51, %v3511_v57 }
0x12d1   : > { %v3513_v11 = vrot.slane %v3512_v3, 1 }
0x12d3   : > { %v3514_v52 = vmax.f32 %v3512_v3, %v3513_v11 }
0x12d5   : > { %vm3518_vm10 = vcmp.ge.f32.partialorder %v3508_v19, %v3514_v52 }
0x12d6   : > { %v3519_v42 = vsel %vm3518_vm10, %v3517_v16, 8.0 }
0x12d7   : > { %v3520_v59 = vrot.slane %v3519_v42, 4 }
0x12d9   : > { %v3521_v49 = vmin.f32 %v3519_v42, %v3520_v59 }
0x12db   : > { %v3522_v55 = vrot.slane %v3521_v49, 2 }
0x12dd   : > { %v3523_v15 = vmin.f32 %v3521_v49, %v3522_v55 }
0x12df   : > { %v3524_v60 = vrot.slane %v3523_v15, 1 }
0x12e1   : > { %v3525_v63 = vmin.f32 %v3523_v15, %v3524_v60 }
0x1332   : > { %v3452_v48 = vpop.f32.mrf.mxu1 }
0x1333   : > { %v3453_v39 = vadd.f32 %v4081_v32, %v3452_v48 }
0x1335   : > { %v3455_v12 = vmax.f32 %v3453_v39, 0.0 }
0x1337   : > { %3731 = vmatmul.msk.f32.vlgmr.msrb.gmra.mxu3 %vm367_vm1, %v3455_v12  ;;  %vm3526_vm1 = vcmp.eq.f32.partialorder %v3517_v16, %v3525_v63 }
0x1338   : > { %v3732_v46 = vsel %vm3526_vm1, 1.0, %v4328_v37 }
0x13ba   : > { %v3482_v7 = vpop.f32.mrf.mxu3 }
0x13bb   : > { %v3483_v50 = vadd.f32 %v4082_v18, %v3482_v7 }
0x13bd   : > { %v3495_v24 = vsub.f32 0.0, %v3483_v50  ;;  %v3489_v33 = vadd.f32 %v3487_v43, %v3483_v50 }
0x13bf   : > { %v3496_v40 = vmul.f32 1.442695, %v3495_v24  ;;  %v3490_v25 = vsub.f32 0.0, %v3489_v33 }
0x13c1   : > { %4189 = vpow2.f32 %v3496_v40  ;;  %v3491_v53 = vmul.f32 1.442695, %v3490_v25 }
0x13c3   : > { %4191 = vpow2.f32 %v3491_v53 }
0x13c7   : > { %v4190_v21 = vpop.eup %4189 }
0x13c8   : > { %v3498_v20 = vadd.f32 1.0, %v4190_v21 }
0x13c9   : > { %v4192_v54 = vpop.eup %4191 }
0x13ca   : > { %4193 = vrcp.f32 %v3498_v20  ;;  %v3493_v6 = vadd.f32 1.0, %v4192_v54 }
0x13cc   : > { %4195 = vrcp.f32 %v3493_v6 }
0x13d0   : > { %v4194_v38 = vpop.eup %4193 }
0x13d1   : > { %v3538_v10 = vmul.f32 %v4194_v38, %v3732_v46 }
0x13d2   : > { %v4196_v31 = vpop.eup %4195 }
0x13d3   : > { %v3540_v9 = vsel %vm3539_vm11, %v3538_v10, 0.0  ;;  %v3529_v14 = vmul.f32 %v4196_v31, %v3732_v46 }
0x13d4   : > { %v3541_v61 = vrot.slane %v3540_v9, 4 }
0x13d5   : > { %v3531_v34 = vsel %vm3530_vm12, %v3529_v14, 0.0 }
0x13d6   : > { %v3542_v5 = vadd.f32 %v3541_v61, %v3540_v9  ;;  %v3532_v45 = vrot.slane %v3531_v34, 4 }
0x13d8   : > { %v3543_v47 = vrot.slane %v3542_v5, 2  ;;  %v3533_v41 = vadd.f32 %v3532_v45, %v3531_v34 }
0x13da   : > { %v3544_v58 = vadd.f32 %v3543_v47, %v3542_v5  ;;  %v3534_v29 = vrot.slane %v3533_v41, 2 }
0x13dc   : > { %v3545_v1 = vrot.slane %v3544_v58, 1  ;;  %v3535_v8 = vadd.f32 %v3534_v29, %v3533_v41 }
0x13de   : > { %v3546_v62 = vadd.f32 %v3545_v1, %v3544_v58  ;;  %v3536_v13 = vrot.slane %v3535_v8, 1 }
0x13e0   : > { %v3547_v23 = vmul.f32 0.5, %v3546_v62  ;;  %v3537_v56 = vadd.f32 %v3536_v13, %v3535_v8 }
0x13e2   : > { %3549 = vrot.lane.b32.xlu2 %v3547_v23, %s4329_s9 }
0x143c   : > { %v3550_v0 = vpop.permute.xlu2 %3549 }
0x143d   : > { %v3552_v17 = vsub.f32 %v3537_v56, %v3550_v0  ;;  %v3553_v2 = vadd.f32 %v3550_v0, %v3537_v56 }
0x143f   : > { %3555 = vrot.lane.b32.xlu1 %v3553_v2, %s4330_s8 }
0x14b1   : > { %v3556_v30 = vpop.permute.xlu1 %3555 }
0x14b2   : > { %v3558_v28 = vsel %vm3530_vm12, %v3552_v17, %v3556_v30 }
0x14b3   : > { %v3559_v26 = vmul.f32 32.0, %v3558_v28 }
0x14b5   : > { %3561 = vst.msk [vmem:[%s270_s13] sm:$0x1] %vm3560_vm13, %v3559_v26 }
0x14b6   : > { %4231 = shalt.err (!%p4228_p3)
}
0x14b7   : > { %3768 = dma.vmem_to_hbm [thread:$0]  (%p4409_p5), %s3574_s16, 16, %s3576_s19, %s3563_s20  }
0x14b8 PF: > { %p3774_p4 = scmp.ge.s32.totalorder %s4266_s27, 2  ;;  %s3587_s14 = sand.u32 1, %s4254_s24  }
0x14b9   : > { %s3588_s15 = scalar_lea.sflag [#allocation3], %s3587_s14 }
0x14ba   : > { %p3771_p7 = pnand %p3774_p4, %p4413_p6 }
0x14bc   : > { %p3772_p8 = pneg %p3771_p7 }
0x14be   : > { %4249 = dma.done.wait (%p3772_p8), %s3588_s15, 16  }
0x14bf   : > { %4251 = vsyncadd (%p3772_p8), %s3588_s15, 4294967280  ;;  %p17_p9 = scmp.ge.s32.totalorder %s4396_s30, 4   ;;  %s7199_s24 = smov %s4258_s25 }
0x14c0   : > { %s7200_s25 = smov %s4262_s26  ;;  %s7201_s26 = smov %s4407_s10 }
0x14c1   : > { %s7202_s27 = smov %s4396_s30  ;;  %19 = sbr.rel (!%p17_p9) target bundleno = 3 (0x3), region = 83 }
0x14c6   :  { %3593 = vsyncpa [#allocation3], 1 }
0x14c7   :  { %3595 = vsyncpa [#allocation3 + $0x1], 1 }

</bundles_post_ra>
